<compile_context>
chip_gen: v5e
topology: v5e:2x2
jax: 0.10.0
libtpu: 0.0.40
codegen_flags: <defaults>
</compile_context>

<pallas_src>
import functools
import math

import jax
import jax.numpy as jnp
from jax import lax
from jax.experimental import pallas as pl
from jax.experimental.pallas import tpu as pltpu


MXU_DTYPE = jnp.bfloat16             # MXU operand dtype; accumulation is always f32
NEG_INF = -1e9                       # same finite mask value as the torch reference
VMEM_LIMIT_BYTES = 32 * 1024 * 1024  # explicit scoped-VMEM limit (>= default on v5e/v6e/v7x)


# ------------------------------- small helpers --------------------------------
def _pick_rows_block(r):
    """Largest row block (multiple of 8, <=512) dividing r; prefer >=4 (even) grid steps so a
    'parallel' row axis stays balanced across v7x's two TensorCores and still pipelines."""
    cands = (512, 256, 128, 64, 32, 16, 8)
    for c in cands:
        if r % c == 0 and r // c >= 4 and (r // c) % 2 == 0:
            return c
    for c in cands:
        if r % c == 0 and r // c >= 2:
            return c
    return r


def _pick_q_block(t):
    """Query-tile size for the attention grid (multiple of 8, or full T)."""
    for c in (256, 128, 64, 32, 16, 8):
        if t % c == 0 and t // c >= 2:
            return c
    return t


def _pick_ff_block(dff):
    """d_ff K-tile: 256-aligned fills the 256-wide MXU on v6e/v7x, 128 still saturates v5e."""
    for c in (512, 256, 128):
        if dff % c == 0 and dff // c >= 2:
            return c
    return dff


def _ln_f32(x, g, b, eps):
    """Annotated-Transformer LayerNorm in f32: a*(x-mean)/(std_unbiased+eps)+b."""
    d = x.shape[-1]
    mean = jnp.mean(x, axis=-1, keepdims=True)
    xc = x - mean
    var = jnp.sum(xc * xc, axis=-1, keepdims=True) / (d - 1)   # torch.std -> unbiased
    return g * xc / (jnp.sqrt(var) + eps) + b


@functools.lru_cache(maxsize=None)
def _single_buffer_mode():
    """pl.Buffered(1) for grid-invariant weight blocks (halves their VMEM footprint, which
    matters under v7x's 64 MiB VMEM); fall back to default double-buffering if this Pallas
    version rejects it. Probed once, eagerly."""
    try:
        mode = pl.Buffered(1)

        def _probe(x_ref, w_ref, o_ref):
            o_ref[...] = x_ref[...] + w_ref[...]

        with jax.ensure_compile_time_eval():
            y = pl.pallas_call(
                _probe,
                out_shape=jax.ShapeDtypeStruct((16, 128), jnp.float32),
                grid=(2,),
                in_specs=[pl.BlockSpec((8, 128), lambda i: (i, 0)),
                          pl.BlockSpec((1, 128), lambda i: (0, 0), pipeline_mode=mode)],
                out_specs=pl.BlockSpec((8, 128), lambda i: (i, 0)),
            )(jnp.zeros((16, 128), jnp.float32), jnp.zeros((1, 128), jnp.float32))
            jax.block_until_ready(y)
        return mode
    except Exception:
        return None


def _const_spec(shape, grid_rank):
    """BlockSpec for a grid-invariant (weight/bias) operand, single-buffered when possible."""
    imap = {1: lambda i: (0,) * len(shape),
            2: lambda i, j: (0,) * len(shape)}[grid_rank]
    mode = _single_buffer_mode()
    if mode is not None:
        return pl.BlockSpec(shape, imap, pipeline_mode=mode)
    return pl.BlockSpec(shape, imap)


# -------------- K1: fused LayerNorm + (concatenated) projection ----------------
def _ln_proj_kernel(*refs, eps, apply_ln):
    if apply_ln:
        x_ref, g_ref, b_ref, w_ref, bias_ref, o_ref = refs
    else:
        x_ref, w_ref, bias_ref, o_ref = refs
    x = x_ref[...].astype(jnp.float32)                                  # (bm, D)
    if apply_ln:
        x = _ln_f32(x, g_ref[...], b_ref[...], eps)
    y = jnp.dot(x.astype(w_ref.dtype), w_ref[...],                      # bf16 MXU operands
                preferred_element_type=jnp.float32) + bias_ref[...]     # f32 accumulation
    o_ref[...] = y.astype(o_ref.dtype)


def ln_projection(x, gamma, beta, w, b, *, apply_ln=True, eps=1e-6):
    """(LayerNorm(x) if apply_ln else x) @ w + b; bf16 output for downstream MXU use.
    TODO(synk): add K/N tiling (FFN-style accumulator) at realistic d_model."""
    orig = x.shape
    d = orig[-1]
    dout = w.shape[1]
    x2 = x.reshape(-1, d)
    r = x2.shape[0]
    bm = _pick_rows_block(r)

    in_specs = [pl.BlockSpec((bm, d), lambda i: (i, 0))]
    args = [x2]
    if apply_ln:
        in_specs += [_const_spec((1, d), 1), _const_spec((1, d), 1)]
        args += [gamma.reshape(1, d).astype(jnp.float32),
                 beta.reshape(1, d).astype(jnp.float32)]
    in_specs += [_const_spec((d, dout), 1), _const_spec((1, dout), 1)]
    args += [w, b.reshape(1, dout).astype(jnp.float32)]

    out = pl.pallas_call(
        functools.partial(_ln_proj_kernel, eps=eps, apply_ln=apply_ln),
        out_shape=jax.ShapeDtypeStruct((r, dout), MXU_DTYPE),
        grid=(r // bm,),
        in_specs=in_specs,
        out_specs=pl.BlockSpec((bm, dout), lambda i: (i, 0)),
        compiler_params=pltpu.CompilerParams(
            dimension_semantics=("parallel",), vmem_limit_bytes=VMEM_LIMIT_BYTES),
    )(*args)
    return out.reshape(orig[:-1] + (dout,))


# ------------- K2: attention + output projection + residual add ----------------
def _attn_kernel(x_ref, q_ref, k_ref, v_ref, mask_ref, wo_ref, bo_ref, o_ref,
                 *, num_heads, scale):
    q = q_ref[0]                                        # (tq, D) bf16
    k = k_ref[0]                                        # (S,  D) bf16
    v = v_ref[0]                                        # (S,  D) bf16
    dk = q.shape[-1] // num_heads

    # Mask -> additive bias, hoisted out of the head loop (saves H-1 (tq,S) selects).
    bias = jnp.where(mask_ref[0] != 0, 0.0, NEG_INF).astype(jnp.float32)   # (tq|1, S)

    # Static unroll over heads with true (tq,dk)x(S,dk) contractions. K is consumed in its
    # native (S, D) layout: dot_general contracts dim 1 of both operands (no k.T).
    # TODO(synk): for long S add a KV-tile grid axis with online softmax (flash style).
    ctx = []
    for h in range(num_heads):
        lo = h * dk
        qh = q[:, lo:lo + dk]                           # (tq, dk)
        kh = k[:, lo:lo + dk]                           # (S,  dk)
        vh = v[:, lo:lo + dk]                           # (S,  dk)
        s = lax.dot_general(qh, kh, (((1,), (1,)), ((), ())),
                            preferred_element_type=jnp.float32)            # (tq, S)
        s = s * scale + bias
        p = jnp.exp(s - jnp.max(s, axis=-1, keepdims=True))
        denom = jnp.sum(p, axis=-1, keepdims=True)
        ch = jnp.dot(p.astype(vh.dtype), vh, preferred_element_type=jnp.float32)
        # normalize the (tq, dk) context, not the (tq, S) probabilities
        ctx.append(ch * pl.reciprocal(denom, approx=False))
    ctx = jnp.concatenate(ctx, axis=-1)                                     # (tq, D) f32

    out = jnp.dot(ctx.astype(wo_ref.dtype), wo_ref[...],
                  preferred_element_type=jnp.float32) + bo_ref[...]
    o_ref[0] = (x_ref[0] + out).astype(o_ref.dtype)


def attention_out_residual(x, q_src, q_col, kv_src, k_col, v_col, mask, wo, bo, num_heads):
    """x + ( MultiHeadAttention(q, k, v, mask) @ Wo + bo ).

    q_src / kv_src hold the already-projected bf16 activations packed along the last dim;
    q_col/k_col/v_col select the D-wide column block, so no QKV / head split ever
    materializes in HBM. Grid is (batch, query tile), both 'parallel'."""
    B, T, D = x.shape
    S = kv_src.shape[1]
    dk = D // num_heads
    scale = 1.0 / math.sqrt(dk)
    tq = _pick_q_block(T)

    mask = mask.astype(jnp.int32)
    Bm, Tm, Sm = mask.shape
    assert Sm == S and Tm in (1, T) and Bm in (1, B)
    m_b, m_q = Bm != 1, Tm != 1
    mask_bt = tq if m_q else 1

    return pl.pallas_call(
        functools.partial(_attn_kernel, num_heads=num_heads, scale=scale),
        out_shape=jax.ShapeDtypeStruct((B, T, D), x.dtype),
        grid=(B, T // tq),
        in_specs=[
            pl.BlockSpec((1, tq, D), lambda b, qi: (b, qi, 0)),                 # residual x
            pl.BlockSpec((1, tq, D), lambda b, qi: (b, qi, q_col)),             # Q columns
            pl.BlockSpec((1, S, D), lambda b, qi: (b, 0, k_col)),               # K columns
            pl.BlockSpec((1, S, D), lambda b, qi: (b, 0, v_col)),               # V columns
            pl.BlockSpec((1, mask_bt, S),
                         lambda b, qi: (b if m_b else 0, qi if m_q else 0, 0)), # tiny mask
            _const_spec((D, D), 2),                                             # Wo (bf16)
            _const_spec((1, D), 2),                                             # bo
        ],
        out_specs=pl.BlockSpec((1, tq, D), lambda b, qi: (b, qi, 0)),
        compiler_params=pltpu.CompilerParams(
            dimension_semantics=("parallel", "parallel"),
            vmem_limit_bytes=VMEM_LIMIT_BYTES),
    )(x, q_src, kv_src, kv_src, mask, wo, bo.reshape(1, D).astype(jnp.float32))


# ---------- K3: fused LayerNorm + FFN (d_ff-tiled) + residual add --------------
def _ffn_kernel(x_ref, g_ref, b_ref, w1_ref, b1_ref, w2_ref, b2_ref, o_ref,
                xn_ref, acc_ref, *, eps):
    kstep = pl.program_id(1)

    @pl.when(kstep == 0)
    def _():
        x = x_ref[...].astype(jnp.float32)
        xn_ref[...] = _ln_f32(x, g_ref[...], b_ref[...], eps).astype(xn_ref.dtype)
        acc_ref[...] = jnp.zeros_like(acc_ref)

    h = jnp.dot(xn_ref[...], w1_ref[...],                        # bf16 x bf16 -> f32
                preferred_element_type=jnp.float32) + b1_ref[...]
    h = jnp.maximum(h, 0.0)                                      # (bm, bk) never leaves VMEM
    acc_ref[...] += jnp.dot(h.astype(w2_ref.dtype), w2_ref[...],
                            preferred_element_type=jnp.float32)

    @pl.when(kstep == pl.num_programs(1) - 1)
    def _():
        o_ref[...] = (x_ref[...].astype(jnp.float32) + acc_ref[...]
                      + b2_ref[...]).astype(o_ref.dtype)


def ffn_residual(x, gamma, beta, w1, b1, w2, b2, *, eps=1e-6):
    """x + W2(relu(W1(LayerNorm(x)))) with d_ff streamed in K tiles (f32 VMEM accumulator)."""
    orig = x.shape
    d = orig[-1]
    dff = w1.shape[1]
    x2 = x.reshape(-1, d)
    r = x2.shape[0]
    bm = _pick_rows_block(r)
    bk = _pick_ff_block(dff)

    out = pl.pallas_call(
        functools.partial(_ffn_kernel, eps=eps),
        out_shape=jax.ShapeDtypeStruct((r, d), x.dtype),
        grid=(r // bm, dff // bk),
        in_specs=[
            pl.BlockSpec((bm, d), lambda i, kk: (i, 0)),      # x: LN input + residual
            _const_spec((1, d), 2), _const_spec((1, d), 2),   # LN gamma / beta
            pl.BlockSpec((d, bk), lambda i, kk: (0, kk)),     # W1 K-tile (bf16)
            pl.BlockSpec((1, bk), lambda i, kk: (0, kk)),     # b1 K-tile
            pl.BlockSpec((bk, d), lambda i, kk: (kk, 0)),     # W2 K-tile (bf16)
            _const_spec((1, d), 2),                           # b2
        ],
        out_specs=pl.BlockSpec((bm, d), lambda i, kk: (i, 0)),
        scratch_shapes=[pltpu.VMEM((bm, d), MXU_DTYPE),       # LayerNorm(x) in MXU dtype
                        pltpu.VMEM((bm, d), jnp.float32)],    # f32 accumulator
        compiler_params=pltpu.CompilerParams(
            dimension_semantics=("parallel", "arbitrary"),
            vmem_limit_bytes=VMEM_LIMIT_BYTES),
    )(x2, gamma.reshape(1, d).astype(jnp.float32), beta.reshape(1, d).astype(jnp.float32),
      w1, b1.reshape(1, dff).astype(jnp.float32), w2, b2.reshape(1, d).astype(jnp.float32))
    return out.reshape(orig)


# --------------------------- K4: final LayerNorm --------------------------------
def _layernorm_kernel(x_ref, g_ref, b_ref, o_ref, *, eps):
    o_ref[...] = _ln_f32(x_ref[...].astype(jnp.float32),
                         g_ref[...], b_ref[...], eps).astype(o_ref.dtype)


def layernorm(x, gamma, beta, *, eps=1e-6):
    orig = x.shape
    d = orig[-1]
    x2 = x.reshape(-1, d)
    r = x2.shape[0]
    bm = _pick_rows_block(r)
    out = pl.pallas_call(
        functools.partial(_layernorm_kernel, eps=eps),
        out_shape=jax.ShapeDtypeStruct((r, d), x.dtype),
        grid=(r // bm,),
        in_specs=[pl.BlockSpec((bm, d), lambda i: (i, 0)),
                  _const_spec((1, d), 1), _const_spec((1, d), 1)],
        out_specs=pl.BlockSpec((bm, d), lambda i: (i, 0)),
        compiler_params=pltpu.CompilerParams(
            dimension_semantics=("parallel",), vmem_limit_bytes=VMEM_LIMIT_BYTES),
    )(x2, gamma.reshape(1, d).astype(jnp.float32), beta.reshape(1, d).astype(jnp.float32))
    return out.reshape(orig)


# ------------------------------ Decoder forward ---------------------------------
def prepare_params(params):
    """One-time packing for the kernels: QKV / KV projection weights concatenated into single
    wide matmuls, all MXU weight operands pre-cast to bf16 (half the HBM traffic and VMEM
    footprint); LayerNorm params and biases stay f32."""
    layers = []
    for lp in params["layers"]:
        layers.append(dict(
            ln0_g=lp["ln0_g"], ln0_b=lp["ln0_b"],
            w_qkv=jnp.concatenate([lp["sa_wq"], lp["sa_wk"], lp["sa_wv"]], 1).astype(MXU_DTYPE),
            b_qkv=jnp.concatenate([lp["sa_bq"], lp["sa_bk"], lp["sa_bv"]], 0),
            sa_wo=lp["sa_wo"].astype(MXU_DTYPE), sa_bo=lp["sa_bo"],
            ln1_g=lp["ln1_g"], ln1_b=lp["ln1_b"],
            ca_wq=lp["ca_wq"].astype(MXU_DTYPE), ca_bq=lp["ca_bq"],
            w_kv=jnp.concatenate([lp["ca_wk"], lp["ca_wv"]], 1).astype(MXU_DTYPE),
            b_kv=jnp.concatenate([lp["ca_bk"], lp["ca_bv"]], 0),
            ca_wo=lp["ca_wo"].astype(MXU_DTYPE), ca_bo=lp["ca_bo"],
            ln2_g=lp["ln2_g"], ln2_b=lp["ln2_b"],
            ff_w1=lp["ff_w1"].astype(MXU_DTYPE), ff_b1=lp["ff_b1"],
            ff_w2=lp["ff_w2"].astype(MXU_DTYPE), ff_b2=lp["ff_b2"],
        ))
    return dict(layers=layers, norm_g=params["norm_g"], norm_b=params["norm_b"])


def decoder_forward(dev_params, x, memory, src_mask, tgt_mask, *, num_heads):
    src_mask = src_mask.astype(jnp.int32)      # (B,1,S) / (1,1,S): never broadcast in HBM
    tgt_mask = tgt_mask.astype(jnp.int32)      # (1,T,T) / (B,T,T)

    for lp in dev_params["layers"]:
        # sublayer 0: pre-norm masked self-attention + residual
        qkv = ln_projection(x, lp["ln0_g"], lp["ln0_b"], lp["w_qkv"], lp["b_qkv"])
        x = attention_out_residual(x, qkv, 0, qkv, 1, 2, tgt_mask,
                                   lp["sa_wo"], lp["sa_bo"], num_heads)
        # sublayer 1: pre-norm cross-attention over encoder memory + residual
        q = ln_projection(x, lp["ln1_g"], lp["ln1_b"], lp["ca_wq"], lp["ca_bq"])
        kv = ln_projection(memory, None, None, lp["w_kv"], lp["b_kv"], apply_ln=False)
        x = attention_out_residual(x, q, 0, kv, 0, 1, src_mask,
                                   lp["ca_wo"], lp["ca_bo"], num_heads)
        # sublayer 2: pre-norm position-wise feed-forward + residual
        x = ffn_residual(x, lp["ln2_g"], lp["ln2_b"],
                         lp["ff_w1"], lp["ff_b1"], lp["ff_w2"], lp["ff_b2"])

    return layernorm(x, dev_params["norm_g"], dev_params["norm_b"])


# ----------------------------- pure-JAX reference --------------------------------
def _split_heads(x, h):
    b, t, d = x.shape
    return x.reshape(b, t, h, d // h).transpose(0, 2, 1, 3)


def _merge_heads(x):
    b, h, t, dk = x.shape
    return x.transpose(0, 2, 1, 3).reshape(b, t, h * dk)


def _ref_layernorm(x, g, b, eps=1e-6):
    mean = x.mean(-1, keepdims=True)
    std = jnp.sqrt(jnp.sum((x - mean) ** 2, -1, keepdims=True) / (x.shape[-1] - 1))
    return g * (x - mean) / (std + eps) + b


def decoder_reference(params, x, memory, src_mask, tgt_mask, *, matmul_dtype=jnp.float32):
    """Module-faithful reference. matmul_dtype=bfloat16 mirrors the kernels' MXU operand
    precision (f32 accumulation) for a tight comparison; float32 is the exact torch math."""
    B, T, D = x.shape
    S = memory.shape[1]
    H = params["num_heads"]
    scale = 1.0 / math.sqrt(D // H)

    def mm(a, b):
        return jnp.dot(a.astype(matmul_dtype), b.astype(matmul_dtype),
                       preferred_element_type=jnp.float32)

    def lin(z, w, b):
        return mm(z, w) + b

    def attention(q, k, v, mask):                       # q, k, v: (B, H, T, dk) f32
        s = jnp.einsum("bhqd,bhkd->bhqk", q.astype(matmul_dtype), k.astype(matmul_dtype),
                       preferred_element_type=jnp.float32) * scale
        s = s + jnp.where(mask[:, None] != 0, 0.0, NEG_INF).astype(jnp.float32)
        p = jnp.exp(s - jnp.max(s, axis=-1, keepdims=True))
        ctx = jnp.einsum("bhqk,bhkd->bhqd", p.astype(matmul_dtype), v.astype(matmul_dtype),
                         preferred_element_type=jnp.float32)
        return ctx / jnp.sum(p, axis=-1, keepdims=True)

    tm = jnp.broadcast_to(tgt_mask, (B, T, T))
    sm = jnp.broadcast_to(src_mask, (B, T, S))
    for lp in params["layers"]:
        xn = _ref_layernorm(x, lp["ln0_g"], lp["ln0_b"])
        q = _split_heads(lin(xn, lp["sa_wq"], lp["sa_bq"]), H)
        k = _split_heads(lin(xn, lp["sa_wk"], lp["sa_bk"]), H)
        v = _split_heads(lin(xn, lp["sa_wv"], lp["sa_bv"]), H)
        x = x + lin(_merge_heads(attention(q, k, v, tm)), lp["sa_wo"], lp["sa_bo"])

        xn = _ref_layernorm(x, lp["ln1_g"], lp["ln1_b"])
        q = _split_heads(lin(xn, lp["ca_wq"], lp["ca_bq"]), H)
        k = _split_heads(lin(memory, lp["ca_wk"], lp["ca_bk"]), H)
        v = _split_heads(lin(memory, lp["ca_wv"], lp["ca_bv"]), H)
        x = x + lin(_merge_heads(attention(q, k, v, sm)), lp["ca_wo"], lp["ca_bo"])

        xn = _ref_layernorm(x, lp["ln2_g"], lp["ln2_b"])
        x = x + lin(jnp.maximum(lin(xn, lp["ff_w1"], lp["ff_b1"]), 0.0),
                    lp["ff_w2"], lp["ff_b2"])
    return _ref_layernorm(x, params["norm_g"], params["norm_b"])


# -------------------------------- parameter init ---------------------------------
def init_params(key, d_model, num_heads, d_ff, n_layers):
    def dense(k, fan_in, fan_out):
        kw, kb = jax.random.split(k)
        s = 1.0 / math.sqrt(fan_in)
        return (jax.random.uniform(kw, (fan_in, fan_out), jnp.float32, -s, s),
                jax.random.uniform(kb, (fan_out,), jnp.float32, -s, s))

    keys = jax.random.split(key, 10)
    lp = {}
    names = [("sa_wq", "sa_bq"), ("sa_wk", "sa_bk"), ("sa_wv", "sa_bv"), ("sa_wo", "sa_bo"),
             ("ca_wq", "ca_bq"), ("ca_wk", "ca_bk"), ("ca_wv", "ca_bv"), ("ca_wo", "ca_bo")]
    for (wn, bn), k in zip(names, keys[:8]):
        lp[wn], lp[bn] = dense(k, d_model, d_model)
    lp["ff_w1"], lp["ff_b1"] = dense(keys[8], d_model, d_ff)
    lp["ff_w2"], lp["ff_b2"] = dense(keys[9], d_ff, d_model)
    for i in range(3):
        lp[f"ln{i}_g"] = jnp.ones((d_model,), jnp.float32)
        lp[f"ln{i}_b"] = jnp.zeros((d_model,), jnp.float32)

    # torch `clones()` deep-copies the SAME initialized layer N times -> identical params.
    return {"num_heads": num_heads,
            "layers": [lp] * n_layers,
            "norm_g": jnp.ones((d_model,), jnp.float32),
            "norm_b": jnp.zeros((d_model,), jnp.float32)}


# ------------------------------------ main ----------------------------------------
if __name__ == "__main__":
    # Small but lane-dense config (D, 3D, d_ff multiples of 128 -> unmasked full-lane stores).
    B, T, S, D, H, DFF, N = 2, 16, 16, 128, 4, 256, 2

    key = jax.random.PRNGKey(0)
    kx, km, kp = jax.random.split(key, 3)
    x = jax.random.normal(kx, (B, T, D), jnp.float32)
    memory = jax.random.normal(km, (B, S, D), jnp.float32)
    src_mask = jnp.ones((B, 1, S), jnp.int32)                    # all source positions visible
    tgt_mask = jnp.tril(jnp.ones((T, T), jnp.int32))[None]       # causal (1, T, T)

    params = init_params(kp, D, H, DFF, N)
    dev_params = prepare_params(params)

    _single_buffer_mode()    # probe pl.Buffered(1) support eagerly (outside jit)

    fwd = jax.jit(functools.partial(decoder_forward, num_heads=H))
    out = jax.block_until_ready(fwd(dev_params, x, memory, src_mask, tgt_mask))

    assert out.shape == (B, T, D)
    assert bool(jnp.all(jnp.isfinite(out)))

    # Tight check against a reference that mirrors the kernels' precision
    # (bf16 MXU operands, f32 accumulation, f32 LayerNorm/softmax).
    ref_bf16 = decoder_reference(params, x, memory, src_mask, tgt_mask,
                                 matmul_dtype=jnp.bfloat16)
    assert jnp.allclose(out, ref_bf16, atol=5e-3, rtol=5e-3), "mismatch vs bf16-matmul reference"

    # Sanity check against the exact f32 torch math; the loose tolerance only covers the
    # intentional bf16 operand rounding and catches any wiring / mask / layer-order errors.
    ref_f32 = decoder_reference(params, x, memory, src_mask, tgt_mask,
                                matmul_dtype=jnp.float32)
    assert jnp.allclose(out, ref_f32, atol=1e-1, rtol=1e-1), "mismatch vs f32 reference"

    print("KERNEL_OK")
</pallas_src>

<mosaic_0001>
module attributes {stable_mosaic.version = 11 : i64} {
  func.func @_probe(%arg0: i32, %arg1: memref<8x128xf32, #tpu.memory_space<vmem>>, %arg2: memref<1x128xf32, #tpu.memory_space<vmem>>, %arg3: memref<8x128xf32, #tpu.memory_space<vmem>>) attributes {dimension_semantics = [#tpu.dimension_semantics<arbitrary>], iteration_bounds = array<i64: 2>, scalar_prefetch = 0 : i64, scratch_operands = 0 : i64, tpu.core_type = #tpu.core_type<tc>, window_params = [{transform_indices = @transform_0, window_bounds = array<i64: 8, 128>}, {pipeline_mode = #tpu.pipeline_mode<synchronous>, transform_indices = @transform_1, window_bounds = array<i64: 1, 128>}, {transform_indices = @transform_2, window_bounds = array<i64: 8, 128>}]} {
    %c0 = arith.constant 0 : index
    %c0_0 = arith.constant 0 : index
    %0 = vector.load %arg1[%c0, %c0_0] : memref<8x128xf32, #tpu.memory_space<vmem>>, vector<8x128xf32>
    %c0_1 = arith.constant 0 : index
    %c0_2 = arith.constant 0 : index
    %1 = vector.load %arg2[%c0_1, %c0_2] : memref<1x128xf32, #tpu.memory_space<vmem>>, vector<1x128xf32>
    %2 = vector.broadcast %1 : vector<1x128xf32> to vector<8x128xf32>
    %3 = arith.addf %0, %2 : vector<8x128xf32>
    %c0_3 = arith.constant 0 : index
    %c0_4 = arith.constant 0 : index
    %4 = vector.load %arg3[%c0_3, %c0_4] : memref<8x128xf32, #tpu.memory_space<vmem>>, vector<8x128xf32>
    tpu.vector_store %arg3[%c0_3, %c0_4], %3 {strides = array<i32>} : memref<8x128xf32, #tpu.memory_space<vmem>>, vector<8x128xf32>,
    return
  }
  func.func @transform_0(%arg0: i32) -> (i32, i32) {
    %c0_i32 = arith.constant 0 : i32
    %c0_i32_0 = arith.constant 0 : i32
    return %arg0, %c0_i32 : i32, i32
  }
  func.func @transform_1(%arg0: i32) -> (i32, i32) {
    %c0_i32 = arith.constant 0 : i32
    %c0_i32_0 = arith.constant 0 : i32
    %c0_i32_1 = arith.constant 0 : i32
    return %c0_i32, %c0_i32_0 : i32, i32
  }
  func.func @transform_2(%arg0: i32) -> (i32, i32) {
    %c0_i32 = arith.constant 0 : i32
    %c0_i32_0 = arith.constant 0 : i32
    return %arg0, %c0_i32 : i32, i32
  }
}

module attributes {stable_mosaic.version = 11 : i64} {
  func.func @_ln_proj_kernel(%arg0: i32, %arg1: memref<8x128xf32, #tpu.memory_space<vmem>>, %arg2: memref<1x128xf32, #tpu.memory_space<vmem>>, %arg3: memref<1x128xf32, #tpu.memory_space<vmem>>, %arg4: memref<128x128xbf16, #tpu.memory_space<vmem>>, %arg5: memref<1x128xf32, #tpu.memory_space<vmem>>, %arg6: memref<8x128xbf16, #tpu.memory_space<vmem>>) attributes {dimension_semantics = [#tpu.dimension_semantics<parallel>], iteration_bounds = array<i64: 4>, scalar_prefetch = 0 : i64, scratch_operands = 0 : i64, tpu.core_type = #tpu.core_type<tc>, window_params = [{transform_indices = @transform_0, window_bounds = array<i64: 8, 128>}, {pipeline_mode = #tpu.pipeline_mode<synchronous>, transform_indices = @transform_1, window_bounds = array<i64: 1, 128>}, {pipeline_mode = #tpu.pipeline_mode<synchronous>, transform_indices = @transform_2, window_bounds = array<i64: 1, 128>}, {pipeline_mode = #tpu.pipeline_mode<synchronous>, transform_indices = @transform_3, window_bounds = array<i64: 128, 128>}, {pipeline_mode = #tpu.pipeline_mode<synchronous>, transform_indices = @transform_4, window_bounds = array<i64: 1, 128>}, {transform_indices = @transform_5, window_bounds = array<i64: 8, 128>}]} {
    %c0 = arith.constant 0 : index
    %c0_0 = arith.constant 0 : index
    %0 = vector.load %arg1[%c0, %c0_0] : memref<8x128xf32, #tpu.memory_space<vmem>>, vector<8x128xf32>
    %c0_1 = arith.constant 0 : index
    %c0_2 = arith.constant 0 : index
    %1 = vector.load %arg2[%c0_1, %c0_2] : memref<1x128xf32, #tpu.memory_space<vmem>>, vector<1x128xf32>
    %c0_3 = arith.constant 0 : index
    %c0_4 = arith.constant 0 : index
    %2 = vector.load %arg3[%c0_3, %c0_4] : memref<1x128xf32, #tpu.memory_space<vmem>>, vector<1x128xf32>
    %cst = arith.constant dense<0.000000e+00> : vector<8xf32>
    %3 = vector.multi_reduction <add>, %0, %cst [1] : vector<8x128xf32> to vector<8xf32>
    %4 = vector.shape_cast %3 : vector<8xf32> to vector<8x1xf32>
    %cst_5 = arith.constant 1.280000e+02 : f32
    %5 = vector.broadcast %cst_5 : f32 to vector<8x1xf32>
    %6 = arith.divf %4, %5 : vector<8x1xf32>
    %7 = vector.broadcast %6 : vector<8x1xf32> to vector<8x128xf32>
    %8 = arith.subf %0, %7 : vector<8x128xf32>
    %9 = arith.mulf %8, %8 : vector<8x128xf32>
    %cst_6 = arith.constant dense<0.000000e+00> : vector<8xf32>
    %10 = vector.multi_reduction <add>, %9, %cst_6 [1] : vector<8x128xf32> to vector<8xf32>
    %11 = vector.shape_cast %10 : vector<8xf32> to vector<8x1xf32>
    %cst_7 = arith.constant 1.270000e+02 : f32
    %12 = vector.broadcast %cst_7 : f32 to vector<8x1xf32>
    %13 = arith.divf %11, %12 : vector<8x1xf32>
    %14 = vector.broadcast %1 : vector<1x128xf32> to vector<8x128xf32>
    %15 = arith.mulf %14, %8 : vector<8x128xf32>
    %16 = math.sqrt %13 : vector<8x1xf32>
    %cst_8 = arith.constant 9.99999997E-7 : f32
    %17 = vector.broadcast %cst_8 : f32 to vector<8x1xf32>
    %18 = arith.addf %16, %17 : vector<8x1xf32>
    %19 = vector.broadcast %18 : vector<8x1xf32> to vector<8x128xf32>
    %20 = arith.divf %15, %19 : vector<8x128xf32>
    %21 = vector.broadcast %2 : vector<1x128xf32> to vector<8x128xf32>
    %22 = arith.addf %20, %21 : vector<8x128xf32>
    %23 = arith.truncf %22 : vector<8x128xf32> to vector<8x128xbf16>
    %c0_9 = arith.constant 0 : index
    %c0_10 = arith.constant 0 : index
    %24 = vector.load %arg4[%c0_9, %c0_10] : memref<128x128xbf16, #tpu.memory_space<vmem>>, vector<128x128xbf16>
    %cst_11 = arith.constant dense<0.000000e+00> : vector<8x128xf32>
    %25 = tpu.matmul %23, %24, %cst_11 {dimension_numbers = #tpu.dot_dimension_numbers<[1], [0], [0], [1], [0, 0, 1, 1], [], []>} : vector<8x128xbf16>, vector<128x128xbf16>, vector<8x128xf32> -> vector<8x128xf32>
    %c0_12 = arith.constant 0 : index
    %c0_13 = arith.constant 0 : index
    %26 = vector.load %arg5[%c0_12, %c0_13] : memref<1x128xf32, #tpu.memory_space<vmem>>, vector<1x128xf32>
    %27 = vector.broadcast %26 : vector<1x128xf32> to vector<8x128xf32>
    %28 = arith.addf %25, %27 : vector<8x128xf32>
    %29 = arith.truncf %28 : vector<8x128xf32> to vector<8x128xbf16>
    %c0_14 = arith.constant 0 : index
    %c0_15 = arith.constant 0 : index
    %30 = vector.load %arg6[%c0_14, %c0_15] : memref<8x128xbf16, #tpu.memory_space<vmem>>, vector<8x128xbf16>
    tpu.vector_store %arg6[%c0_14, %c0_15], %29 {strides = array<i32>} : memref<8x128xbf16, #tpu.memory_space<vmem>>, vector<8x128xbf16>,
    return
  }
  func.func @transform_0(%arg0: i32) -> (i32, i32) {
    %c0_i32 = arith.constant 0 : i32
    %c0_i32_0 = arith.constant 0 : i32
    return %arg0, %c0_i32 : i32, i32
  }
  func.func @transform_1(%arg0: i32) -> (i32, i32) {
    %c0_i32 = arith.constant 0 : i32
    %c0_i32_0 = arith.constant 0 : i32
    %c0_i32_1 = arith.constant 0 : i32
    return %c0_i32, %c0_i32_0 : i32, i32
  }
  func.func @transform_2(%arg0: i32) -> (i32, i32) {
    %c0_i32 = arith.constant 0 : i32
    %c0_i32_0 = arith.constant 0 : i32
    %c0_i32_1 = arith.constant 0 : i32
    return %c0_i32, %c0_i32_0 : i32, i32
  }
  func.func @transform_3(%arg0: i32) -> (i32, i32) {
    %c0_i32 = arith.constant 0 : i32
    %c0_i32_0 = arith.constant 0 : i32
    %c0_i32_1 = arith.constant 0 : i32
    return %c0_i32, %c0_i32_0 : i32, i32
  }
  func.func @transform_4(%arg0: i32) -> (i32, i32) {
    %c0_i32 = arith.constant 0 : i32
    %c0_i32_0 = arith.constant 0 : i32
    %c0_i32_1 = arith.constant 0 : i32
    return %c0_i32, %c0_i32_0 : i32, i32
  }
  func.func @transform_5(%arg0: i32) -> (i32, i32) {
    %c0_i32 = arith.constant 0 : i32
    %c0_i32_0 = arith.constant 0 : i32
    return %arg0, %c0_i32 : i32, i32
  }
}

module attributes {stable_mosaic.version = 11 : i64} {
  func.func @_ln_proj_kernel(%arg0: i32, %arg1: memref<8x128xf32, #tpu.memory_space<vmem>>, %arg2: memref<1x128xf32, #tpu.memory_space<vmem>>, %arg3: memref<1x128xf32, #tpu.memory_space<vmem>>, %arg4: memref<128x384xbf16, #tpu.memory_space<vmem>>, %arg5: memref<1x384xf32, #tpu.memory_space<vmem>>, %arg6: memref<8x384xbf16, #tpu.memory_space<vmem>>) attributes {dimension_semantics = [#tpu.dimension_semantics<parallel>], iteration_bounds = array<i64: 4>, scalar_prefetch = 0 : i64, scratch_operands = 0 : i64, tpu.core_type = #tpu.core_type<tc>, window_params = [{transform_indices = @transform_0, window_bounds = array<i64: 8, 128>}, {pipeline_mode = #tpu.pipeline_mode<synchronous>, transform_indices = @transform_1, window_bounds = array<i64: 1, 128>}, {pipeline_mode = #tpu.pipeline_mode<synchronous>, transform_indices = @transform_2, window_bounds = array<i64: 1, 128>}, {pipeline_mode = #tpu.pipeline_mode<synchronous>, transform_indices = @transform_3, window_bounds = array<i64: 128, 384>}, {pipeline_mode = #tpu.pipeline_mode<synchronous>, transform_indices = @transform_4, window_bounds = array<i64: 1, 384>}, {transform_indices = @transform_5, window_bounds = array<i64: 8, 384>}]} {
    %c0 = arith.constant 0 : index
    %c0_0 = arith.constant 0 : index
    %0 = vector.load %arg1[%c0, %c0_0] : memref<8x128xf32, #tpu.memory_space<vmem>>, vector<8x128xf32>
    %c0_1 = arith.constant 0 : index
    %c0_2 = arith.constant 0 : index
    %1 = vector.load %arg2[%c0_1, %c0_2] : memref<1x128xf32, #tpu.memory_space<vmem>>, vector<1x128xf32>
    %c0_3 = arith.constant 0 : index
    %c0_4 = arith.constant 0 : index
    %2 = vector.load %arg3[%c0_3, %c0_4] : memref<1x128xf32, #tpu.memory_space<vmem>>, vector<1x128xf32>
    %cst = arith.constant dense<0.000000e+00> : vector<8xf32>
    %3 = vector.multi_reduction <add>, %0, %cst [1] : vector<8x128xf32> to vector<8xf32>
    %4 = vector.shape_cast %3 : vector<8xf32> to vector<8x1xf32>
    %cst_5 = arith.constant 1.280000e+02 : f32
    %5 = vector.broadcast %cst_5 : f32 to vector<8x1xf32>
    %6 = arith.divf %4, %5 : vector<8x1xf32>
    %7 = vector.broadcast %6 : vector<8x1xf32> to vector<8x128xf32>
    %8 = arith.subf %0, %7 : vector<8x128xf32>
    %9 = arith.mulf %8, %8 : vector<8x128xf32>
    %cst_6 = arith.constant dense<0.000000e+00> : vector<8xf32>
    %10 = vector.multi_reduction <add>, %9, %cst_6 [1] : vector<8x128xf32> to vector<8xf32>
    %11 = vector.shape_cast %10 : vector<8xf32> to vector<8x1xf32>
    %cst_7 = arith.constant 1.270000e+02 : f32
    %12 = vector.broadcast %cst_7 : f32 to vector<8x1xf32>
    %13 = arith.divf %11, %12 : vector<8x1xf32>
    %14 = vector.broadcast %1 : vector<1x128xf32> to vector<8x128xf32>
    %15 = arith.mulf %14, %8 : vector<8x128xf32>
    %16 = math.sqrt %13 : vector<8x1xf32>
    %cst_8 = arith.constant 9.99999997E-7 : f32
    %17 = vector.broadcast %cst_8 : f32 to vector<8x1xf32>
    %18 = arith.addf %16, %17 : vector<8x1xf32>
    %19 = vector.broadcast %18 : vector<8x1xf32> to vector<8x128xf32>
    %20 = arith.divf %15, %19 : vector<8x128xf32>
    %21 = vector.broadcast %2 : vector<1x128xf32> to vector<8x128xf32>
    %22 = arith.addf %20, %21 : vector<8x128xf32>
    %23 = arith.truncf %22 : vector<8x128xf32> to vector<8x128xbf16>
    %c0_9 = arith.constant 0 : index
    %c0_10 = arith.constant 0 : index
    %24 = vector.load %arg4[%c0_9, %c0_10] : memref<128x384xbf16, #tpu.memory_space<vmem>>, vector<128x384xbf16>
    %cst_11 = arith.constant dense<0.000000e+00> : vector<8x384xf32>
    %25 = tpu.matmul %23, %24, %cst_11 {dimension_numbers = #tpu.dot_dimension_numbers<[1], [0], [0], [1], [0, 0, 1, 1], [], []>} : vector<8x128xbf16>, vector<128x384xbf16>, vector<8x384xf32> -> vector<8x384xf32>
    %c0_12 = arith.constant 0 : index
    %c0_13 = arith.constant 0 : index
    %26 = vector.load %arg5[%c0_12, %c0_13] : memref<1x384xf32, #tpu.memory_space<vmem>>, vector<1x384xf32>
    %27 = vector.broadcast %26 : vector<1x384xf32> to vector<8x384xf32>
    %28 = arith.addf %25, %27 : vector<8x384xf32>
    %29 = arith.truncf %28 : vector<8x384xf32> to vector<8x384xbf16>
    %c0_14 = arith.constant 0 : index
    %c0_15 = arith.constant 0 : index
    %30 = vector.load %arg6[%c0_14, %c0_15] : memref<8x384xbf16, #tpu.memory_space<vmem>>, vector<8x384xbf16>
    tpu.vector_store %arg6[%c0_14, %c0_15], %29 {strides = array<i32>} : memref<8x384xbf16, #tpu.memory_space<vmem>>, vector<8x384xbf16>,
    return
  }
  func.func @transform_0(%arg0: i32) -> (i32, i32) {
    %c0_i32 = arith.constant 0 : i32
    %c0_i32_0 = arith.constant 0 : i32
    return %arg0, %c0_i32 : i32, i32
  }
  func.func @transform_1(%arg0: i32) -> (i32, i32) {
    %c0_i32 = arith.constant 0 : i32
    %c0_i32_0 = arith.constant 0 : i32
    %c0_i32_1 = arith.constant 0 : i32
    return %c0_i32, %c0_i32_0 : i32, i32
  }
  func.func @transform_2(%arg0: i32) -> (i32, i32) {
    %c0_i32 = arith.constant 0 : i32
    %c0_i32_0 = arith.constant 0 : i32
    %c0_i32_1 = arith.constant 0 : i32
    return %c0_i32, %c0_i32_0 : i32, i32
  }
  func.func @transform_3(%arg0: i32) -> (i32, i32) {
    %c0_i32 = arith.constant 0 : i32
    %c0_i32_0 = arith.constant 0 : i32
    %c0_i32_1 = arith.constant 0 : i32
    return %c0_i32, %c0_i32_0 : i32, i32
  }
  func.func @transform_4(%arg0: i32) -> (i32, i32) {
    %c0_i32 = arith.constant 0 : i32
    %c0_i32_0 = arith.constant 0 : i32
    %c0_i32_1 = arith.constant 0 : i32
    return %c0_i32, %c0_i32_0 : i32, i32
  }
  func.func @transform_5(%arg0: i32) -> (i32, i32) {
    %c0_i32 = arith.constant 0 : i32
    %c0_i32_0 = arith.constant 0 : i32
    return %arg0, %c0_i32 : i32, i32
  }
}

module attributes {stable_mosaic.version = 11 : i64} {
  func.func @_attn_kernel(%arg0: i32, %arg1: i32, %arg2: memref<1x8x128xf32, #tpu.memory_space<vmem>>, %arg3: memref<1x8x128xbf16, #tpu.memory_space<vmem>>, %arg4: memref<1x16x128xbf16, #tpu.memory_space<vmem>>, %arg5: memref<1x16x128xbf16, #tpu.memory_space<vmem>>, %arg6: memref<1x8x16xi32, #tpu.memory_space<vmem>>, %arg7: memref<128x128xbf16, #tpu.memory_space<vmem>>, %arg8: memref<1x128xf32, #tpu.memory_space<vmem>>, %arg9: memref<1x8x128xf32, #tpu.memory_space<vmem>>) attributes {dimension_semantics = [#tpu.dimension_semantics<parallel>, #tpu.dimension_semantics<parallel>], iteration_bounds = array<i64: 2, 2>, scalar_prefetch = 0 : i64, scratch_operands = 0 : i64, tpu.core_type = #tpu.core_type<tc>, window_params = [{transform_indices = @transform_0, window_bounds = array<i64: 1, 8, 128>}, {transform_indices = @transform_1, window_bounds = array<i64: 1, 8, 128>}, {transform_indices = @transform_2, window_bounds = array<i64: 1, 16, 128>}, {transform_indices = @transform_3, window_bounds = array<i64: 1, 16, 128>}, {transform_indices = @transform_4, window_bounds = array<i64: 1, 8, 16>}, {pipeline_mode = #tpu.pipeline_mode<synchronous>, transform_indices = @transform_5, window_bounds = array<i64: 128, 128>}, {pipeline_mode = #tpu.pipeline_mode<synchronous>, transform_indices = @transform_6, window_bounds = array<i64: 1, 128>}, {transform_indices = @transform_7, window_bounds = array<i64: 1, 8, 128>}]} {
    %c0 = arith.constant 0 : index
    %c0_0 = arith.constant 0 : index
    %c0_1 = arith.constant 0 : index
    %0 = vector.load %arg3[%c0, %c0_0, %c0_1] : memref<1x8x128xbf16, #tpu.memory_space<vmem>>, vector<1x8x128xbf16>
    %1 = vector.shape_cast %0 : vector<1x8x128xbf16> to vector<8x128xbf16>
    %c0_2 = arith.constant 0 : index
    %c0_3 = arith.constant 0 : index
    %c0_4 = arith.constant 0 : index
    %2 = vector.load %arg4[%c0_2, %c0_3, %c0_4] : memref<1x16x128xbf16, #tpu.memory_space<vmem>>, vector<1x16x128xbf16>
    %3 = vector.shape_cast %2 : vector<1x16x128xbf16> to vector<16x128xbf16>
    %c0_5 = arith.constant 0 : index
    %c0_6 = arith.constant 0 : index
    %c0_7 = arith.constant 0 : index
    %4 = vector.load %arg5[%c0_5, %c0_6, %c0_7] : memref<1x16x128xbf16, #tpu.memory_space<vmem>>, vector<1x16x128xbf16>
    %5 = vector.shape_cast %4 : vector<1x16x128xbf16> to vector<16x128xbf16>
    %c0_8 = arith.constant 0 : index
    %c0_9 = arith.constant 0 : index
    %c0_10 = arith.constant 0 : index
    %6 = vector.load %arg6[%c0_8, %c0_9, %c0_10] : memref<1x8x16xi32, #tpu.memory_space<vmem>>, vector<1x8x16xi32>
    %7 = vector.shape_cast %6 : vector<1x8x16xi32> to vector<8x16xi32>
    %c0_i32 = arith.constant 0 : i32
    %8 = vector.broadcast %c0_i32 : i32 to vector<8x16xi32>
    %9 = arith.cmpi ne, %7, %8 : vector<8x16xi32>
    %cst = arith.constant 0.000000e+00 : f32
    %cst_11 = arith.constant -1.000000e+09 : f32
    %10 = vector.broadcast %cst : f32 to vector<8x16xf32>
    %11 = vector.broadcast %cst_11 : f32 to vector<8x16xf32>
    %12 = arith.select %9, %10, %11 : vector<8x16xi1>, vector<8x16xf32>
    %13 = vector.extract_strided_slice %1 {offsets = [0, 0], sizes = [8, 32], strides = [1, 1]} : vector<8x128xbf16> to vector<8x32xbf16>
    %14 = vector.extract_strided_slice %3 {offsets = [0, 0], sizes = [16, 32], strides = [1, 1]} : vector<16x128xbf16> to vector<16x32xbf16>
    %15 = vector.extract_strided_slice %5 {offsets = [0, 0], sizes = [16, 32], strides = [1, 1]} : vector<16x128xbf16> to vector<16x32xbf16>
    %cst_12 = arith.constant dense<0.000000e+00> : vector<8x16xf32>
    %16 = tpu.matmul %13, %14, %cst_12 {dimension_numbers = #tpu.dot_dimension_numbers<[1], [1], [0], [0], [0, 0, 1, 0], [], []>} : vector<8x32xbf16>, vector<16x32xbf16>, vector<8x16xf32> -> vector<8x16xf32>
    %cst_13 = arith.constant 0.176776692 : f32
    %17 = vector.broadcast %cst_13 : f32 to vector<8x16xf32>
    %18 = arith.mulf %16, %17 : vector<8x16xf32>
    %19 = arith.addf %18, %12 : vector<8x16xf32>
    %cst_14 = arith.constant dense<0xFF800000> : vector<8xf32>
    %20 = vector.multi_reduction <maximumf>, %19, %cst_14 [1] : vector<8x16xf32> to vector<8xf32>
    %21 = vector.shape_cast %20 : vector<8xf32> to vector<8x1xf32>
    %22 = vector.broadcast %21 : vector<8x1xf32> to vector<8x16xf32>
    %23 = arith.subf %19, %22 : vector<8x16xf32>
    %24 = math.exp %23 : vector<8x16xf32>
    %cst_15 = arith.constant dense<0.000000e+00> : vector<8xf32>
    %25 = vector.multi_reduction <add>, %24, %cst_15 [1] : vector<8x16xf32> to vector<8xf32>
    %26 = vector.shape_cast %25 : vector<8xf32> to vector<8x1xf32>
    %27 = arith.truncf %24 : vector<8x16xf32> to vector<8x16xbf16>
    %cst_16 = arith.constant dense<0.000000e+00> : vector<8x32xf32>
    %28 = tpu.matmul %27, %15, %cst_16 {dimension_numbers = #tpu.dot_dimension_numbers<[1], [0], [0], [1], [0, 0, 1, 1], [], []>} : vector<8x16xbf16>, vector<16x32xbf16>, vector<8x32xf32> -> vector<8x32xf32>
    %29 = tpu.reciprocal %26 : vector<8x1xf32> -> vector<8x1xf32>
    %30 = vector.broadcast %29 : vector<8x1xf32> to vector<8x32xf32>
    %31 = arith.mulf %28, %30 : vector<8x32xf32>
    %32 = vector.extract_strided_slice %1 {offsets = [0, 32], sizes = [8, 32], strides = [1, 1]} : vector<8x128xbf16> to vector<8x32xbf16>
    %33 = vector.extract_strided_slice %3 {offsets = [0, 32], sizes = [16, 32], strides = [1, 1]} : vector<16x128xbf16> to vector<16x32xbf16>
    %34 = vector.extract_strided_slice %5 {offsets = [0, 32], sizes = [16, 32], strides = [1, 1]} : vector<16x128xbf16> to vector<16x32xbf16>
    %cst_17 = arith.constant dense<0.000000e+00> : vector<8x16xf32>
    %35 = tpu.matmul %32, %33, %cst_17 {dimension_numbers = #tpu.dot_dimension_numbers<[1], [1], [0], [0], [0, 0, 1, 0], [], []>} : vector<8x32xbf16>, vector<16x32xbf16>, vector<8x16xf32> -> vector<8x16xf32>
    %cst_18 = arith.constant 0.176776692 : f32
    %36 = vector.broadcast %cst_18 : f32 to vector<8x16xf32>
    %37 = arith.mulf %35, %36 : vector<8x16xf32>
    %38 = arith.addf %37, %12 : vector<8x16xf32>
    %cst_19 = arith.constant dense<0xFF800000> : vector<8xf32>
    %39 = vector.multi_reduction <maximumf>, %38, %cst_19 [1] : vector<8x16xf32> to vector<8xf32>
    %40 = vector.shape_cast %39 : vector<8xf32> to vector<8x1xf32>
    %41 = vector.broadcast %40 : vector<8x1xf32> to vector<8x16xf32>
    %42 = arith.subf %38, %41 : vector<8x16xf32>
    %43 = math.exp %42 : vector<8x16xf32>
    %cst_20 = arith.constant dense<0.000000e+00> : vector<8xf32>
    %44 = vector.multi_reduction <add>, %43, %cst_20 [1] : vector<8x16xf32> to vector<8xf32>
    %45 = vector.shape_cast %44 : vector<8xf32> to vector<8x1xf32>
    %46 = arith.truncf %43 : vector<8x16xf32> to vector<8x16xbf16>
    %cst_21 = arith.constant dense<0.000000e+00> : vector<8x32xf32>
    %47 = tpu.matmul %46, %34, %cst_21 {dimension_numbers = #tpu.dot_dimension_numbers<[1], [0], [0], [1], [0, 0, 1, 1], [], []>} : vector<8x16xbf16>, vector<16x32xbf16>, vector<8x32xf32> -> vector<8x32xf32>
    %48 = tpu.reciprocal %45 : vector<8x1xf32> -> vector<8x1xf32>
    %49 = vector.broadcast %48 : vector<8x1xf32> to vector<8x32xf32>
    %50 = arith.mulf %47, %49 : vector<8x32xf32>
    %51 = vector.extract_strided_slice %1 {offsets = [0, 64], sizes = [8, 32], strides = [1, 1]} : vector<8x128xbf16> to vector<8x32xbf16>
    %52 = vector.extract_strided_slice %3 {offsets = [0, 64], sizes = [16, 32], strides = [1, 1]} : vector<16x128xbf16> to vector<16x32xbf16>
    %53 = vector.extract_strided_slice %5 {offsets = [0, 64], sizes = [16, 32], strides = [1, 1]} : vector<16x128xbf16> to vector<16x32xbf16>
    %cst_22 = arith.constant dense<0.000000e+00> : vector<8x16xf32>
    %54 = tpu.matmul %51, %52, %cst_22 {dimension_numbers = #tpu.dot_dimension_numbers<[1], [1], [0], [0], [0, 0, 1, 0], [], []>} : vector<8x32xbf16>, vector<16x32xbf16>, vector<8x16xf32> -> vector<8x16xf32>
    %cst_23 = arith.constant 0.176776692 : f32
    %55 = vector.broadcast %cst_23 : f32 to vector<8x16xf32>
    %56 = arith.mulf %54, %55 : vector<8x16xf32>
    %57 = arith.addf %56, %12 : vector<8x16xf32>
    %cst_24 = arith.constant dense<0xFF800000> : vector<8xf32>
    %58 = vector.multi_reduction <maximumf>, %57, %cst_24 [1] : vector<8x16xf32> to vector<8xf32>
    %59 = vector.shape_cast %58 : vector<8xf32> to vector<8x1xf32>
    %60 = vector.broadcast %59 : vector<8x1xf32> to vector<8x16xf32>
    %61 = arith.subf %57, %60 : vector<8x16xf32>
    %62 = math.exp %61 : vector<8x16xf32>
    %cst_25 = arith.constant dense<0.000000e+00> : vector<8xf32>
    %63 = vector.multi_reduction <add>, %62, %cst_25 [1] : vector<8x16xf32> to vector<8xf32>
    %64 = vector.shape_cast %63 : vector<8xf32> to vector<8x1xf32>
    %65 = arith.truncf %62 : vector<8x16xf32> to vector<8x16xbf16>
    %cst_26 = arith.constant dense<0.000000e+00> : vector<8x32xf32>
    %66 = tpu.matmul %65, %53, %cst_26 {dimension_numbers = #tpu.dot_dimension_numbers<[1], [0], [0], [1], [0, 0, 1, 1], [], []>} : vector<8x16xbf16>, vector<16x32xbf16>, vector<8x32xf32> -> vector<8x32xf32>
    %67 = tpu.reciprocal %64 : vector<8x1xf32> -> vector<8x1xf32>
    %68 = vector.broadcast %67 : vector<8x1xf32> to vector<8x32xf32>
    %69 = arith.mulf %66, %68 : vector<8x32xf32>
    %70 = vector.extract_strided_slice %1 {offsets = [0, 96], sizes = [8, 32], strides = [1, 1]} : vector<8x128xbf16> to vector<8x32xbf16>
    %71 = vector.extract_strided_slice %3 {offsets = [0, 96], sizes = [16, 32], strides = [1, 1]} : vector<16x128xbf16> to vector<16x32xbf16>
    %72 = vector.extract_strided_slice %5 {offsets = [0, 96], sizes = [16, 32], strides = [1, 1]} : vector<16x128xbf16> to vector<16x32xbf16>
    %cst_27 = arith.constant dense<0.000000e+00> : vector<8x16xf32>
    %73 = tpu.matmul %70, %71, %cst_27 {dimension_numbers = #tpu.dot_dimension_numbers<[1], [1], [0], [0], [0, 0, 1, 0], [], []>} : vector<8x32xbf16>, vector<16x32xbf16>, vector<8x16xf32> -> vector<8x16xf32>
    %cst_28 = arith.constant 0.176776692 : f32
    %74 = vector.broadcast %cst_28 : f32 to vector<8x16xf32>
    %75 = arith.mulf %73, %74 : vector<8x16xf32>
    %76 = arith.addf %75, %12 : vector<8x16xf32>
    %cst_29 = arith.constant dense<0xFF800000> : vector<8xf32>
    %77 = vector.multi_reduction <maximumf>, %76, %cst_29 [1] : vector<8x16xf32> to vector<8xf32>
    %78 = vector.shape_cast %77 : vector<8xf32> to vector<8x1xf32>
    %79 = vector.broadcast %78 : vector<8x1xf32> to vector<8x16xf32>
    %80 = arith.subf %76, %79 : vector<8x16xf32>
    %81 = math.exp %80 : vector<8x16xf32>
    %cst_30 = arith.constant dense<0.000000e+00> : vector<8xf32>
    %82 = vector.multi_reduction <add>, %81, %cst_30 [1] : vector<8x16xf32> to vector<8xf32>
    %83 = vector.shape_cast %82 : vector<8xf32> to vector<8x1xf32>
    %84 = arith.truncf %81 : vector<8x16xf32> to vector<8x16xbf16>
    %cst_31 = arith.constant dense<0.000000e+00> : vector<8x32xf32>
    %85 = tpu.matmul %84, %72, %cst_31 {dimension_numbers = #tpu.dot_dimension_numbers<[1], [0], [0], [1], [0, 0, 1, 1], [], []>} : vector<8x16xbf16>, vector<16x32xbf16>, vector<8x32xf32> -> vector<8x32xf32>
    %86 = tpu.reciprocal %83 : vector<8x1xf32> -> vector<8x1xf32>
    %87 = vector.broadcast %86 : vector<8x1xf32> to vector<8x32xf32>
    %88 = arith.mulf %85, %87 : vector<8x32xf32>
    %89 = tpu.concatenate %31, %50, %69, %88 in 1 : vector<8x32xf32>, vector<8x32xf32>, vector<8x32xf32>, vector<8x32xf32> -> vector<8x128xf32>
    %90 = arith.truncf %89 : vector<8x128xf32> to vector<8x128xbf16>
    %c0_32 = arith.constant 0 : index
    %c0_33 = arith.constant 0 : index
    %91 = vector.load %arg7[%c0_32, %c0_33] : memref<128x128xbf16, #tpu.memory_space<vmem>>, vector<128x128xbf16>
    %cst_34 = arith.constant dense<0.000000e+00> : vector<8x128xf32>
    %92 = tpu.matmul %90, %91, %cst_34 {dimension_numbers = #tpu.dot_dimension_numbers<[1], [0], [0], [1], [0, 0, 1, 1], [], []>} : vector<8x128xbf16>, vector<128x128xbf16>, vector<8x128xf32> -> vector<8x128xf32>
    %c0_35 = arith.constant 0 : index
    %c0_36 = arith.constant 0 : index
    %93 = vector.load %arg8[%c0_35, %c0_36] : memref<1x128xf32, #tpu.memory_space<vmem>>, vector<1x128xf32>
    %94 = vector.broadcast %93 : vector<1x128xf32> to vector<8x128xf32>
    %95 = arith.addf %92, %94 : vector<8x128xf32>
    %c0_37 = arith.constant 0 : index
    %c0_38 = arith.constant 0 : index
    %c0_39 = arith.constant 0 : index
    %96 = vector.load %arg2[%c0_37, %c0_38, %c0_39] : memref<1x8x128xf32, #tpu.memory_space<vmem>>, vector<1x8x128xf32>
    %97 = vector.shape_cast %96 : vector<1x8x128xf32> to vector<8x128xf32>
    %98 = arith.addf %97, %95 : vector<8x128xf32>
    %c0_40 = arith.constant 0 : index
    %c0_41 = arith.constant 0 : index
    %c0_42 = arith.constant 0 : index
    %99 = vector.load %arg9[%c0_40, %c0_41, %c0_42] : memref<1x8x128xf32, #tpu.memory_space<vmem>>, vector<1x8x128xf32>
    %100 = vector.shape_cast %99 : vector<1x8x128xf32> to vector<8x128xf32>
    %101 = vector.shape_cast %98 : vector<8x128xf32> to vector<1x8x128xf32>
    tpu.vector_store %arg9[%c0_40, %c0_41, %c0_42], %101 {strides = array<i32>} : memref<1x8x128xf32, #tpu.memory_space<vmem>>, vector<1x8x128xf32>,
    return
  }
  func.func @transform_0(%arg0: i32, %arg1: i32) -> (i32, i32, i32) {
    %c0_i32 = arith.constant 0 : i32
    %c0_i32_0 = arith.constant 0 : i32
    return %arg0, %arg1, %c0_i32 : i32, i32, i32
  }
  func.func @transform_1(%arg0: i32, %arg1: i32) -> (i32, i32, i32) {
    %c0_i32 = arith.constant 0 : i32
    %c0_i32_0 = arith.constant 0 : i32
    return %arg0, %arg1, %c0_i32 : i32, i32, i32
  }
  func.func @transform_2(%arg0: i32, %arg1: i32) -> (i32, i32, i32) {
    %c0_i32 = arith.constant 0 : i32
    %c1_i32 = arith.constant 1 : i32
    %c0_i32_0 = arith.constant 0 : i32
    return %arg0, %c0_i32, %c1_i32 : i32, i32, i32
  }
  func.func @transform_3(%arg0: i32, %arg1: i32) -> (i32, i32, i32) {
    %c0_i32 = arith.constant 0 : i32
    %c2_i32 = arith.constant 2 : i32
    %c0_i32_0 = arith.constant 0 : i32
    return %arg0, %c0_i32, %c2_i32 : i32, i32, i32
  }
  func.func @transform_4(%arg0: i32, %arg1: i32) -> (i32, i32, i32) {
    %c0_i32 = arith.constant 0 : i32
    %c0_i32_0 = arith.constant 0 : i32
    %c0_i32_1 = arith.constant 0 : i32
    return %c0_i32, %arg1, %c0_i32_0 : i32, i32, i32
  }
  func.func @transform_5(%arg0: i32, %arg1: i32) -> (i32, i32) {
    %c0_i32 = arith.constant 0 : i32
    %c0_i32_0 = arith.constant 0 : i32
    %c0_i32_1 = arith.constant 0 : i32
    return %c0_i32, %c0_i32_0 : i32, i32
  }
  func.func @transform_6(%arg0: i32, %arg1: i32) -> (i32, i32) {
    %c0_i32 = arith.constant 0 : i32
    %c0_i32_0 = arith.constant 0 : i32
    %c0_i32_1 = arith.constant 0 : i32
    return %c0_i32, %c0_i32_0 : i32, i32
  }
  func.func @transform_7(%arg0: i32, %arg1: i32) -> (i32, i32, i32) {
    %c0_i32 = arith.constant 0 : i32
    %c0_i32_0 = arith.constant 0 : i32
    return %arg0, %arg1, %c0_i32 : i32, i32, i32
  }
}

module attributes {stable_mosaic.version = 11 : i64} {
  func.func @_ln_proj_kernel(%arg0: i32, %arg1: memref<8x128xf32, #tpu.memory_space<vmem>>, %arg2: memref<128x256xbf16, #tpu.memory_space<vmem>>, %arg3: memref<1x256xf32, #tpu.memory_space<vmem>>, %arg4: memref<8x256xbf16, #tpu.memory_space<vmem>>) attributes {dimension_semantics = [#tpu.dimension_semantics<parallel>], iteration_bounds = array<i64: 4>, scalar_prefetch = 0 : i64, scratch_operands = 0 : i64, tpu.core_type = #tpu.core_type<tc>, window_params = [{transform_indices = @transform_0, window_bounds = array<i64: 8, 128>}, {pipeline_mode = #tpu.pipeline_mode<synchronous>, transform_indices = @transform_1, window_bounds = array<i64: 128, 256>}, {pipeline_mode = #tpu.pipeline_mode<synchronous>, transform_indices = @transform_2, window_bounds = array<i64: 1, 256>}, {transform_indices = @transform_3, window_bounds = array<i64: 8, 256>}]} {
    %c0 = arith.constant 0 : index
    %c0_0 = arith.constant 0 : index
    %0 = vector.load %arg1[%c0, %c0_0] : memref<8x128xf32, #tpu.memory_space<vmem>>, vector<8x128xf32>
    %1 = arith.truncf %0 : vector<8x128xf32> to vector<8x128xbf16>
    %c0_1 = arith.constant 0 : index
    %c0_2 = arith.constant 0 : index
    %2 = vector.load %arg2[%c0_1, %c0_2] : memref<128x256xbf16, #tpu.memory_space<vmem>>, vector<128x256xbf16>
    %cst = arith.constant dense<0.000000e+00> : vector<8x256xf32>
    %3 = tpu.matmul %1, %2, %cst {dimension_numbers = #tpu.dot_dimension_numbers<[1], [0], [0], [1], [0, 0, 1, 1], [], []>} : vector<8x128xbf16>, vector<128x256xbf16>, vector<8x256xf32> -> vector<8x256xf32>
    %c0_3 = arith.constant 0 : index
    %c0_4 = arith.constant 0 : index
    %4 = vector.load %arg3[%c0_3, %c0_4] : memref<1x256xf32, #tpu.memory_space<vmem>>, vector<1x256xf32>
    %5 = vector.broadcast %4 : vector<1x256xf32> to vector<8x256xf32>
    %6 = arith.addf %3, %5 : vector<8x256xf32>
    %7 = arith.truncf %6 : vector<8x256xf32> to vector<8x256xbf16>
    %c0_5 = arith.constant 0 : index
    %c0_6 = arith.constant 0 : index
    %8 = vector.load %arg4[%c0_5, %c0_6] : memref<8x256xbf16, #tpu.memory_space<vmem>>, vector<8x256xbf16>
    tpu.vector_store %arg4[%c0_5, %c0_6], %7 {strides = array<i32>} : memref<8x256xbf16, #tpu.memory_space<vmem>>, vector<8x256xbf16>,
    return
  }
  func.func @transform_0(%arg0: i32) -> (i32, i32) {
    %c0_i32 = arith.constant 0 : i32
    %c0_i32_0 = arith.constant 0 : i32
    return %arg0, %c0_i32 : i32, i32
  }
  func.func @transform_1(%arg0: i32) -> (i32, i32) {
    %c0_i32 = arith.constant 0 : i32
    %c0_i32_0 = arith.constant 0 : i32
    %c0_i32_1 = arith.constant 0 : i32
    return %c0_i32, %c0_i32_0 : i32, i32
  }
  func.func @transform_2(%arg0: i32) -> (i32, i32) {
    %c0_i32 = arith.constant 0 : i32
    %c0_i32_0 = arith.constant 0 : i32
    %c0_i32_1 = arith.constant 0 : i32
    return %c0_i32, %c0_i32_0 : i32, i32
  }
  func.func @transform_3(%arg0: i32) -> (i32, i32) {
    %c0_i32 = arith.constant 0 : i32
    %c0_i32_0 = arith.constant 0 : i32
    return %arg0, %c0_i32 : i32, i32
  }
}

module attributes {stable_mosaic.version = 11 : i64} {
  func.func @_attn_kernel(%arg0: i32, %arg1: i32, %arg2: memref<1x8x128xf32, #tpu.memory_space<vmem>>, %arg3: memref<1x8x128xbf16, #tpu.memory_space<vmem>>, %arg4: memref<1x16x128xbf16, #tpu.memory_space<vmem>>, %arg5: memref<1x16x128xbf16, #tpu.memory_space<vmem>>, %arg6: memref<1x1x16xi32, #tpu.memory_space<vmem>>, %arg7: memref<128x128xbf16, #tpu.memory_space<vmem>>, %arg8: memref<1x128xf32, #tpu.memory_space<vmem>>, %arg9: memref<1x8x128xf32, #tpu.memory_space<vmem>>) attributes {dimension_semantics = [#tpu.dimension_semantics<parallel>, #tpu.dimension_semantics<parallel>], iteration_bounds = array<i64: 2, 2>, scalar_prefetch = 0 : i64, scratch_operands = 0 : i64, tpu.core_type = #tpu.core_type<tc>, window_params = [{transform_indices = @transform_0, window_bounds = array<i64: 1, 8, 128>}, {transform_indices = @transform_1, window_bounds = array<i64: 1, 8, 128>}, {transform_indices = @transform_2, window_bounds = array<i64: 1, 16, 128>}, {transform_indices = @transform_3, window_bounds = array<i64: 1, 16, 128>}, {transform_indices = @transform_4, window_bounds = array<i64: 1, 1, 16>}, {pipeline_mode = #tpu.pipeline_mode<synchronous>, transform_indices = @transform_5, window_bounds = array<i64: 128, 128>}, {pipeline_mode = #tpu.pipeline_mode<synchronous>, transform_indices = @transform_6, window_bounds = array<i64: 1, 128>}, {transform_indices = @transform_7, window_bounds = array<i64: 1, 8, 128>}]} {
    %c0 = arith.constant 0 : index
    %c0_0 = arith.constant 0 : index
    %c0_1 = arith.constant 0 : index
    %0 = vector.load %arg3[%c0, %c0_0, %c0_1] : memref<1x8x128xbf16, #tpu.memory_space<vmem>>, vector<1x8x128xbf16>
    %1 = vector.shape_cast %0 : vector<1x8x128xbf16> to vector<8x128xbf16>
    %c0_2 = arith.constant 0 : index
    %c0_3 = arith.constant 0 : index
    %c0_4 = arith.constant 0 : index
    %2 = vector.load %arg4[%c0_2, %c0_3, %c0_4] : memref<1x16x128xbf16, #tpu.memory_space<vmem>>, vector<1x16x128xbf16>
    %3 = vector.shape_cast %2 : vector<1x16x128xbf16> to vector<16x128xbf16>
    %c0_5 = arith.constant 0 : index
    %c0_6 = arith.constant 0 : index
    %c0_7 = arith.constant 0 : index
    %4 = vector.load %arg5[%c0_5, %c0_6, %c0_7] : memref<1x16x128xbf16, #tpu.memory_space<vmem>>, vector<1x16x128xbf16>
    %5 = vector.shape_cast %4 : vector<1x16x128xbf16> to vector<16x128xbf16>
    %c0_8 = arith.constant 0 : index
    %c0_9 = arith.constant 0 : index
    %c0_10 = arith.constant 0 : index
    %6 = vector.load %arg6[%c0_8, %c0_9, %c0_10] : memref<1x1x16xi32, #tpu.memory_space<vmem>>, vector<1x1x16xi32>
    %7 = vector.shape_cast %6 : vector<1x1x16xi32> to vector<1x16xi32>
    %c0_i32 = arith.constant 0 : i32
    %8 = vector.broadcast %c0_i32 : i32 to vector<1x16xi32>
    %9 = arith.cmpi ne, %7, %8 : vector<1x16xi32>
    %cst = arith.constant 0.000000e+00 : f32
    %cst_11 = arith.constant -1.000000e+09 : f32
    %10 = vector.broadcast %cst : f32 to vector<1x16xf32>
    %11 = vector.broadcast %cst_11 : f32 to vector<1x16xf32>
    %12 = arith.select %9, %10, %11 : vector<1x16xi1>, vector<1x16xf32>
    %13 = vector.extract_strided_slice %1 {offsets = [0, 0], sizes = [8, 32], strides = [1, 1]} : vector<8x128xbf16> to vector<8x32xbf16>
    %14 = vector.extract_strided_slice %3 {offsets = [0, 0], sizes = [16, 32], strides = [1, 1]} : vector<16x128xbf16> to vector<16x32xbf16>
    %15 = vector.extract_strided_slice %5 {offsets = [0, 0], sizes = [16, 32], strides = [1, 1]} : vector<16x128xbf16> to vector<16x32xbf16>
    %cst_12 = arith.constant dense<0.000000e+00> : vector<8x16xf32>
    %16 = tpu.matmul %13, %14, %cst_12 {dimension_numbers = #tpu.dot_dimension_numbers<[1], [1], [0], [0], [0, 0, 1, 0], [], []>} : vector<8x32xbf16>, vector<16x32xbf16>, vector<8x16xf32> -> vector<8x16xf32>
    %cst_13 = arith.constant 0.176776692 : f32
    %17 = vector.broadcast %cst_13 : f32 to vector<8x16xf32>
    %18 = arith.mulf %16, %17 : vector<8x16xf32>
    %19 = vector.broadcast %12 : vector<1x16xf32> to vector<8x16xf32>
    %20 = arith.addf %18, %19 : vector<8x16xf32>
    %cst_14 = arith.constant dense<0xFF800000> : vector<8xf32>
    %21 = vector.multi_reduction <maximumf>, %20, %cst_14 [1] : vector<8x16xf32> to vector<8xf32>
    %22 = vector.shape_cast %21 : vector<8xf32> to vector<8x1xf32>
    %23 = vector.broadcast %22 : vector<8x1xf32> to vector<8x16xf32>
    %24 = arith.subf %20, %23 : vector<8x16xf32>
    %25 = math.exp %24 : vector<8x16xf32>
    %cst_15 = arith.constant dense<0.000000e+00> : vector<8xf32>
    %26 = vector.multi_reduction <add>, %25, %cst_15 [1] : vector<8x16xf32> to vector<8xf32>
    %27 = vector.shape_cast %26 : vector<8xf32> to vector<8x1xf32>
    %28 = arith.truncf %25 : vector<8x16xf32> to vector<8x16xbf16>
    %cst_16 = arith.constant dense<0.000000e+00> : vector<8x32xf32>
    %29 = tpu.matmul %28, %15, %cst_16 {dimension_numbers = #tpu.dot_dimension_numbers<[1], [0], [0], [1], [0, 0, 1, 1], [], []>} : vector<8x16xbf16>, vector<16x32xbf16>, vector<8x32xf32> -> vector<8x32xf32>
    %30 = tpu.reciprocal %27 : vector<8x1xf32> -> vector<8x1xf32>
    %31 = vector.broadcast %30 : vector<8x1xf32> to vector<8x32xf32>
    %32 = arith.mulf %29, %31 : vector<8x32xf32>
    %33 = vector.extract_strided_slice %1 {offsets = [0, 32], sizes = [8, 32], strides = [1, 1]} : vector<8x128xbf16> to vector<8x32xbf16>
    %34 = vector.extract_strided_slice %3 {offsets = [0, 32], sizes = [16, 32], strides = [1, 1]} : vector<16x128xbf16> to vector<16x32xbf16>
    %35 = vector.extract_strided_slice %5 {offsets = [0, 32], sizes = [16, 32], strides = [1, 1]} : vector<16x128xbf16> to vector<16x32xbf16>
    %cst_17 = arith.constant dense<0.000000e+00> : vector<8x16xf32>
    %36 = tpu.matmul %33, %34, %cst_17 {dimension_numbers = #tpu.dot_dimension_numbers<[1], [1], [0], [0], [0, 0, 1, 0], [], []>} : vector<8x32xbf16>, vector<16x32xbf16>, vector<8x16xf32> -> vector<8x16xf32>
    %cst_18 = arith.constant 0.176776692 : f32
    %37 = vector.broadcast %cst_18 : f32 to vector<8x16xf32>
    %38 = arith.mulf %36, %37 : vector<8x16xf32>
    %39 = vector.broadcast %12 : vector<1x16xf32> to vector<8x16xf32>
    %40 = arith.addf %38, %39 : vector<8x16xf32>
    %cst_19 = arith.constant dense<0xFF800000> : vector<8xf32>
    %41 = vector.multi_reduction <maximumf>, %40, %cst_19 [1] : vector<8x16xf32> to vector<8xf32>
    %42 = vector.shape_cast %41 : vector<8xf32> to vector<8x1xf32>
    %43 = vector.broadcast %42 : vector<8x1xf32> to vector<8x16xf32>
    %44 = arith.subf %40, %43 : vector<8x16xf32>
    %45 = math.exp %44 : vector<8x16xf32>
    %cst_20 = arith.constant dense<0.000000e+00> : vector<8xf32>
    %46 = vector.multi_reduction <add>, %45, %cst_20 [1] : vector<8x16xf32> to vector<8xf32>
    %47 = vector.shape_cast %46 : vector<8xf32> to vector<8x1xf32>
    %48 = arith.truncf %45 : vector<8x16xf32> to vector<8x16xbf16>
    %cst_21 = arith.constant dense<0.000000e+00> : vector<8x32xf32>
    %49 = tpu.matmul %48, %35, %cst_21 {dimension_numbers = #tpu.dot_dimension_numbers<[1], [0], [0], [1], [0, 0, 1, 1], [], []>} : vector<8x16xbf16>, vector<16x32xbf16>, vector<8x32xf32> -> vector<8x32xf32>
    %50 = tpu.reciprocal %47 : vector<8x1xf32> -> vector<8x1xf32>
    %51 = vector.broadcast %50 : vector<8x1xf32> to vector<8x32xf32>
    %52 = arith.mulf %49, %51 : vector<8x32xf32>
    %53 = vector.extract_strided_slice %1 {offsets = [0, 64], sizes = [8, 32], strides = [1, 1]} : vector<8x128xbf16> to vector<8x32xbf16>
    %54 = vector.extract_strided_slice %3 {offsets = [0, 64], sizes = [16, 32], strides = [1, 1]} : vector<16x128xbf16> to vector<16x32xbf16>
    %55 = vector.extract_strided_slice %5 {offsets = [0, 64], sizes = [16, 32], strides = [1, 1]} : vector<16x128xbf16> to vector<16x32xbf16>
    %cst_22 = arith.constant dense<0.000000e+00> : vector<8x16xf32>
    %56 = tpu.matmul %53, %54, %cst_22 {dimension_numbers = #tpu.dot_dimension_numbers<[1], [1], [0], [0], [0, 0, 1, 0], [], []>} : vector<8x32xbf16>, vector<16x32xbf16>, vector<8x16xf32> -> vector<8x16xf32>
    %cst_23 = arith.constant 0.176776692 : f32
    %57 = vector.broadcast %cst_23 : f32 to vector<8x16xf32>
    %58 = arith.mulf %56, %57 : vector<8x16xf32>
    %59 = vector.broadcast %12 : vector<1x16xf32> to vector<8x16xf32>
    %60 = arith.addf %58, %59 : vector<8x16xf32>
    %cst_24 = arith.constant dense<0xFF800000> : vector<8xf32>
    %61 = vector.multi_reduction <maximumf>, %60, %cst_24 [1] : vector<8x16xf32> to vector<8xf32>
    %62 = vector.shape_cast %61 : vector<8xf32> to vector<8x1xf32>
    %63 = vector.broadcast %62 : vector<8x1xf32> to vector<8x16xf32>
    %64 = arith.subf %60, %63 : vector<8x16xf32>
    %65 = math.exp %64 : vector<8x16xf32>
    %cst_25 = arith.constant dense<0.000000e+00> : vector<8xf32>
    %66 = vector.multi_reduction <add>, %65, %cst_25 [1] : vector<8x16xf32> to vector<8xf32>
    %67 = vector.shape_cast %66 : vector<8xf32> to vector<8x1xf32>
    %68 = arith.truncf %65 : vector<8x16xf32> to vector<8x16xbf16>
    %cst_26 = arith.constant dense<0.000000e+00> : vector<8x32xf32>
    %69 = tpu.matmul %68, %55, %cst_26 {dimension_numbers = #tpu.dot_dimension_numbers<[1], [0], [0], [1], [0, 0, 1, 1], [], []>} : vector<8x16xbf16>, vector<16x32xbf16>, vector<8x32xf32> -> vector<8x32xf32>
    %70 = tpu.reciprocal %67 : vector<8x1xf32> -> vector<8x1xf32>
    %71 = vector.broadcast %70 : vector<8x1xf32> to vector<8x32xf32>
    %72 = arith.mulf %69, %71 : vector<8x32xf32>
    %73 = vector.extract_strided_slice %1 {offsets = [0, 96], sizes = [8, 32], strides = [1, 1]} : vector<8x128xbf16> to vector<8x32xbf16>
    %74 = vector.extract_strided_slice %3 {offsets = [0, 96], sizes = [16, 32], strides = [1, 1]} : vector<16x128xbf16> to vector<16x32xbf16>
    %75 = vector.extract_strided_slice %5 {offsets = [0, 96], sizes = [16, 32], strides = [1, 1]} : vector<16x128xbf16> to vector<16x32xbf16>
    %cst_27 = arith.constant dense<0.000000e+00> : vector<8x16xf32>
    %76 = tpu.matmul %73, %74, %cst_27 {dimension_numbers = #tpu.dot_dimension_numbers<[1], [1], [0], [0], [0, 0, 1, 0], [], []>} : vector<8x32xbf16>, vector<16x32xbf16>, vector<8x16xf32> -> vector<8x16xf32>
    %cst_28 = arith.constant 0.176776692 : f32
    %77 = vector.broadcast %cst_28 : f32 to vector<8x16xf32>
    %78 = arith.mulf %76, %77 : vector<8x16xf32>
    %79 = vector.broadcast %12 : vector<1x16xf32> to vector<8x16xf32>
    %80 = arith.addf %78, %79 : vector<8x16xf32>
    %cst_29 = arith.constant dense<0xFF800000> : vector<8xf32>
    %81 = vector.multi_reduction <maximumf>, %80, %cst_29 [1] : vector<8x16xf32> to vector<8xf32>
    %82 = vector.shape_cast %81 : vector<8xf32> to vector<8x1xf32>
    %83 = vector.broadcast %82 : vector<8x1xf32> to vector<8x16xf32>
    %84 = arith.subf %80, %83 : vector<8x16xf32>
    %85 = math.exp %84 : vector<8x16xf32>
    %cst_30 = arith.constant dense<0.000000e+00> : vector<8xf32>
    %86 = vector.multi_reduction <add>, %85, %cst_30 [1] : vector<8x16xf32> to vector<8xf32>
    %87 = vector.shape_cast %86 : vector<8xf32> to vector<8x1xf32>
    %88 = arith.truncf %85 : vector<8x16xf32> to vector<8x16xbf16>
    %cst_31 = arith.constant dense<0.000000e+00> : vector<8x32xf32>
    %89 = tpu.matmul %88, %75, %cst_31 {dimension_numbers = #tpu.dot_dimension_numbers<[1], [0], [0], [1], [0, 0, 1, 1], [], []>} : vector<8x16xbf16>, vector<16x32xbf16>, vector<8x32xf32> -> vector<8x32xf32>
    %90 = tpu.reciprocal %87 : vector<8x1xf32> -> vector<8x1xf32>
    %91 = vector.broadcast %90 : vector<8x1xf32> to vector<8x32xf32>
    %92 = arith.mulf %89, %91 : vector<8x32xf32>
    %93 = tpu.concatenate %32, %52, %72, %92 in 1 : vector<8x32xf32>, vector<8x32xf32>, vector<8x32xf32>, vector<8x32xf32> -> vector<8x128xf32>
    %94 = arith.truncf %93 : vector<8x128xf32> to vector<8x128xbf16>
    %c0_32 = arith.constant 0 : index
    %c0_33 = arith.constant 0 : index
    %95 = vector.load %arg7[%c0_32, %c0_33] : memref<128x128xbf16, #tpu.memory_space<vmem>>, vector<128x128xbf16>
    %cst_34 = arith.constant dense<0.000000e+00> : vector<8x128xf32>
    %96 = tpu.matmul %94, %95, %cst_34 {dimension_numbers = #tpu.dot_dimension_numbers<[1], [0], [0], [1], [0, 0, 1, 1], [], []>} : vector<8x128xbf16>, vector<128x128xbf16>, vector<8x128xf32> -> vector<8x128xf32>
    %c0_35 = arith.constant 0 : index
    %c0_36 = arith.constant 0 : index
    %97 = vector.load %arg8[%c0_35, %c0_36] : memref<1x128xf32, #tpu.memory_space<vmem>>, vector<1x128xf32>
    %98 = vector.broadcast %97 : vector<1x128xf32> to vector<8x128xf32>
    %99 = arith.addf %96, %98 : vector<8x128xf32>
    %c0_37 = arith.constant 0 : index
    %c0_38 = arith.constant 0 : index
    %c0_39 = arith.constant 0 : index
    %100 = vector.load %arg2[%c0_37, %c0_38, %c0_39] : memref<1x8x128xf32, #tpu.memory_space<vmem>>, vector<1x8x128xf32>
    %101 = vector.shape_cast %100 : vector<1x8x128xf32> to vector<8x128xf32>
    %102 = arith.addf %101, %99 : vector<8x128xf32>
    %c0_40 = arith.constant 0 : index
    %c0_41 = arith.constant 0 : index
    %c0_42 = arith.constant 0 : index
    %103 = vector.load %arg9[%c0_40, %c0_41, %c0_42] : memref<1x8x128xf32, #tpu.memory_space<vmem>>, vector<1x8x128xf32>
    %104 = vector.shape_cast %103 : vector<1x8x128xf32> to vector<8x128xf32>
    %105 = vector.shape_cast %102 : vector<8x128xf32> to vector<1x8x128xf32>
    tpu.vector_store %arg9[%c0_40, %c0_41, %c0_42], %105 {strides = array<i32>} : memref<1x8x128xf32, #tpu.memory_space<vmem>>, vector<1x8x128xf32>,
    return
  }
  func.func @transform_0(%arg0: i32, %arg1: i32) -> (i32, i32, i32) {
    %c0_i32 = arith.constant 0 : i32
    %c0_i32_0 = arith.constant 0 : i32
    return %arg0, %arg1, %c0_i32 : i32, i32, i32
  }
  func.func @transform_1(%arg0: i32, %arg1: i32) -> (i32, i32, i32) {
    %c0_i32 = arith.constant 0 : i32
    %c0_i32_0 = arith.constant 0 : i32
    return %arg0, %arg1, %c0_i32 : i32, i32, i32
  }
  func.func @transform_2(%arg0: i32, %arg1: i32) -> (i32, i32, i32) {
    %c0_i32 = arith.constant 0 : i32
    %c0_i32_0 = arith.constant 0 : i32
    %c0_i32_1 = arith.constant 0 : i32
    return %arg0, %c0_i32, %c0_i32_0 : i32, i32, i32
  }
  func.func @transform_3(%arg0: i32, %arg1: i32) -> (i32, i32, i32) {
    %c0_i32 = arith.constant 0 : i32
    %c1_i32 = arith.constant 1 : i32
    %c0_i32_0 = arith.constant 0 : i32
    return %arg0, %c0_i32, %c1_i32 : i32, i32, i32
  }
  func.func @transform_4(%arg0: i32, %arg1: i32) -> (i32, i32, i32) {
    %c0_i32 = arith.constant 0 : i32
    %c0_i32_0 = arith.constant 0 : i32
    %c0_i32_1 = arith.constant 0 : i32
    return %arg0, %c0_i32, %c0_i32_0 : i32, i32, i32
  }
  func.func @transform_5(%arg0: i32, %arg1: i32) -> (i32, i32) {
    %c0_i32 = arith.constant 0 : i32
    %c0_i32_0 = arith.constant 0 : i32
    %c0_i32_1 = arith.constant 0 : i32
    return %c0_i32, %c0_i32_0 : i32, i32
  }
  func.func @transform_6(%arg0: i32, %arg1: i32) -> (i32, i32) {
    %c0_i32 = arith.constant 0 : i32
    %c0_i32_0 = arith.constant 0 : i32
    %c0_i32_1 = arith.constant 0 : i32
    return %c0_i32, %c0_i32_0 : i32, i32
  }
  func.func @transform_7(%arg0: i32, %arg1: i32) -> (i32, i32, i32) {
    %c0_i32 = arith.constant 0 : i32
    %c0_i32_0 = arith.constant 0 : i32
    return %arg0, %arg1, %c0_i32 : i32, i32, i32
  }
}

module attributes {stable_mosaic.version = 11 : i64} {
  func.func @_ffn_kernel(%arg0: i32, %arg1: i32, %arg2: memref<8x128xf32, #tpu.memory_space<vmem>>, %arg3: memref<1x128xf32, #tpu.memory_space<vmem>>, %arg4: memref<1x128xf32, #tpu.memory_space<vmem>>, %arg5: memref<128x128xbf16, #tpu.memory_space<vmem>>, %arg6: memref<1x128xf32, #tpu.memory_space<vmem>>, %arg7: memref<128x128xbf16, #tpu.memory_space<vmem>>, %arg8: memref<1x128xf32, #tpu.memory_space<vmem>>, %arg9: memref<8x128xf32, #tpu.memory_space<vmem>>, %arg10: memref<8x128xbf16, #tpu.memory_space<vmem>>, %arg11: memref<8x128xf32, #tpu.memory_space<vmem>>) attributes {dimension_semantics = [#tpu.dimension_semantics<parallel>, #tpu.dimension_semantics<arbitrary>], iteration_bounds = array<i64: 4, 2>, scalar_prefetch = 0 : i64, scratch_operands = 2 : i64, tpu.core_type = #tpu.core_type<tc>, window_params = [{transform_indices = @transform_0, window_bounds = array<i64: 8, 128>}, {pipeline_mode = #tpu.pipeline_mode<synchronous>, transform_indices = @transform_1, window_bounds = array<i64: 1, 128>}, {pipeline_mode = #tpu.pipeline_mode<synchronous>, transform_indices = @transform_2, window_bounds = array<i64: 1, 128>}, {transform_indices = @transform_3, window_bounds = array<i64: 128, 128>}, {transform_indices = @transform_4, window_bounds = array<i64: 1, 128>}, {transform_indices = @transform_5, window_bounds = array<i64: 128, 128>}, {pipeline_mode = #tpu.pipeline_mode<synchronous>, transform_indices = @transform_6, window_bounds = array<i64: 1, 128>}, {transform_indices = @transform_7, window_bounds = array<i64: 8, 128>}]} {
    %c0_i32 = arith.constant 0 : i32
    %0 = arith.cmpi eq, %arg1, %c0_i32 : i32
    %1 = arith.extui %0 : i1 to i32
    %c0_i32_0 = arith.constant 0 : i32
    %2 = arith.cmpi ne, %1, %c0_i32_0 : i32
    scf.if %2 {
      %c0_15 = arith.constant 0 : index
      %c0_16 = arith.constant 0 : index
      %20 = vector.load %arg2[%c0_15, %c0_16] : memref<8x128xf32, #tpu.memory_space<vmem>>, vector<8x128xf32>
      %c0_17 = arith.constant 0 : index
      %c0_18 = arith.constant 0 : index
      %21 = vector.load %arg3[%c0_17, %c0_18] : memref<1x128xf32, #tpu.memory_space<vmem>>, vector<1x128xf32>
      %c0_19 = arith.constant 0 : index
      %c0_20 = arith.constant 0 : index
      %22 = vector.load %arg4[%c0_19, %c0_20] : memref<1x128xf32, #tpu.memory_space<vmem>>, vector<1x128xf32>
      %cst_21 = arith.constant dense<0.000000e+00> : vector<8xf32>
      %23 = vector.multi_reduction <add>, %20, %cst_21 [1] : vector<8x128xf32> to vector<8xf32>
      %24 = vector.shape_cast %23 : vector<8xf32> to vector<8x1xf32>
      %cst_22 = arith.constant 1.280000e+02 : f32
      %25 = vector.broadcast %cst_22 : f32 to vector<8x1xf32>
      %26 = arith.divf %24, %25 : vector<8x1xf32>
      %27 = vector.broadcast %26 : vector<8x1xf32> to vector<8x128xf32>
      %28 = arith.subf %20, %27 : vector<8x128xf32>
      %29 = arith.mulf %28, %28 : vector<8x128xf32>
      %cst_23 = arith.constant dense<0.000000e+00> : vector<8xf32>
      %30 = vector.multi_reduction <add>, %29, %cst_23 [1] : vector<8x128xf32> to vector<8xf32>
      %31 = vector.shape_cast %30 : vector<8xf32> to vector<8x1xf32>
      %cst_24 = arith.constant 1.270000e+02 : f32
      %32 = vector.broadcast %cst_24 : f32 to vector<8x1xf32>
      %33 = arith.divf %31, %32 : vector<8x1xf32>
      %34 = vector.broadcast %21 : vector<1x128xf32> to vector<8x128xf32>
      %35 = arith.mulf %34, %28 : vector<8x128xf32>
      %36 = math.sqrt %33 : vector<8x1xf32>
      %cst_25 = arith.constant 9.99999997E-7 : f32
      %37 = vector.broadcast %cst_25 : f32 to vector<8x1xf32>
      %38 = arith.addf %36, %37 : vector<8x1xf32>
      %39 = vector.broadcast %38 : vector<8x1xf32> to vector<8x128xf32>
      %40 = arith.divf %35, %39 : vector<8x128xf32>
      %41 = vector.broadcast %22 : vector<1x128xf32> to vector<8x128xf32>
      %42 = arith.addf %40, %41 : vector<8x128xf32>
      %43 = arith.truncf %42 : vector<8x128xf32> to vector<8x128xbf16>
      %c0_26 = arith.constant 0 : index
      %c0_27 = arith.constant 0 : index
      %44 = vector.load %arg10[%c0_26, %c0_27] : memref<8x128xbf16, #tpu.memory_space<vmem>>, vector<8x128xbf16>
      tpu.vector_store %arg10[%c0_26, %c0_27], %43 {strides = array<i32>} : memref<8x128xbf16, #tpu.memory_space<vmem>>, vector<8x128xbf16>,
      %cst_28 = arith.constant 0.000000e+00 : f32
      %45 = vector.broadcast %cst_28 : f32 to vector<8x128xf32>
      %c0_29 = arith.constant 0 : index
      %c0_30 = arith.constant 0 : index
      %46 = vector.load %arg11[%c0_29, %c0_30] : memref<8x128xf32, #tpu.memory_space<vmem>>, vector<8x128xf32>
      tpu.vector_store %arg11[%c0_29, %c0_30], %45 {strides = array<i32>} : memref<8x128xf32, #tpu.memory_space<vmem>>, vector<8x128xf32>,
    } else {
    }
    %c0 = arith.constant 0 : index
    %c0_1 = arith.constant 0 : index
    %3 = vector.load %arg10[%c0, %c0_1] : memref<8x128xbf16, #tpu.memory_space<vmem>>, vector<8x128xbf16>
    %c0_2 = arith.constant 0 : index
    %c0_3 = arith.constant 0 : index
    %4 = vector.load %arg5[%c0_2, %c0_3] : memref<128x128xbf16, #tpu.memory_space<vmem>>, vector<128x128xbf16>
    %cst = arith.constant dense<0.000000e+00> : vector<8x128xf32>
    %5 = tpu.matmul %3, %4, %cst {dimension_numbers = #tpu.dot_dimension_numbers<[1], [0], [0], [1], [0, 0, 1, 1], [], []>} : vector<8x128xbf16>, vector<128x128xbf16>, vector<8x128xf32> -> vector<8x128xf32>
    %c0_4 = arith.constant 0 : index
    %c0_5 = arith.constant 0 : index
    %6 = vector.load %arg6[%c0_4, %c0_5] : memref<1x128xf32, #tpu.memory_space<vmem>>, vector<1x128xf32>
    %7 = vector.broadcast %6 : vector<1x128xf32> to vector<8x128xf32>
    %8 = arith.addf %5, %7 : vector<8x128xf32>
    %cst_6 = arith.constant 0.000000e+00 : f32
    %9 = vector.broadcast %cst_6 : f32 to vector<8x128xf32>
    %10 = arith.maximumf %8, %9 : vector<8x128xf32>
    %c0_7 = arith.constant 0 : index
    %c0_8 = arith.constant 0 : index
    %11 = vector.load %arg11[%c0_7, %c0_8] : memref<8x128xf32, #tpu.memory_space<vmem>>, vector<8x128xf32>
    %12 = arith.truncf %10 : vector<8x128xf32> to vector<8x128xbf16>
    %c0_9 = arith.constant 0 : index
    %c0_10 = arith.constant 0 : index
    %13 = vector.load %arg7[%c0_9, %c0_10] : memref<128x128xbf16, #tpu.memory_space<vmem>>, vector<128x128xbf16>
    %cst_11 = arith.constant dense<0.000000e+00> : vector<8x128xf32>
    %14 = tpu.matmul %12, %13, %cst_11 {dimension_numbers = #tpu.dot_dimension_numbers<[1], [0], [0], [1], [0, 0, 1, 1], [], []>} : vector<8x128xbf16>, vector<128x128xbf16>, vector<8x128xf32> -> vector<8x128xf32>
    %15 = arith.addf %11, %14 : vector<8x128xf32>
    %c0_12 = arith.constant 0 : index
    %c0_13 = arith.constant 0 : index
    %16 = vector.load %arg11[%c0_12, %c0_13] : memref<8x128xf32, #tpu.memory_space<vmem>>, vector<8x128xf32>
    tpu.vector_store %arg11[%c0_12, %c0_13], %15 {strides = array<i32>} : memref<8x128xf32, #tpu.memory_space<vmem>>, vector<8x128xf32>,
    %c1_i32 = arith.constant 1 : i32
    %17 = arith.cmpi eq, %arg1, %c1_i32 : i32
    %18 = arith.extui %17 : i1 to i32
    %c0_i32_14 = arith.constant 0 : i32
    %19 = arith.cmpi ne, %18, %c0_i32_14 : i32
    scf.if %19 {
      %c0_15 = arith.constant 0 : index
      %c0_16 = arith.constant 0 : index
      %20 = vector.load %arg2[%c0_15, %c0_16] : memref<8x128xf32, #tpu.memory_space<vmem>>, vector<8x128xf32>
      %c0_17 = arith.constant 0 : index
      %c0_18 = arith.constant 0 : index
      %21 = vector.load %arg11[%c0_17, %c0_18] : memref<8x128xf32, #tpu.memory_space<vmem>>, vector<8x128xf32>
      %22 = arith.addf %20, %21 : vector<8x128xf32>
      %c0_19 = arith.constant 0 : index
      %c0_20 = arith.constant 0 : index
      %23 = vector.load %arg8[%c0_19, %c0_20] : memref<1x128xf32, #tpu.memory_space<vmem>>, vector<1x128xf32>
      %24 = vector.broadcast %23 : vector<1x128xf32> to vector<8x128xf32>
      %25 = arith.addf %22, %24 : vector<8x128xf32>
      %c0_21 = arith.constant 0 : index
      %c0_22 = arith.constant 0 : index
      %26 = vector.load %arg9[%c0_21, %c0_22] : memref<8x128xf32, #tpu.memory_space<vmem>>, vector<8x128xf32>
      tpu.vector_store %arg9[%c0_21, %c0_22], %25 {strides = array<i32>} : memref<8x128xf32, #tpu.memory_space<vmem>>, vector<8x128xf32>,
    } else {
    }
    return
  }
  func.func @transform_0(%arg0: i32, %arg1: i32) -> (i32, i32) {
    %c0_i32 = arith.constant 0 : i32
    %c0_i32_0 = arith.constant 0 : i32
    return %arg0, %c0_i32 : i32, i32
  }
  func.func @transform_1(%arg0: i32, %arg1: i32) -> (i32, i32) {
    %c0_i32 = arith.constant 0 : i32
    %c0_i32_0 = arith.constant 0 : i32
    %c0_i32_1 = arith.constant 0 : i32
    return %c0_i32, %c0_i32_0 : i32, i32
  }
  func.func @transform_2(%arg0: i32, %arg1: i32) -> (i32, i32) {
    %c0_i32 = arith.constant 0 : i32
    %c0_i32_0 = arith.constant 0 : i32
    %c0_i32_1 = arith.constant 0 : i32
    return %c0_i32, %c0_i32_0 : i32, i32
  }
  func.func @transform_3(%arg0: i32, %arg1: i32) -> (i32, i32) {
    %c0_i32 = arith.constant 0 : i32
    %c0_i32_0 = arith.constant 0 : i32
    return %c0_i32, %arg1 : i32, i32
  }
  func.func @transform_4(%arg0: i32, %arg1: i32) -> (i32, i32) {
    %c0_i32 = arith.constant 0 : i32
    %c0_i32_0 = arith.constant 0 : i32
    return %c0_i32, %arg1 : i32, i32
  }
  func.func @transform_5(%arg0: i32, %arg1: i32) -> (i32, i32) {
    %c0_i32 = arith.constant 0 : i32
    %c0_i32_0 = arith.constant 0 : i32
    return %arg1, %c0_i32 : i32, i32
  }
  func.func @transform_6(%arg0: i32, %arg1: i32) -> (i32, i32) {
    %c0_i32 = arith.constant 0 : i32
    %c0_i32_0 = arith.constant 0 : i32
    %c0_i32_1 = arith.constant 0 : i32
    return %c0_i32, %c0_i32_0 : i32, i32
  }
  func.func @transform_7(%arg0: i32, %arg1: i32) -> (i32, i32) {
    %c0_i32 = arith.constant 0 : i32
    %c0_i32_0 = arith.constant 0 : i32
    return %arg0, %c0_i32 : i32, i32
  }
}

module attributes {stable_mosaic.version = 11 : i64} {
  func.func @_layernorm_kernel(%arg0: i32, %arg1: memref<8x128xf32, #tpu.memory_space<vmem>>, %arg2: memref<1x128xf32, #tpu.memory_space<vmem>>, %arg3: memref<1x128xf32, #tpu.memory_space<vmem>>, %arg4: memref<8x128xf32, #tpu.memory_space<vmem>>) attributes {dimension_semantics = [#tpu.dimension_semantics<parallel>], iteration_bounds = array<i64: 4>, scalar_prefetch = 0 : i64, scratch_operands = 0 : i64, tpu.core_type = #tpu.core_type<tc>, window_params = [{transform_indices = @transform_0, window_bounds = array<i64: 8, 128>}, {pipeline_mode = #tpu.pipeline_mode<synchronous>, transform_indices = @transform_1, window_bounds = array<i64: 1, 128>}, {pipeline_mode = #tpu.pipeline_mode<synchronous>, transform_indices = @transform_2, window_bounds = array<i64: 1, 128>}, {transform_indices = @transform_3, window_bounds = array<i64: 8, 128>}]} {
    %c0 = arith.constant 0 : index
    %c0_0 = arith.constant 0 : index
    %0 = vector.load %arg1[%c0, %c0_0] : memref<8x128xf32, #tpu.memory_space<vmem>>, vector<8x128xf32>
    %c0_1 = arith.constant 0 : index
    %c0_2 = arith.constant 0 : index
    %1 = vector.load %arg2[%c0_1, %c0_2] : memref<1x128xf32, #tpu.memory_space<vmem>>, vector<1x128xf32>
    %c0_3 = arith.constant 0 : index
    %c0_4 = arith.constant 0 : index
    %2 = vector.load %arg3[%c0_3, %c0_4] : memref<1x128xf32, #tpu.memory_space<vmem>>, vector<1x128xf32>
    %cst = arith.constant dense<0.000000e+00> : vector<8xf32>
    %3 = vector.multi_reduction <add>, %0, %cst [1] : vector<8x128xf32> to vector<8xf32>
    %4 = vector.shape_cast %3 : vector<8xf32> to vector<8x1xf32>
    %cst_5 = arith.constant 1.280000e+02 : f32
    %5 = vector.broadcast %cst_5 : f32 to vector<8x1xf32>
    %6 = arith.divf %4, %5 : vector<8x1xf32>
    %7 = vector.broadcast %6 : vector<8x1xf32> to vector<8x128xf32>
    %8 = arith.subf %0, %7 : vector<8x128xf32>
    %9 = arith.mulf %8, %8 : vector<8x128xf32>
    %cst_6 = arith.constant dense<0.000000e+00> : vector<8xf32>
    %10 = vector.multi_reduction <add>, %9, %cst_6 [1] : vector<8x128xf32> to vector<8xf32>
    %11 = vector.shape_cast %10 : vector<8xf32> to vector<8x1xf32>
    %cst_7 = arith.constant 1.270000e+02 : f32
    %12 = vector.broadcast %cst_7 : f32 to vector<8x1xf32>
    %13 = arith.divf %11, %12 : vector<8x1xf32>
    %14 = vector.broadcast %1 : vector<1x128xf32> to vector<8x128xf32>
    %15 = arith.mulf %14, %8 : vector<8x128xf32>
    %16 = math.sqrt %13 : vector<8x1xf32>
    %cst_8 = arith.constant 9.99999997E-7 : f32
    %17 = vector.broadcast %cst_8 : f32 to vector<8x1xf32>
    %18 = arith.addf %16, %17 : vector<8x1xf32>
    %19 = vector.broadcast %18 : vector<8x1xf32> to vector<8x128xf32>
    %20 = arith.divf %15, %19 : vector<8x128xf32>
    %21 = vector.broadcast %2 : vector<1x128xf32> to vector<8x128xf32>
    %22 = arith.addf %20, %21 : vector<8x128xf32>
    %c0_9 = arith.constant 0 : index
    %c0_10 = arith.constant 0 : index
    %23 = vector.load %arg4[%c0_9, %c0_10] : memref<8x128xf32, #tpu.memory_space<vmem>>, vector<8x128xf32>
    tpu.vector_store %arg4[%c0_9, %c0_10], %22 {strides = array<i32>} : memref<8x128xf32, #tpu.memory_space<vmem>>, vector<8x128xf32>,
    return
  }
  func.func @transform_0(%arg0: i32) -> (i32, i32) {
    %c0_i32 = arith.constant 0 : i32
    %c0_i32_0 = arith.constant 0 : i32
    return %arg0, %c0_i32 : i32, i32
  }
  func.func @transform_1(%arg0: i32) -> (i32, i32) {
    %c0_i32 = arith.constant 0 : i32
    %c0_i32_0 = arith.constant 0 : i32
    %c0_i32_1 = arith.constant 0 : i32
    return %c0_i32, %c0_i32_0 : i32, i32
  }
  func.func @transform_2(%arg0: i32) -> (i32, i32) {
    %c0_i32 = arith.constant 0 : i32
    %c0_i32_0 = arith.constant 0 : i32
    %c0_i32_1 = arith.constant 0 : i32
    return %c0_i32, %c0_i32_0 : i32, i32
  }
  func.func @transform_3(%arg0: i32) -> (i32, i32) {
    %c0_i32 = arith.constant 0 : i32
    %c0_i32_0 = arith.constant 0 : i32
    return %arg0, %c0_i32 : i32, i32
  }
}

</mosaic_0001>

<bundles_post_ra>
// kernel: tpu_custom_call.1
= control target key start
LH: loop header
LB: loop body
LE: loop exit
PB: predicated region body
PF: predicated region fallthrough
CT: control target
= control target key end

     0   :  { %7 = vsyncpa [#allocation3], 0  ;;  %s637_s0 = inlined_call_operand.hbm [shape: f32[16,128], index: 0, kind: input, shape index: {}]   ;;  %s638_s1 = inlined_call_operand.hbm [shape: f32[1,128], index: 1, kind: input, shape index: {}]   ;;  %s639_s2 = inlined_call_operand.hbm [shape: f32[16,128], index: 2, kind: output, shape index: {}]  }
   0x1   :  { %9 = vsyncpa [#allocation3 + $0x1], 0 }
   0x2   :  { %10 = vsyncpa [#allocation6], 0 }
   0x3   :  { %11 = vsyncpa [#allocation4], 0 }
   0x4   :  { %13 = vsyncpa [#allocation4 + $0x1], 0  ;;  %s499_s9 = smov 0   ;;  %s501_s10 = smov 0  }
   0x5   :  { %s503_s11 = smov 0   ;;  %s505_s12 = smov 0  }
   0x6 LB: > { %s520_s13 = sadd.s32 4294967295, %s481_s12   ;;  %s279_s14 = sadd.s32 4294967294, %s481_s12   ;;  %s481_s12 = sphi %s505_s12, %s649_s12   ;;  %s477_s11 = sphi %s503_s11, %s648_s11   ;;  %s473_s10 = sphi %s501_s10, %s647_s10   ;;  %s469_s9 = sphi %s499_s9, %s646_s9  }
   0x7   : > { %p39_p0 = scmp.ne.s32.totalorder %s473_s10, %s469_s9  ;;  %p40_p1 = scmp.eq.s32.totalorder %s520_s13, 0 }
   0x8   : > { %p84_p2 = scmp.eq.s32.totalorder %s520_s13, 1  ;;  %p90_p3 = scmp.eq.s32.totalorder %s279_s14, 1 }
   0x9   : > { %p529_p4 = por %p40_p1, %p39_p0  ;;  %p280_p5 = scmp.ge.s32.totalorder %s481_s12, 1 }
   0xa   : > { %p534_p6 = por %p90_p3, %p39_p0  ;;  %p97_p7 = scmp.lt.s32.totalorder %s481_s12, 3 }
   0xb   : > { %s109_s19 = sshll.u32 %s638_s1, 4  ;;  %s483_s21 = smov [#allocation5]   ;;  %s110_s19 = int_to_ptr.hbm [resolvable:$true] %s109_s19 }
   0xc   : > { %p542_p8 = pnand %p280_p5, %p97_p7  ;;  %s111_s22 = sshll.u32 %s483_s21, 4  ;;  %s112_s22 = int_to_ptr.vmem [resolvable:$true] %s111_s22 }
   0xd   : > { %s552_s23 = sadd.s32 1, %s481_s12   ;;  %s26_s24 = sadd.s32 1, %s477_s11 }
   0xe   : > { %p301_p10 = pneg %p542_p8  ;;  %s23_s25 = ssub.s32 %s481_s12, %s552_s23 }
   0xf   : > { %p24_p12 = scmp.eq.s32.totalorder %s23_s25, 0  ;;  %p33_p13 = scmp.ne.s32.totalorder %s477_s11, %s473_s10 }
  0x10   : > { %p302_p11 = pnand %p301_p10, %p40_p1  ;;  %p34_p0 = scmp.eq.s32.totalorder %s481_s12, 0 }
  0x11   : > { %s561_s26 = scalar_select %p24_p12, %s477_s11, %s26_s24  }
  0x12   : > { %304 = dma.hbm_to_vmem [thread:$0]  (!%p302_p11), %s110_s19, 16, %s112_s22, [#allocation6]  }
  0x13   : > { %p565_p3 = por %p84_p2, %p33_p13  ;;  %p314_p5 = scmp.lt.s32.totalorder %s481_s12, 2 }
  0x14   : > { %s122_s28 = sand.u32 1, %s477_s11   ;;  %s284_s29 = sshll.u32 %s481_s12, 3 }
  0x15   : > { %p35_p7 = por %p34_p0, %p33_p13  ;;  %s283_s30 = sshll.u32 %s122_s28, 3 }
  0x16   : > { %s130_s5 = scalar_lea.hbm %s637_s0, %s284_s29  ;;  %s126_s7 = scalar_lea.vmem [#allocation2], %s283_s30 }
  0x17   : > { %s132_s6 = sshll.u32 %s130_s5, 4  ;;  %s134_s8 = sshll.u32 %s126_s7, 4  ;;  %s133_s6 = int_to_ptr.hbm [resolvable:$true] %s132_s6  ;;  %s135_s8 = int_to_ptr.vmem [resolvable:$true] %s134_s8 }
  0x18   : > { %p575_p10 = pnand %p314_p5, %p35_p7  ;;  %s123_s17 = scalar_lea.sflag [#allocation3], %s122_s28 }
  0x19   : > { %s381_s18 = sshra.s32 %s133_s6, 4  ;;  %s388_s24 = scalar_lea.hbm %s637_s0, 16  ;;  %s382_s18 = int_to_ptr.hbm [resolvable:$true] %s381_s18 }
  0x1a   : > { %s383_s19 = scalar_lea.hbm %s382_s18, 8  ;;  %p385_p11 = pneg %p575_p10 }
  0x1b   : > { %p384_p2 = scmp.ne.s32.totalorder %s382_s18, %s383_s19  ;;  %p389_p0 = scmp.lt.s32.totalorder %s382_s18, %s637_s0 }
  0x1c   : > { %p390_p5 = scmp.lt.s32.totalorder %s388_s24, %s383_s19 }
  0x1d   : > { %p386_p12 = pnand %p385_p11, %p384_p2 }
  0x1e   : > { %p391_p7 = por %p390_p5, %p389_p0 }
  0x1f   : > { %p387_p13 = pneg %p386_p12 }
  0x21   : > { %p392_p9 = pnand %p391_p7, %p387_p13 }
  0x23   : > { %395 = shalt.err (!%p392_p9)
}
  0x24   : > { %308 = dma.hbm_to_vmem [thread:$0]  (!%p575_p10), %s133_s6, 128, %s135_s8, %s123_s17  }
  0x25   : > { %143 = sbr.rel (%p542_p8) target bundleno = 60 (0x3c), region = 28  ;;  %s592_s28 = sand.u32 (!%p542_p8), 1, %s473_s10  }
  0x26   : > { %s286_s30 = sshll.u32 (!%p542_p8), %s592_s28, 3  ;;  %s146_s3 = scalar_lea.sflag (!%p542_p8), [#allocation3], %s592_s28 }
  0x27   : > { %s149_s4 = scalar_lea.vmem (!%p542_p8), [#allocation2], %s286_s30 }
  0x2a   : > { %456 = dma.done.wait (%p529_p4), %s146_s3, 128  }
  0x2b   : > { %458 = vsyncadd (%p529_p4), %s146_s3, 4294967168 }
  0x2c   : > { %460 = dma.done.wait (%p40_p1), [#allocation6], 16  }
  0x2d   : > { %462 = vsyncadd (%p40_p1), [#allocation6], 4294967280  ;;  %s290_s20 = sshll.u32 %s520_s13, 3  ;;  %s175_s8 = scalar_lea.vmem [#allocation7], %s286_s30  ;;  %v176_v0 = vld [vmem:[%s149_s4] sm:$0xff] }
  0x2e   : > { %s194_s7 = scalar_lea.hbm %s639_s2, %s290_s20  ;;  %s196_s14 = sshll.u32 %s175_s8, 4  ;;  %v350_v1 = vld [vmem:[#allocation5] ss:$0 sm:$0xff]  ;;  %s197_s14 = int_to_ptr.vmem [resolvable:$true] %s196_s14 }
  0x2f   : > { %s198_s17 = sshll.u32 %s194_s7, 4  ;;  %v181_v2 = vadd.f32 %v350_v1, %v176_v0  ;;  %s184_s15 = scalar_lea.sflag [#allocation4], %s592_s28  ;;  %s199_s17 = int_to_ptr.hbm [resolvable:$true] %s198_s17 }
  0x30   : > { %s425_s18 = sshra.s32 %s199_s17, 4  ;;  %s431_s22 = scalar_lea.hbm %s639_s2, 16  ;;  %s426_s18 = int_to_ptr.hbm [resolvable:$true] %s425_s18 }
  0x31   : > { %182 = vst [vmem:[%s175_s8] sm:$0xff] %v181_v2  ;;  %s427_s19 = scalar_lea.hbm %s426_s18, 8  ;;  %p432_p9 = scmp.lt.s32.totalorder %s426_s18, %s639_s2 }
  0x32   : > { %p428_p1 = scmp.ne.s32.totalorder %s426_s18, %s427_s19  ;;  %p433_p10 = scmp.lt.s32.totalorder %s431_s22, %s427_s19 }
  0x34   : > { %p429_p4 = pnand %p428_p1, %p565_p3  ;;  %p434_p2 = por %p433_p10, %p432_p9 }
  0x36   : > { %p430_p8 = pneg %p429_p4 }
  0x38   : > { %p435_p11 = pnand %p434_p2, %p430_p8 }
  0x3a   : > { %438 = shalt.err (!%p435_p11)
}
  0x3b   : > { %299 = dma.vmem_to_hbm [thread:$0]  (%p565_p3), %s197_s14, 128, %s199_s17, %s184_s15  }
  0x3c PF: > { %s210_s29 = sand.u32 1, %s469_s9   ;;  %p645_p12 = scmp.ge.s32.totalorder %s481_s12, 2 }
  0x3d   : > { %s211_s28 = scalar_lea.sflag [#allocation4], %s210_s29 }
  0x3e   : > { %p310_p13 = pnand %p645_p12, %p534_p6 }
  0x40   : > { %p311_p0 = pneg %p310_p13 }
  0x42   : > { %464 = dma.done.wait (%p311_p0), %s211_s28, 128  }
  0x43   : > { %466 = vsyncadd (%p311_p0), %s211_s28, 4294967168  ;;  %p16_p5 = scmp.ge.s32.totalorder %s552_s23, 4   ;;  %s646_s9 = smov %s473_s10 }
  0x44   : > { %s647_s10 = smov %s477_s11  ;;  %s648_s11 = smov %s561_s26 }
  0x45   : > { %s649_s12 = smov %s552_s23  ;;  %18 = sbr.rel (!%p16_p5) target bundleno = 6 (0x6), region = 77 }
  0x4a   :  { %217 = vsyncpa [#allocation3], 1 }
  0x4b   :  { %219 = vsyncpa [#allocation3 + $0x1], 1 }
  0x4c   :  { %220 = vsyncpa [#allocation6], 1 }
  0x4d   :  { %221 = vsyncpa [#allocation4], 1 }
  0x4e   :  { %223 = vsyncpa [#allocation4 + $0x1], 1 }

// kernel: decoder_forward.15
= control target key start
LH: loop header
LB: loop body
LE: loop exit
PB: predicated region body
PF: predicated region fallthrough
CT: control target
= control target key end

     0   :  { %10 = vsyncpa [#allocation3], 0  ;;  %s609_s18 = smov 0   ;;  %s642_s0 = inlined_call_operand.vmem [shape: f32[32,128], index: 0, kind: input, shape index: {}]   ;;  %s643_s1 = inlined_call_operand.vmem [shape: f32[1,128], index: 1, kind: input, shape index: {}]   ;;  %s644_s2 = inlined_call_operand.vmem [shape: f32[1,128], index: 2, kind: input, shape index: {}]   ;;  %s645_s3 = inlined_call_operand.hbm [shape: bf16[128,128], index: 3, kind: input, shape index: {}]   ;;  %s646_s4 = inlined_call_operand.vmem [shape: f32[1,128], index: 4, kind: input, shape index: {}]   ;;  %s647_s5 = inlined_call_operand.vmem [shape: bf16[32,128], index: 5, kind: output, shape index: {}]  }
   0x1 LB: > { %s174_s21 = sshll.u32 %s645_s3, 4  ;;  %s447_s22 = sadd.s32 4294967295, %s572_s18   ;;  %s572_s18 = sphi %s609_s18, %s16_s18   ;;  %s175_s21 = int_to_ptr.hbm [resolvable:$true] %s174_s21 }
   0x2   : > { %p449_p0 = scmp.ge.s32.totalorder %s572_s18, 1  ;;  %p157_p1 = scmp.lt.s32.totalorder %s572_s18, 5 }
   0x3   : > { %p506_p2 = scmp.eq.s32.totalorder %s447_s22, 0  ;;  %s574_s23 = smov [#allocation2]  }
   0x4   : > { %p158_p3 = pnand %p449_p0, %p157_p1  ;;  %s176_s24 = sshll.u32 %s574_s23, 4  ;;  %s177_s24 = int_to_ptr.vmem [resolvable:$true] %s176_s24 }
   0x5   : > { %s575_s25 = smov 64   ;;  %s576_s26 = smov 4  }
   0x6   : > { %p502_p4 = pneg %p158_p3  ;;  %202 = sbr.rel (%p158_p3) target bundleno = 438 (0x1b6), region = 40 }
   0x8   : > { %p503_p5 = pnand %p506_p2, %p502_p4 }
   0xa   : > { %505 = dma.hbm_to_vmem [thread:$0]  (!%p503_p5), %s175_s21, 1024, %s177_s24, [#allocation3], %s575_s25, %s575_s25, %s576_s26  }
   0xb   : > { %567 = dma.done.wait (%p506_p2), [#allocation3], 1024  }
   0xc   : > { %569 = vsyncadd (%p506_p2), [#allocation3], 4294966272  ;;  %p229_p6 = scmp.lt.s32.totalorder %s447_s22, 3  ;;  %v577_v1 = vmov 128.0   ;;  %v578_v12 = vmov 127.0   ;;  %v497_v15 = vld [vmem:[#allocation2 + $0x38] sm:$0xff] }
   0xd   : > { %524 = vrcp.f32 %v577_v1  ;;  %367 = vmatpush.bf16.msra.mxu0 %v497_v15  ;;  %v496_v17 = vld [vmem:[#allocation2 + $0x30] sm:$0xff]  ;;  %v495_v19 = vld [vmem:[#allocation2 + $0x28] sm:$0xff]  ;;  %v494_v21 = vld [vmem:[#allocation2 + $0x20] sm:$0xff] }
   0xe   : > { %s649_s22 = smov (!%p229_p6, %s447_s22), 3  ;;  %526 = vrcp.f32 %v578_v12  ;;  %v493_v23 = vld [vmem:[#allocation2 + $0x18] sm:$0xff]  ;;  %v492_v26 = vld [vmem:[#allocation2 + $0x10] sm:$0xff]  ;;  %v491_v27 = vld [vmem:[#allocation2 + $0x8] sm:$0xff] }
   0xf   : > { %s454_s27 = sshll.u32 %s649_s22, 3  ;;  %v490_v30 = vld [vmem:[#allocation2] sm:$0xff]  ;;  %s455_s12 = sshll.u32 %s649_s22, 2 }
  0x10   : > { %s232_s30 = scalar_lea.vmem %s642_s0, %s454_s27  ;;  %v521_v44 = vld [vmem:[%s643_s1] ss:$0 sm:$0xff]  ;;  %s236_s15 = scalar_lea.vmem %s647_s5, %s455_s12 }
  0x11   : > { %v237_v0 = vld [vmem:[%s232_s30] sm:$0xff]  ;;  %368 = vmatpush.bf16.msra.mxu0 %v496_v17 }
  0x12   : > { %240 = vadd.xlane.f32.xlu0 %v237_v0  ;;  %v522_v51 = vld [vmem:[%s644_s2] ss:$0 sm:$0xff] }
  0x13   : > { %v525_v2 = vpop.eup %524  ;;  %v523_v56 = vld [vmem:[%s646_s4] ss:$0 sm:$0xff] }
  0x14   : > { %v243_v3 = vmul.f32 128.0, %v525_v2  ;;  %vm247_vm0 = vweird.f32 %v525_v2  ;;  %v527_v13 = vpop.eup %526 }
  0x15   : > { %v255_v14 = vmul.f32 127.0, %v527_v13  ;;  %369 = vmatpush.bf16.msra.mxu0 %v495_v19  ;;  %vm259_vm1 = vweird.f32 %v527_v13 }
  0x16   : > { %v244_v4 = vsub.f32 1.0, %v243_v3 }
  0x17   : > { %v256_v16 = vsub.f32 1.0, %v255_v14 }
  0x18   : > { %v245_v5 = vmul.f32 %v525_v2, %v244_v4 }
  0x19   : > { %v257_v18 = vmul.f32 %v527_v13, %v256_v16  ;;  %370 = vmatpush.bf16.msra.mxu0 %v494_v21 }
  0x1a   : > { %v246_v6 = vadd.f32 %v525_v2, %v245_v5 }
  0x1b   : > { %v258_v20 = vadd.f32 %v527_v13, %v257_v18 }
  0x1c   : > { %v248_v7 = vsel %vm247_vm0, %v525_v2, %v246_v6 }
  0x1d   : > { %v260_v22 = vsel %vm259_vm1, %v527_v13, %v258_v20  ;;  %371 = vmatpush.bf16.msra.mxu0 %v493_v23 }
  0x21   : > { %372 = vmatpush.bf16.msra.mxu0 %v492_v26 }
  0x25   : > { %373 = vmatpush.bf16.msra.mxu0 %v491_v27 }
  0x29   : > { %374 = vmatpush.bf16.msra.mxu0 %v490_v30 }
  0x85   : > { %v241_v8 = vpop.xlane.xlu0 %240 }
  0x86   : > { %v249_v9 = vmul.f32 %v248_v7, %v241_v8 }
  0x88   : > { %v250_v10 = vsub.f32 %v237_v0, %v249_v9 }
  0x8a   : > { %v251_v11 = vmul.f32 %v250_v10, %v250_v10  ;;  %v265_v49 = vmul.f32 %v521_v44, %v250_v10 }
  0x8c   : > { %252 = vadd.xlane.f32.xlu0 %v251_v11 }
  0xff   : > { %v253_v24 = vpop.xlane.xlu0 %252 }
 0x100   : > { %v261_v25 = vmul.f32 %v260_v22, %v253_v24 }
 0x102   : > { %528 = vrsqrt.f32 %v261_v25  ;;  %vm273_vm2 = vcmp.eq.f32.partialorder %v261_v25, inf  ;;  %v276_v36 = vand.u32 2147483648, %v261_v25  ;;  %vm275_vm3 = vcmp.eq.f32.partialorder %v261_v25, 0.0 }
 0x108   : > { %v529_v28 = vpop.eup %528 }
 0x109   : > { %v267_v29 = vmul.f32 %v529_v28, %v261_v25 }
 0x10b   : > { %v268_v31 = vmul.f32 %v529_v28, %v267_v29 }
 0x10d   : > { %v269_v32 = vmul.f32 0.5, %v268_v31 }
 0x10f   : > { %v270_v33 = vsub.f32 1.5, %v269_v32 }
 0x111   : > { %v271_v34 = vmul.f32 %v529_v28, %v270_v33 }
 0x113   : > { %v272_v35 = vmul.f32 %v271_v34, %v261_v25 }
 0x115   : > { %v274_v37 = vsel %vm273_vm2, %v261_v25, %v272_v35 }
 0x116   : > { %v277_v38 = vsel %vm275_vm3, %v276_v36, %v274_v37 }
 0x117   : > { %v278_v39 = vadd.f32 1e-06, %v277_v38 }
 0x119   : > { %530 = vrcp.f32 %v278_v39  ;;  %v290_v43 = vand.u32 2147483648, %v278_v39  ;;  %v288_v46 = vand.u32 2147483647, %v278_v39  ;;  %vm284_vm5 = vweird.f32 %v278_v39 }
 0x11b   : > { %v291_v48 = vor.u32 1.1754944e-38, %v290_v43  ;;  %vm289_vm7 = vcmp.eq.f32.partialorder %v288_v46, 8.507059e+37 }
 0x11f   : > { %v531_v40 = vpop.eup %530 }
 0x120   : > { %v280_v41 = vmul.f32 %v531_v40, %v278_v39  ;;  %vm285_vm4 = vweird.f32 %v531_v40 }
 0x121   : > { %vm286_vm6 = vmor %vm284_vm5, %vm285_vm4 }
 0x122   : > { %v281_v42 = vsub.f32 1.0, %v280_v41 }
 0x124   : > { %v282_v45 = vmul.f32 %v531_v40, %v281_v42 }
 0x126   : > { %v283_v47 = vadd.f32 %v531_v40, %v282_v45 }
 0x128   : > { %v287_v50 = vsel %vm286_vm6, %v531_v40, %v283_v47 }
 0x129   : > { %v292_v52 = vsel %vm289_vm7, %v291_v48, %v287_v50 }
 0x12a   : > { %v293_v53 = vmul.f32 %v292_v52, %v265_v49 }
 0x12c   : > { %v297_v54 = vadd.f32 %v522_v51, %v293_v53 }
 0x12e   : > { %v298_v55 = vpack.c.bf16 %v297_v54, %v297_v54 }
 0x130   : > { %375 = vmatmul.bf16.vlgmr.msra.gmra.mxu0 %v298_v55 }
 0x1ad   : > { %v376_v57 = vpop.f32.mrf.mxu0 }
 0x1ae   : > { %v377_v58 = vadd.f32 %v523_v56, %v376_v57 }
 0x1b0   : > { %v380_v59 = vpack.c.bf16 %v377_v58, %v377_v58 }
 0x1b2   : > { %381 = vst [vmem:[%s236_s15] sm:$0xf] %v380_v59 }
 0x1b5   : > { %v378_v60 = vpop.f32.mrf.mxu0 }
 0x1b6 PF: > { %s16_s18 = sadd.s32 1, %s572_s18  }
 0x1b7   : > { %p13_p7 = scmp.ge.s32.totalorder %s16_s18, 6  }
 0x1b9   :  { %15 = sbr.rel (!%p13_p7) target bundleno = 1 (0x1), region = 75 }
 0x1be   :  { %401 = vsyncpa [#allocation3], 1 }
 0x1bf   :  { %403 = vsyncpa [#allocation3 + $0x1], 1 }

// kernel: decoder_forward.13
= control target key start
LH: loop header
LB: loop body
LE: loop exit
PB: predicated region body
PF: predicated region fallthrough
CT: control target
= control target key end

     0   :  { %10 = vsyncpa [#allocation3], 0  ;;  %s821_s18 = smov 0   ;;  %s859_s0 = inlined_call_operand.vmem [shape: f32[32,128], index: 0, kind: input, shape index: {}]   ;;  %s860_s1 = inlined_call_operand.vmem [shape: f32[1,128], index: 1, kind: input, shape index: {}]   ;;  %s861_s2 = inlined_call_operand.vmem [shape: f32[1,128], index: 2, kind: input, shape index: {}]   ;;  %s862_s3 = inlined_call_operand.hbm [shape: bf16[128,384], index: 3, kind: input, shape index: {}]   ;;  %s863_s4 = inlined_call_operand.vmem [shape: f32[1,384], index: 4, kind: input, shape index: {}]   ;;  %s864_s5 = inlined_call_operand.vmem [shape: bf16[32,384], index: 5, kind: output, shape index: {}]  }
   0x1 LB: > { %s174_s21 = sshll.u32 %s862_s3, 4  ;;  %s579_s22 = sadd.s32 4294967295, %s784_s18   ;;  %s784_s18 = sphi %s821_s18, %s16_s18   ;;  %s175_s21 = int_to_ptr.hbm [resolvable:$true] %s174_s21 }
   0x2   : > { %p581_p0 = scmp.ge.s32.totalorder %s784_s18, 1  ;;  %p157_p1 = scmp.lt.s32.totalorder %s784_s18, 5 }
   0x3   : > { %p719_p2 = scmp.eq.s32.totalorder %s579_s22, 0  ;;  %s786_s23 = smov [#allocation2]  }
   0x4   : > { %p158_p3 = pnand %p581_p0, %p157_p1  ;;  %s176_s24 = sshll.u32 %s786_s23, 4  ;;  %s177_s24 = int_to_ptr.vmem [resolvable:$true] %s176_s24 }
   0x5   : > { %s787_s25 = smov 192   ;;  %s788_s26 = smov 12  }
   0x6   : > { %p715_p4 = pneg %p158_p3  ;;  %202 = sbr.rel (%p158_p3) target bundleno = 445 (0x1bd), region = 40 }
   0x8   : > { %p716_p5 = pnand %p719_p2, %p715_p4 }
   0xa   : > { %718 = dma.hbm_to_vmem [thread:$0]  (!%p716_p5), %s175_s21, 3072, %s177_s24, [#allocation3], %s787_s25, %s787_s25, %s788_s26  }
   0xb   : > { %779 = dma.done.wait (%p719_p2), [#allocation3], 3072  }
   0xc   : > { %781 = vsyncadd (%p719_p2), [#allocation3], 4294964224  ;;  %p230_p6 = scmp.lt.s32.totalorder %s579_s22, 3  ;;  %v789_v1 = vmov 128.0   ;;  %v790_v12 = vmov 127.0  }
   0xd   : > { %736 = vrcp.f32 %v789_v1  ;;  %v674_v15 = vld [vmem:[#allocation2 + $0xa8] sm:$0xf]  ;;  %v708_v16 = vld [vmem:[#allocation2 + $0xb0] sm:$0xf0]  ;;  %v707_v17 = vld [vmem:[#allocation2 + $0xac] sm:$0xf] }
   0xe   : > { %s866_s22 = smov (!%p230_p6, %s579_s22), 3  ;;  %738 = vrcp.f32 %v790_v12  ;;  %v675_v18 = vor.u32 %v708_v16, %v674_v15  ;;  %v676_v19 = vld [vmem:[#allocation2 + $0xb4] sm:$0xf0]  ;;  %v682_v20 = vld [vmem:[#allocation2 + $0xb0] sm:$0xf] }
   0xf   : > { %s586_s27 = sshll.u32 %s866_s22, 3  ;;  %v709_v21 = vld [vmem:[#allocation2 + $0xb8] sm:$0xf0]  ;;  %v679_v22 = vor.u32 %v707_v17, %v676_v19  ;;  %v662_v25 = vld [vmem:[#allocation2 + $0x90] sm:$0xf]  ;;  %s710_s12 = smul.u32 12, %s866_s22 }
  0x10   : > { %s233_s30 = scalar_lea.vmem %s859_s0, %s586_s27  ;;  %v683_v23 = vor.u32 %v709_v21, %v682_v20  ;;  %469 = vmatpush.bf16.msra.mxu0 %v675_v18  ;;  %v705_v26 = vld [vmem:[#allocation2 + $0x98] sm:$0xf0]  ;;  %v704_v27 = vld [vmem:[#allocation2 + $0x94] sm:$0xf]  ;;  %v664_v29 = vld [vmem:[#allocation2 + $0x9c] sm:$0xf0] }
  0x11   : > { %v239_v0 = vld [vmem:[%s233_s30] sm:$0xff]  ;;  %482 = vmatpush.bf16.msra.mxu1 %v679_v22  ;;  %v663_v28 = vor.u32 %v705_v26, %v662_v25  ;;  %v670_v30 = vld [vmem:[#allocation2 + $0x98] sm:$0xf]  ;;  %v667_v32 = vor.u32 %v704_v27, %v664_v29  ;;  %v701_v37 = vld [vmem:[#allocation2 + $0x7c] sm:$0xf]  ;;  %s238_s15 = scalar_lea.vmem %s864_s5, %s710_s12 }
  0x12   : > { %242 = vadd.xlane.f32.xlu0 %v239_v0  ;;  %495 = vmatpush.bf16.msra.mxu2 %v683_v23  ;;  %v706_v31 = vld [vmem:[#allocation2 + $0xa0] sm:$0xf0]  ;;  %v650_v35 = vld [vmem:[#allocation2 + $0x78] sm:$0xf]  ;;  %v652_v39 = vld [vmem:[#allocation2 + $0x84] sm:$0xf0] }
  0x13   : > { %v737_v2 = vpop.eup %736  ;;  %v671_v33 = vor.u32 %v706_v31, %v670_v30  ;;  %v702_v36 = vld [vmem:[#allocation2 + $0x80] sm:$0xf0]  ;;  %v658_v40 = vld [vmem:[#allocation2 + $0x80] sm:$0xf]  ;;  %v703_v41 = vld [vmem:[#allocation2 + $0x88] sm:$0xf0]  ;;  %v655_v42 = vor.u32 %v701_v37, %v652_v39 }
  0x14   : > { %v245_v3 = vmul.f32 128.0, %v737_v2  ;;  %vm249_vm0 = vweird.f32 %v737_v2  ;;  %v739_v13 = vpop.eup %738  ;;  %470 = vmatpush.bf16.msra.mxu0 %v663_v28  ;;  %v651_v38 = vor.u32 %v702_v36, %v650_v35  ;;  %v659_v43 = vor.u32 %v703_v41, %v658_v40  ;;  %v638_v44 = vld [vmem:[#allocation2 + $0x60] sm:$0xf]  ;;  %v699_v45 = vld [vmem:[#allocation2 + $0x68] sm:$0xf0] }
  0x15   : > { %v257_v14 = vmul.f32 127.0, %v739_v13  ;;  %483 = vmatpush.bf16.msra.mxu1 %v667_v32  ;;  %v698_v46 = vld [vmem:[#allocation2 + $0x64] sm:$0xf]  ;;  %v640_v47 = vld [vmem:[#allocation2 + $0x6c] sm:$0xf0]  ;;  %v639_v51 = vor.u32 %v699_v45, %v638_v44  ;;  %vm261_vm1 = vweird.f32 %v739_v13 }
  0x16   : > { %v246_v4 = vsub.f32 1.0, %v245_v3  ;;  %496 = vmatpush.bf16.msra.mxu2 %v671_v33  ;;  %v646_v48 = vld [vmem:[#allocation2 + $0x68] sm:$0xf]  ;;  %v700_v49 = vld [vmem:[#allocation2 + $0x70] sm:$0xf0]  ;;  %v643_v52 = vor.u32 %v698_v46, %v640_v47 }
  0x17   : > { %v258_v24 = vsub.f32 1.0, %v257_v14  ;;  %v647_v53 = vor.u32 %v700_v49, %v646_v48  ;;  %v626_v54 = vld [vmem:[#allocation2 + $0x48] sm:$0xf]  ;;  %v696_v55 = vld [vmem:[#allocation2 + $0x50] sm:$0xf0] }
  0x18   : > { %v247_v5 = vmul.f32 %v737_v2, %v246_v4  ;;  %471 = vmatpush.bf16.msra.mxu0 %v651_v38  ;;  %v695_v56 = vld [vmem:[#allocation2 + $0x4c] sm:$0xf]  ;;  %v628_v57 = vld [vmem:[#allocation2 + $0x54] sm:$0xf0]  ;;  %v634_v58 = vld [vmem:[#allocation2 + $0x50] sm:$0xf]  ;;  %v627_v61 = vor.u32 %v696_v55, %v626_v54 }
  0x19   : > { %v259_v34 = vmul.f32 %v739_v13, %v258_v24  ;;  %484 = vmatpush.bf16.msra.mxu1 %v655_v42  ;;  %v697_v59 = vld [vmem:[#allocation2 + $0x58] sm:$0xf0]  ;;  %v631_v62 = vor.u32 %v695_v56, %v628_v57  ;;  %v616_v4 = vld [vmem:[#allocation2 + $0x3c] sm:$0xf0]  ;;  %v602_v12 = vld [vmem:[#allocation2 + $0x18] sm:$0xf] }
  0x1a   : > { %v248_v6 = vadd.f32 %v737_v2, %v247_v5  ;;  %497 = vmatpush.bf16.msra.mxu2 %v659_v43  ;;  %v635_v63 = vor.u32 %v697_v59, %v634_v58  ;;  %v693_v1 = vld [vmem:[#allocation2 + $0x38] sm:$0xf0]  ;;  %v622_v5 = vld [vmem:[#allocation2 + $0x38] sm:$0xf]  ;;  %v604_v15 = vld [vmem:[#allocation2 + $0x24] sm:$0xf0] }
  0x1b   : > { %v260_v50 = vadd.f32 %v739_v13, %v259_v34  ;;  %v689_v14 = vld [vmem:[#allocation2 + $0x1c] sm:$0xf]  ;;  %v610_v16 = vld [vmem:[#allocation2 + $0x20] sm:$0xf]  ;;  %v691_v17 = vld [vmem:[#allocation2 + $0x28] sm:$0xf0] }
  0x1c   : > { %v250_v7 = vsel %vm249_vm0, %v737_v2, %v248_v6  ;;  %472 = vmatpush.bf16.msra.mxu0 %v639_v51  ;;  %v692_v2 = vld [vmem:[#allocation2 + $0x34] sm:$0xf]  ;;  %v694_v6 = vld [vmem:[#allocation2 + $0x40] sm:$0xf0]  ;;  %v607_v19 = vor.u32 %v689_v14, %v604_v15  ;;  %v611_v20 = vor.u32 %v691_v17, %v610_v16  ;;  %v590_v21 = vld [vmem:[#allocation2] sm:$0xf] }
  0x1d   : > { %v262_v60 = vsel %vm261_vm1, %v739_v13, %v260_v50  ;;  %485 = vmatpush.bf16.msra.mxu1 %v643_v52  ;;  %v690_v13 = vld [vmem:[#allocation2 + $0x20] sm:$0xf0]  ;;  %v687_v22 = vld [vmem:[#allocation2 + $0x8] sm:$0xf0]  ;;  %v592_v24 = vld [vmem:[#allocation2 + $0xc] sm:$0xf0] }
  0x1e   : > { %498 = vmatpush.bf16.msra.mxu2 %v647_v53  ;;  %v603_v18 = vor.u32 %v690_v13, %v602_v12  ;;  %v686_v23 = vld [vmem:[#allocation2 + $0x4] sm:$0xf]  ;;  %v598_v25 = vld [vmem:[#allocation2 + $0x8] sm:$0xf]  ;;  %v688_v26 = vld [vmem:[#allocation2 + $0x10] sm:$0xf0]  ;;  %v591_v29 = vor.u32 %v687_v22, %v590_v21 }
  0x1f   : > { %v595_v30 = vor.u32 %v686_v23, %v592_v24  ;;  %v599_v31 = vor.u32 %v688_v26, %v598_v25  ;;  %v734_v45 = vld [vmem:[%s860_s1] ss:$0 sm:$0xff] }
  0x20   : > { %473 = vmatpush.bf16.msra.mxu0 %v627_v61  ;;  %v735_v52 = vld [vmem:[%s861_s2] ss:$0 sm:$0xff] }
  0x21   : > { %486 = vmatpush.bf16.msra.mxu1 %v631_v62  ;;  %v333_v57 = vld [vmem:[%s863_s4] sm:$0x7] }
  0x22   : > { %499 = vmatpush.bf16.msra.mxu2 %v635_v63  ;;  %v335_v58 = vperm.slane %v333_v57, 0  ;;  %v336_v59 = vperm.slane %v333_v57, 1 }
  0x85   : > { %v243_v8 = vpop.xlane.xlu0 %242 }
  0x86   : > { %v251_v9 = vmul.f32 %v250_v7, %v243_v8 }
  0x88   : > { %v838_v10 = vsub.f32 %v239_v0, %v251_v9  ;;  %v614_v0 = vld [vmem:[#allocation2 + $0x30] sm:$0xf]  ;;  %v619_v9 = vor.u32 %v692_v2, %v616_v4 }
  0x89   : > { %v615_v8 = vor.u32 %v693_v1, %v614_v0  ;;  %v337_v0 = vperm.slane %v333_v57, 2 }
  0x8a   : > { %v253_v11 = vmul.f32 %v838_v10, %v838_v10  ;;  %487 = vmatpush.bf16.msra.mxu1 %v619_v9  ;;  %v267_v50 = vmul.f32 %v734_v45, %v838_v10 }
  0x8b   : > { %474 = vmatpush.bf16.msra.mxu0 %v615_v8 }
  0x8c   : > { %254 = vadd.xlane.f32.xlu0 %v253_v11  ;;  %v623_v11 = vor.u32 %v694_v6, %v622_v5 }
  0x8e   : > { %500 = vmatpush.bf16.msra.mxu2 %v623_v11  ;;  %488 = vmatpush.bf16.msra.mxu1 %v607_v19 }
  0x8f   : > { %475 = vmatpush.bf16.msra.mxu0 %v603_v18 }
  0x92   : > { %501 = vmatpush.bf16.msra.mxu2 %v611_v20  ;;  %489 = vmatpush.bf16.msra.mxu1 %v595_v30 }
  0x93   : > { %476 = vmatpush.bf16.msra.mxu0 %v591_v29 }
  0x96   : > { %502 = vmatpush.bf16.msra.mxu2 %v599_v31 }
  0xff   : > { %v255_v3 = vpop.xlane.xlu0 %254 }
 0x100   : > { %v263_v7 = vmul.f32 %v262_v60, %v255_v3 }
 0x102   : > { %740 = vrsqrt.f32 %v263_v7  ;;  %vm275_vm2 = vcmp.eq.f32.partialorder %v263_v7, inf  ;;  %v278_v37 = vand.u32 2147483648, %v263_v7  ;;  %vm277_vm3 = vcmp.eq.f32.partialorder %v263_v7, 0.0 }
 0x108   : > { %v741_v27 = vpop.eup %740 }
 0x109   : > { %v269_v28 = vmul.f32 %v741_v27, %v263_v7 }
 0x10b   : > { %v270_v32 = vmul.f32 %v741_v27, %v269_v28 }
 0x10d   : > { %v271_v33 = vmul.f32 0.5, %v270_v32 }
 0x10f   : > { %v272_v34 = vsub.f32 1.5, %v271_v33 }
 0x111   : > { %v273_v35 = vmul.f32 %v741_v27, %v272_v34 }
 0x113   : > { %v274_v36 = vmul.f32 %v273_v35, %v263_v7 }
 0x115   : > { %v276_v38 = vsel %vm275_vm2, %v263_v7, %v274_v36 }
 0x116   : > { %v279_v39 = vsel %vm277_vm3, %v278_v37, %v276_v38 }
 0x117   : > { %v280_v40 = vadd.f32 1e-06, %v279_v39 }
 0x119   : > { %742 = vrcp.f32 %v280_v40  ;;  %v292_v44 = vand.u32 2147483648, %v280_v40  ;;  %v290_v47 = vand.u32 2147483647, %v280_v40  ;;  %vm286_vm5 = vweird.f32 %v280_v40 }
 0x11b   : > { %v293_v49 = vor.u32 1.1754944e-38, %v292_v44  ;;  %vm291_vm7 = vcmp.eq.f32.partialorder %v290_v47, 8.507059e+37 }
 0x11f   : > { %v743_v41 = vpop.eup %742 }
 0x120   : > { %v282_v42 = vmul.f32 %v743_v41, %v280_v40  ;;  %vm287_vm4 = vweird.f32 %v743_v41 }
 0x121   : > { %vm288_vm6 = vmor %vm286_vm5, %vm287_vm4 }
 0x122   : > { %v283_v43 = vsub.f32 1.0, %v282_v42 }
 0x124   : > { %v284_v46 = vmul.f32 %v743_v41, %v283_v43 }
 0x126   : > { %v285_v48 = vadd.f32 %v743_v41, %v284_v46 }
 0x128   : > { %v289_v51 = vsel %vm288_vm6, %v743_v41, %v285_v48 }
 0x129   : > { %v294_v53 = vsel %vm291_vm7, %v293_v49, %v289_v51 }
 0x12a   : > { %v295_v54 = vmul.f32 %v294_v53, %v267_v50 }
 0x12c   : > { %v299_v55 = vadd.f32 %v735_v52, %v295_v54 }
 0x12e   : > { %v300_v56 = vpack.c.bf16 %v299_v55, %v299_v55 }
 0x130   : > { %477 = vmatmul.bf16.vlgmr.msra.gmra.mxu0 %v300_v56  ;;  %490 = vmatmul.bf16.vlgmr.msra.gmra.mxu1 %v300_v56 }
 0x131   : > { %503 = vmatmul.bf16.vlgmr.msra.gmra.mxu2 %v300_v56 }
 0x1ad   : > { %v478_v10 = vpop.f32.mrf.mxu0  ;;  %v491_v60 = vpop.f32.mrf.mxu1 }
 0x1ae   : > { %v479_v61 = vadd.f32 %v478_v10, %v335_v58  ;;  %v492_v62 = vadd.f32 %v491_v60, %v336_v59 }
 0x1b0   : > { %v508_v63 = vpack.c.bf16 %v492_v62, %v479_v61 }
 0x1b2   : > { %510 = vst [vmem:[%s238_s15] sm:$0xff] %v508_v63 }
 0x1b4   : > { %v504_v1 = vpop.f32.mrf.mxu2 }
 0x1b5   : > { %v505_v2 = vadd.f32 %v504_v1, %v337_v0  ;;  %v480_v3 = vpop.f32.mrf.mxu0  ;;  %v493_v4 = vpop.f32.mrf.mxu1 }
 0x1b7   : > { %v509_v5 = vpack.c.bf16 %v505_v2, %v505_v2 }
 0x1b9   : > { %511 = vst [vmem:[%s238_s15 + $0x8] sm:$0xf] %v509_v5 }
 0x1bc   : > { %v506_v6 = vpop.f32.mrf.mxu2 }
 0x1bd PF: > { %s16_s18 = sadd.s32 1, %s784_s18  }
 0x1be   : > { %p13_p7 = scmp.ge.s32.totalorder %s16_s18, 6  }
 0x1c0   :  { %15 = sbr.rel (!%p13_p7) target bundleno = 1 (0x1), region = 75 }
 0x1c5   :  { %533 = vsyncpa [#allocation3], 1 }
 0x1c6   :  { %535 = vsyncpa [#allocation3 + $0x1], 1 }

// kernel: decoder_forward.16
= control target key start
LH: loop header
LB: loop body
LE: loop exit
PB: predicated region body
PF: predicated region fallthrough
CT: control target
= control target key end

     0   :  { %8 = vsyncpa [#allocation3], 0  ;;  %s796_s0 = inlined_call_operand.hbm [shape: f32[32,128], index: 0, kind: input, shape index: {}]   ;;  %s797_s1 = inlined_call_operand.hbm [shape: bf16[128,256], index: 1, kind: input, shape index: {}]   ;;  %s798_s2 = inlined_call_operand.vmem [shape: f32[1,256], index: 2, kind: input, shape index: {}]   ;;  %s799_s3 = inlined_call_operand.vmem [shape: bf16[32,256], index: 3, kind: output, shape index: {}]  }
   0x1   :  { %10 = vsyncpa [#allocation3 + $0x1], 0 }
   0x2   :  { %11 = vsyncpa [#allocation5], 0  ;;  %s685_s12 = smov 0   ;;  %s687_s13 = smov 0  }
   0x3   :  { %s689_s14 = smov 0   ;;  %s691_s15 = smov 0  }
   0x4 LB: > { %s127_s18 = sshll.u32 %s797_s1, 4  ;;  %s707_s19 = sadd.s32 4294967295, %s660_s15   ;;  %s660_s15 = sphi %s691_s15, %s806_s15   ;;  %s656_s14 = sphi %s689_s14, %s805_s14   ;;  %s652_s13 = sphi %s687_s13, %s804_s13   ;;  %s648_s12 = sphi %s685_s12, %s803_s12   ;;  %s128_s18 = int_to_ptr.hbm [resolvable:$true] %s127_s18 }
   0x5   : > { %p417_p0 = scmp.ge.s32.totalorder %s660_s15, 1  ;;  %p38_p1 = scmp.eq.s32.totalorder %s707_s19, 0 }
   0x6   : > { %p116_p2 = scmp.lt.s32.totalorder %s660_s15, 5  ;;  %s662_s21 = smov [#allocation4]  }
   0x7   : > { %s129_s22 = sshll.u32 %s662_s21, 4  ;;  %s663_s23 = smov 128   ;;  %s130_s22 = int_to_ptr.vmem [resolvable:$true] %s129_s22 }
   0x8   : > { %p712_p3 = pnand %p417_p0, %p116_p2  ;;  %s664_s24 = smov 8  }
   0x9   : > { %s721_s25 = sadd.s32 1, %s660_s15   ;;  %s24_s27 = sadd.s32 1, %s656_s14 }
   0xa   : > { %p516_p4 = pneg %p712_p3  ;;  %s21_s26 = ssub.s32 %s660_s15, %s721_s25 }
   0xb   : > { %p22_p6 = scmp.eq.s32.totalorder %s21_s26, 0  ;;  %p31_p7 = scmp.ne.s32.totalorder %s656_s14, %s652_s13 }
   0xc   : > { %p517_p5 = pnand %p516_p4, %p38_p1  ;;  %p32_p8 = scmp.eq.s32.totalorder %s660_s15, 0 }
   0xd   : > { %p37_p9 = scmp.ne.s32.totalorder %s652_s13, %s648_s12  ;;  %p525_p12 = scmp.lt.s32.totalorder %s660_s15, 4 }
   0xe   : > { %519 = dma.hbm_to_vmem [thread:$0]  (!%p517_p5), %s128_s18, 2048, %s130_s22, [#allocation5], %s663_s23, %s663_s23, %s664_s24  }
   0xf   : > { %s731_s28 = scalar_select %p22_p6, %s656_s14, %s24_s27  }
  0x10   : > { %p33_p10 = por %p32_p8, %p31_p7  ;;  %p735_p11 = por %p38_p1, %p37_p9 }
  0x11   : > { %s146_s30 = sand.u32 1, %s656_s14   ;;  %s421_s5 = sshll.u32 %s660_s15, 3 }
  0x12   : > { %s420_s4 = sshll.u32 %s146_s30, 3  ;;  %s154_s8 = scalar_lea.hbm %s796_s0, %s421_s5 }
  0x13   : > { %s150_s9 = scalar_lea.vmem [#allocation2], %s420_s4  ;;  %s156_s11 = sshll.u32 %s154_s8, 4  ;;  %s157_s11 = int_to_ptr.hbm [resolvable:$true] %s156_s11 }
  0x14   : > { %s158_s10 = sshll.u32 %s150_s9, 4  ;;  %p745_p13 = pnand %p525_p12, %p33_p10  ;;  %s159_s10 = int_to_ptr.vmem [resolvable:$true] %s158_s10 }
  0x15   : > { %s147_s16 = scalar_lea.sflag [#allocation3], %s146_s30  ;;  %s592_s17 = sshra.s32 %s157_s11, 4  ;;  %s593_s17 = int_to_ptr.hbm [resolvable:$true] %s592_s17 }
  0x16   : > { %s594_s18 = scalar_lea.hbm %s593_s17, 8  ;;  %p596_p2 = pneg %p745_p13 }
  0x17   : > { %p595_p0 = scmp.ne.s32.totalorder %s593_s17, %s594_s18  ;;  %s599_s22 = scalar_lea.hbm %s796_s0, 32 }
  0x18   : > { %p600_p6 = scmp.lt.s32.totalorder %s593_s17, %s796_s0  ;;  %p601_p7 = scmp.lt.s32.totalorder %s599_s22, %s594_s18 }
  0x19   : > { %p597_p4 = pnand %p596_p2, %p595_p0 }
  0x1a   : > { %p602_p8 = por %p601_p7, %p600_p6 }
  0x1b   : > { %p598_p5 = pneg %p597_p4 }
  0x1d   : > { %p603_p9 = pnand %p602_p8, %p598_p5 }
  0x1f   : > { %606 = shalt.err (!%p603_p9)
}
  0x20   : > { %523 = dma.hbm_to_vmem [thread:$0]  (!%p745_p13), %s157_s11, 128, %s159_s10, %s147_s16  }
  0x21   : > { %167 = sbr.rel (%p712_p3) target bundleno = 210 (0xd2), region = 32  ;;  %s169_s26 = sand.u32 (!%p712_p3), 1, %s652_s13  }
  0x22   : > { %s762_s27 = sshll.u32 (!%p712_p3), %s169_s26, 3  ;;  %s170_s30 = scalar_lea.sflag (!%p712_p3), [#allocation3], %s169_s26 }
  0x23   : > { %s173_s4 = scalar_lea.vmem (!%p712_p3), [#allocation2], %s762_s27 }
  0x26   : > { %639 = dma.done.wait (%p735_p11), %s170_s30, 128  }
  0x27   : > { %641 = vsyncadd (%p735_p11), %s170_s30, 4294967168 }
  0x28   : > { %643 = dma.done.wait (%p38_p1), [#allocation5], 2048  }
  0x29   : > { %645 = vsyncadd (%p38_p1), [#allocation5], 4294965248  ;;  %v485_v0 = vld [vmem:[#allocation4 + $0x70] sm:$0xf]  ;;  %v509_v1 = vld [vmem:[#allocation4 + $0x74] sm:$0xf0] }
  0x2a   : > { %v508_v2 = vld [vmem:[#allocation4 + $0x74] sm:$0xf]  ;;  %v486_v3 = vor.u32 %v509_v1, %v485_v0  ;;  %v487_v4 = vld [vmem:[#allocation4 + $0x78] sm:$0xf0]  ;;  %v477_v5 = vld [vmem:[#allocation4 + $0x60] sm:$0xf] }
  0x2b   : > { %v507_v6 = vld [vmem:[#allocation4 + $0x64] sm:$0xf0]  ;;  %v490_v7 = vor.u32 %v508_v2, %v487_v4  ;;  %v506_v8 = vld [vmem:[#allocation4 + $0x64] sm:$0xf]  ;;  %v479_v9 = vld [vmem:[#allocation4 + $0x68] sm:$0xf0] }
  0x2c   : > { %311 = vmatpush.bf16.msra.mxu0 %v486_v3  ;;  %v478_v10 = vor.u32 %v507_v6, %v477_v5  ;;  %v482_v11 = vor.u32 %v506_v8, %v479_v9  ;;  %v469_v12 = vld [vmem:[#allocation4 + $0x50] sm:$0xf]  ;;  %v505_v13 = vld [vmem:[#allocation4 + $0x54] sm:$0xf0]  ;;  %v504_v14 = vld [vmem:[#allocation4 + $0x54] sm:$0xf] }
  0x2d   : > { %324 = vmatpush.bf16.msra.mxu1 %v490_v7  ;;  %v471_v15 = vld [vmem:[#allocation4 + $0x58] sm:$0xf0]  ;;  %v470_v16 = vor.u32 %v505_v13, %v469_v12  ;;  %v461_v18 = vld [vmem:[#allocation4 + $0x40] sm:$0xf]  ;;  %v503_v19 = vld [vmem:[#allocation4 + $0x44] sm:$0xf0] }
  0x2e   : > { %v474_v17 = vor.u32 %v504_v14, %v471_v15  ;;  %v502_v20 = vld [vmem:[#allocation4 + $0x44] sm:$0xf]  ;;  %v463_v21 = vld [vmem:[#allocation4 + $0x48] sm:$0xf0]  ;;  %v462_v22 = vor.u32 %v503_v19, %v461_v18  ;;  %v453_v24 = vld [vmem:[#allocation4 + $0x30] sm:$0xf] }
  0x2f   : > { %v466_v23 = vor.u32 %v502_v20, %v463_v21  ;;  %v501_v25 = vld [vmem:[#allocation4 + $0x34] sm:$0xf0]  ;;  %v500_v26 = vld [vmem:[#allocation4 + $0x34] sm:$0xf]  ;;  %v455_v27 = vld [vmem:[#allocation4 + $0x38] sm:$0xf0] }
  0x30   : > { %312 = vmatpush.bf16.msra.mxu0 %v478_v10  ;;  %v454_v28 = vor.u32 %v501_v25, %v453_v24  ;;  %v458_v29 = vor.u32 %v500_v26, %v455_v27  ;;  %v445_v30 = vld [vmem:[#allocation4 + $0x20] sm:$0xf]  ;;  %v499_v31 = vld [vmem:[#allocation4 + $0x24] sm:$0xf0]  ;;  %v498_v32 = vld [vmem:[#allocation4 + $0x24] sm:$0xf] }
  0x31   : > { %325 = vmatpush.bf16.msra.mxu1 %v482_v11  ;;  %v447_v33 = vld [vmem:[#allocation4 + $0x28] sm:$0xf0]  ;;  %v446_v34 = vor.u32 %v499_v31, %v445_v30  ;;  %v437_v36 = vld [vmem:[#allocation4 + $0x10] sm:$0xf]  ;;  %v497_v37 = vld [vmem:[#allocation4 + $0x14] sm:$0xf0] }
  0x32   : > { %v450_v35 = vor.u32 %v498_v32, %v447_v33  ;;  %v496_v38 = vld [vmem:[#allocation4 + $0x14] sm:$0xf]  ;;  %v439_v39 = vld [vmem:[#allocation4 + $0x18] sm:$0xf0]  ;;  %v438_v40 = vor.u32 %v497_v37, %v437_v36  ;;  %v429_v42 = vld [vmem:[#allocation4] sm:$0xf] }
  0x33   : > { %v442_v41 = vor.u32 %v496_v38, %v439_v39  ;;  %v495_v43 = vld [vmem:[#allocation4 + $0x4] sm:$0xf0]  ;;  %v494_v44 = vld [vmem:[#allocation4 + $0x4] sm:$0xf]  ;;  %v431_v45 = vld [vmem:[#allocation4 + $0x8] sm:$0xf0] }
  0x34   : > { %313 = vmatpush.bf16.msra.mxu0 %v470_v16  ;;  %v430_v46 = vor.u32 %v495_v43, %v429_v42  ;;  %v207_v47 = vld [vmem:[%s173_s4] sm:$0xff]  ;;  %v434_v48 = vor.u32 %v494_v44, %v431_v45  ;;  %p202_p1 = scmp.lt.s32.totalorder %s707_s19, 3 }
  0x35   : > { %326 = vmatpush.bf16.msra.mxu1 %v474_v17  ;;  %v208_v49 = vpack.c.bf16 %v207_v47, %v207_v47  ;;  %v225_v50 = vld [vmem:[%s798_s2] sm:$0x3] }
  0x36   : > { %s808_s19 = smov (!%p202_p1, %s707_s19), 3  ;;  %v227_v51 = vperm.slane %v225_v50, 0  ;;  %v228_v52 = vperm.slane %v225_v50, 1 }
  0x37   : > { %s493_s5 = sshll.u32 %s808_s19, 3 }
  0x38   : > { %314 = vmatpush.bf16.msra.mxu0 %v462_v22  ;;  %s206_s8 = scalar_lea.vmem %s799_s3, %s493_s5 }
  0x39   : > { %327 = vmatpush.bf16.msra.mxu1 %v466_v23 }
  0x3c   : > { %315 = vmatpush.bf16.msra.mxu0 %v454_v28 }
  0x3d   : > { %328 = vmatpush.bf16.msra.mxu1 %v458_v29 }
  0x40   : > { %316 = vmatpush.bf16.msra.mxu0 %v446_v34 }
  0x41   : > { %329 = vmatpush.bf16.msra.mxu1 %v450_v35 }
  0x44   : > { %317 = vmatpush.bf16.msra.mxu0 %v438_v40 }
  0x45   : > { %330 = vmatpush.bf16.msra.mxu1 %v442_v41 }
  0x48   : > { %318 = vmatpush.bf16.msra.mxu0 %v430_v46 }
  0x49   : > { %331 = vmatpush.bf16.msra.mxu1 %v434_v48 }
  0x4b   : > { %319 = vmatmul.bf16.vlgmr.msra.gmra.mxu0 %v208_v49 }
  0x4c   : > { %332 = vmatmul.bf16.vlgmr.msra.gmra.mxu1 %v208_v49 }
  0xc8   : > { %v320_v53 = vpop.f32.mrf.mxu0 }
  0xc9   : > { %v321_v54 = vadd.f32 %v320_v53, %v227_v51  ;;  %v333_v55 = vpop.f32.mrf.mxu1 }
  0xca   : > { %v334_v56 = vadd.f32 %v333_v55, %v228_v52 }
  0xcc   : > { %v337_v57 = vpack.c.bf16 %v334_v56, %v321_v54 }
  0xce   : > { %338 = vst [vmem:[%s206_s8] sm:$0xff] %v337_v57 }
  0xd0   : > { %v322_v58 = vpop.f32.mrf.mxu0 }
  0xd1   : > { %v335_v59 = vpop.f32.mrf.mxu1 }
  0xd2 PF: > { %p14_p3 = scmp.ge.s32.totalorder %s721_s25, 6   ;;  %s803_s12 = smov %s652_s13 }
  0xd3   : > { %s804_s13 = smov %s656_s14  ;;  %s805_s14 = smov %s731_s28 }
  0xd4   : > { %s806_s15 = smov %s721_s25  ;;  %16 = sbr.rel (!%p14_p3) target bundleno = 4 (0x4), region = 76 }
  0xd9   :  { %360 = vsyncpa [#allocation3], 1 }
  0xda   :  { %362 = vsyncpa [#allocation3 + $0x1], 1 }
  0xdb   :  { %363 = vsyncpa [#allocation5], 1 }

// kernel: decoder_forward.14
= control target key start
LH: loop header
LB: loop body
LE: loop exit
PB: predicated region body
PF: predicated region fallthrough
CT: control target
= control target key end

     0   :  { %s1588_s0 = inlined_call_operand.vmem [shape: f32[2,16,128], index: 0, kind: input, shape index: {}]   ;;  %s1589_s1 = inlined_call_operand.vmem [shape: bf16[2,16,384], index: 1, kind: input, shape index: {}, may-alias: {1,2,3}]   ;;  %s1590_s2 = inlined_call_operand.vmem [shape: bf16[2,16,384], index: 2, kind: input, shape index: {}, may-alias: {1,2,3}]   ;;  %s1591_s3 = inlined_call_operand.vmem [shape: bf16[2,16,384], index: 3, kind: input, shape index: {}, may-alias: {1,2,3}]   ;;  %s1592_s4 = inlined_call_operand.vmem [shape: s32[1,16,16], index: 4, kind: input, shape index: {}]   ;;  %s1593_s5 = inlined_call_operand.hbm [shape: bf16[128,128], index: 5, kind: input, shape index: {}]   ;;  %s1594_s6 = inlined_call_operand.vmem [shape: f32[1,128], index: 6, kind: input, shape index: {}]   ;;  %s1595_s7 = inlined_call_operand.vmem [shape: f32[2,16,128], index: 7, kind: output, shape index: {}]  }
   0x1   :  { %1597 = sst [smem:[#allocation8_spill]] %s1593_s5 }
   0x2   :  { %12 = vsyncpa [#allocation5], 0  ;;  %s1396_s24 = smov 0   ;;  %s1398_s25 = smov 0  }
   0x3   :  { %s1400_s26 = smov 0   ;;  %s1402_s27 = smov 0  }
   0x4   :  { %s1404_s28 = smov 0   ;;  %s1406_s29 = smov 0  }
   0x5   :  { %s1408_s30 = smov 0  }
   0x6 LB: > { %s1084_s8 = sadd.s32 4294967295, %s1347_s30   ;;  %s27_s9 = sadd.s32 1, %s1339_s28  ;;  %s1347_s30 = sphi %s1408_s30, %s18_s30   ;;  %s1343_s29 = sphi %s1406_s29, %s1609_s29   ;;  %s1339_s28 = sphi %s1404_s28, %s1608_s28   ;;  %s1335_s27 = sphi %s1402_s27, %s1607_s27   ;;  %s1331_s26 = sphi %s1400_s26, %s1606_s26   ;;  %s1327_s25 = sphi %s1398_s25, %s1605_s25   ;;  %s1323_s24 = sphi %s1396_s24, %s1604_s24  }
   0x7   : > { %p28_p0 = scmp.ge.s32.totalorder %s27_s9, 2  ;;  %s30_s10 = sadd.s32 1, %s1343_s29 }
   0x8   : > { %s93_s11 = sadd.s32 1, %s1327_s25  ;;  %p100_p1 = scmp.ne.s32.totalorder %s1327_s25, %s1323_s24 }
   0x9   : > { %s1611_s9 = smov (%p28_p0, %s27_s9), 0  ;;  %s1613_s10 = smov (!%p28_p0, %s30_s10), %s1343_s29 }
   0xa   : > { %p101_p2 = scmp.eq.s32.totalorder %s1347_s30, 0  ;;  %p1086_p3 = scmp.ge.s32.totalorder %s1347_s30, 1 }
   0xb   : > { %p32_p4 = scmp.ge.s32.totalorder %s1613_s10, 2  ;;  %p239_p5 = scmp.lt.s32.totalorder %s1347_s30, 5 }
   0xc   : > { %p1443_p6 = por %p101_p2, %p100_p1  ;;  %p1453_p8 = scmp.eq.s32.totalorder %s1084_s8, 0 }
   0xd   : > { %s1615_s10 = smov (%p32_p4, %s1613_s10), 0  ;;  %p1449_p7 = pnand %p1086_p3, %p239_p5 }
   0xe   : > { %1599 = sst [smem:[#allocation7_spill]] %s1615_s10  ;;  %s90_s15 = ssub.s32 %s1343_s29, %s1615_s10 }
   0xf   : > { %s1602_s5 = sld [smem:[#allocation8_spill]]  ;;  %p91_p9 = scmp.eq.s32.totalorder %s90_s15, 0 }
  0x10   : > { %p1173_p10 = pneg %p1449_p7  ;;  %s1349_s20 = smov [#allocation4]  }
  0x11   : > { %s1465_s19 = scalar_select %p91_p9, %s1327_s25, %s93_s11  }
  0x12   : > { %s252_s21 = sshll.u32 %s1349_s20, 4  ;;  %p1174_p11 = pnand %p1453_p8, %p1173_p10  ;;  %s253_s21 = int_to_ptr.vmem [resolvable:$true] %s252_s21 }
  0x13   : > { %s1350_s22 = smov 64   ;;  %s1351_s23 = smov 4  }
  0x14   : > { %p1088_p12 = scmp.ge.s32.totalorder %s1347_s30, 4 }
  0x15   : > { %s250_s18 = sshll.u32 %s1602_s5, 4  ;;  %s251_s18 = int_to_ptr.hbm [resolvable:$true] %s250_s18 }
  0x16   : > { %1176 = dma.hbm_to_vmem [thread:$0]  (!%p1174_p11), %s251_s18, 1024, %s253_s21, [#allocation5], %s1350_s22, %s1350_s22, %s1351_s23  }
  0x17   : > { %265 = sbr.rel (%p1088_p12) target bundleno = 42 (0x2a), region = 24 }
  0x1c   : > { %291 = sbr.rel (!%p1443_p6) target bundleno = 35 (0x23), region = 36  ;;  %s293_s8 = sand.u32 (%p1443_p6), 1, %s1327_s25  }
  0x1d   : > { %s1090_s15 = smul.u32 (%p1443_p6), 24, %s1343_s29  ;;  %s1089_s11 = sshll.u32 (%p1443_p6), %s293_s8, 3 }
  0x1e   : > { %s295_s5 = scalar_lea.vmem (%p1443_p6), [#allocation2], %s1089_s11 }
  0x1f   : > { %s955_s20 = scalar_lea.vmem (%p1443_p6), %s1590_s2, %s1090_s15 }
  0x20   : > { %v1091_v0 = vld [vmem:[%s955_s20 + $0x4] sm:$0xf] (%p1443_p6)  ;;  %v1092_v1 = vld [vmem:[%s955_s20 + $0x10] sm:$0xf] (%p1443_p6) }
  0x21   : > { %317 = vst [vmem:[%s295_s5] sm:$0xf] %v1091_v0 }
  0x22   : > { %319 = vst [vmem:[%s295_s5 + $0x4] sm:$0xf] %v1092_v1 }
  0x23 PF: > { %347 = sbr.rel (!%p1443_p6) target bundleno = 42 (0x2a), region = 77  ;;  %s349_s18 = sand.u32 (%p1443_p6), 1, %s1327_s25  }
  0x24   : > { %s1094_s21 = smul.u32 (%p1443_p6), 24, %s1343_s29  ;;  %s1093_s22 = sshll.u32 (%p1443_p6), %s349_s18, 3 }
  0x25   : > { %s351_s15 = scalar_lea.vmem (%p1443_p6), [#allocation3], %s1093_s22 }
  0x26   : > { %s961_s10 = scalar_lea.vmem (%p1443_p6), %s1591_s3, %s1094_s21 }
  0x27   : > { %v1095_v2 = vld [vmem:[%s961_s10 + $0x8] sm:$0xf] (%p1443_p6)  ;;  %v1096_v3 = vld [vmem:[%s961_s10 + $0x14] sm:$0xf] (%p1443_p6) }
  0x28   : > { %373 = vst [vmem:[%s351_s15] sm:$0xf] %v1095_v2 }
  0x29   : > { %375 = vst [vmem:[%s351_s15 + $0x4] sm:$0xf] %v1096_v3 }
  0x2a PF: > { %413 = sbr.rel (%p1449_p7) target bundleno = 1126 (0x466), region = 122  ;;  %s416_s5 = sand.u32 (!%p1449_p7), 1, %s1323_s24  }
  0x2b   : > { %s1487_s12 = sshll.u32 (!%p1449_p7), %s416_s5, 3 }
  0x2c   : > { %s418_s11 = scalar_lea.vmem (!%p1449_p7), [#allocation2], %s1487_s12  ;;  %s425_s16 = scalar_lea.vmem (!%p1449_p7), [#allocation3], %s1487_s12 }
  0x2f   : > { %1318 = dma.done.wait (%p1453_p8), [#allocation5], 1024  }
  0x30   : > { %1320 = vsyncadd (%p1453_p8), [#allocation5], 4294966272  ;;  %p487_p13 = scmp.lt.s32.totalorder %s1335_s27, 1  ;;  %p489_p0 = scmp.lt.s32.totalorder %s1331_s26, 1  ;;  %v1157_v4 = vld [vmem:[%s418_s11] sm:$0xff]  ;;  %vm530_vm0 = vcmask 261120  }
  0x31   : > { %s1352_s20 = smov 96   ;;  %s1353_s22 = smov 64   ;;  %v535_v8 = vsel %vm530_vm0, %v1157_v4, 0  ;;  %v1158_v16 = vld [vmem:[%s425_s16] sm:$0xff]  ;;  %v1355_v20 = vmov -1e+09  }
  0x32   : > { %s1617_s27 = smov (!%p487_p13, %s1335_s27), 1  ;;  %s1619_s26 = smov (!%p489_p0, %s1331_s26), 1  ;;  %605 = vrot.lane.b32.xlu0 %v1157_v4, %s1352_s20  ;;  %674 = vrot.lane.b32.xlu2 %v1157_v4, %s1353_s22  ;;  %vm552_vm2 = vcmask 130048  }
  0x33   : > { %s1168_s24 = smul.u32 6, %s1617_s27  ;;  %s1354_s23 = smov 32   ;;  %544 = vmatpush.bf16.xpose.msra.mxu0 %v535_v8  ;;  %579 = vmatpush.bf16.msra.mxu1 %v1158_v16 }
  0x34   : > { %s1167_s10 = smul.u32 3, %s1619_s26  ;;  %s1104_s8 = sshll.u32 %s1619_s26, 3 }
  0x35   : > { %s507_s11 = scalar_lea.vmem %s1592_s4, %s1104_s8  ;;  %s1101_s12 = sshll.u32 %s1617_s27, 1 }
  0x36   : > { %s501_s13 = sadd.s32 %s1168_s24, %s1167_s10  ;;  %v522_v17 = vld [vmem:[%s507_s11] sm:$0xff]  ;;  %s492_s16 = sadd.s32 %s1101_s12, %s1619_s26 }
  0x37   : > { %s1103_s17 = sshll.u32 %s501_s13, 2  ;;  %vm523_vm1 = vcmp.ne.s32.totalorder %v522_v17, 0  ;;  %s1102_s24 = sshll.u32 %s492_s16, 3 }
  0x38   : > { %s503_s21 = scalar_lea.vmem %s1589_s1, %s1103_s17  ;;  %v1526_v21 = vsel %vm523_vm1, 0.0, %v1355_v20  ;;  %s494_s17 = scalar_lea.vmem %s1588_s0, %s1102_s24 }
  0x39   : > { %v517_v5 = vld [vmem:[%s503_s21] sm:$0xf] }
  0x3a   : > { %v601_v6 = vunpack.c.l.b16 %v517_v5  ;;  %743 = vrot.lane.b32.xlu2 %v1157_v4, %s1354_s23  ;;  %1111 = vmatmul.msk.bf16.vlgmr.msra.gmra.mxu0 %vm530_vm0, %v517_v5 }
  0x3c   : > { %v602_v7 = vpack.c.b16 %v601_v6, %v601_v6 }
  0x3e   : > { %603 = vrot.lane.b32.xlu0 %v602_v7, %s1352_s20 }
  0x42   : > { %741 = vrot.lane.b32.xlu2 %v602_v7, %s1354_s23 }
  0x46   : > { %672 = vrot.lane.b32.xlu0 %v602_v7, %s1353_s22 }
  0x8c   : > { %v675_v9 = vpop.permute.xlu2 %674 }
  0x8d   : > { %v680_v40 = vsel %vm530_vm0, %v675_v9, 0 }
  0x94   : > { %v744_v10 = vpop.permute.xlu2 %743 }
  0x95   : > { %v749_v11 = vsel %vm530_vm0, %v744_v10, 0 }
  0x96   : > { %758 = vmatpush.bf16.xpose.msrb.mxu0 %v749_v11 }
  0x9c   : > { %v742_v12 = vpop.permute.xlu2 %741 }
  0x9d   : > { %1121 = vmatmul.msk.bf16.vlgmr.msrb.gmra.mxu0 %vm530_vm0, %v742_v12 }
  0xa4   : > { %v606_v13 = vpop.permute.xlu0 %605 }
  0xa5   : > { %v611_v14 = vsel %vm530_vm0, %v606_v13, 0 }
  0xa6   : > { %620 = vmatpush.bf16.xpose.msra.mxu2 %v611_v14 }
  0xb0   : > { %v604_v15 = vpop.permute.xlu0 %603 }
  0xb1   : > { %1117 = vmatmul.msk.bf16.vlgmr.msra.gmra.mxu2 %vm530_vm0, %v604_v15 }
  0xb7   : > { %v546_v18 = vpop.f32.mrf.mxu0 }
  0xb8   : > { %v550_v32 = vmul.f32 0.17677669, %v546_v18  ;;  %v673_v43 = vpop.permute.xlu0 %672 }
  0xba   : > { %v551_v33 = vadd.f32 %v550_v32, %v1526_v21 }
  0xbc   : > { %v553_v34 = vsel %vm552_vm2, %v551_v33, -inf }
  0xbf   : > { %v548_v25 = vpop.f32.mrf.mxu0 }
 0x11a   : > { %v760_v27 = vpop.f32.mrf.mxu0 }
 0x11b   : > { %v764_v29 = vmul.f32 0.17677669, %v760_v27 }
 0x11d   : > { %v765_v30 = vadd.f32 %v764_v29, %v1526_v21 }
 0x11f   : > { %v766_v31 = vsel %vm552_vm2, %v765_v30, -inf }
 0x120   : > { %767 = vmax.xlane.f32.xlu2 %v766_v31 }
 0x122   : > { %v762_v28 = vpop.f32.mrf.mxu0 }
 0x134   : > { %v622_v19 = vpop.f32.mrf.mxu2 }
 0x135   : > { %v626_v22 = vmul.f32 0.17677669, %v622_v19 }
 0x137   : > { %v627_v23 = vadd.f32 %v626_v22, %v1526_v21 }
 0x139   : > { %v628_v24 = vsel %vm552_vm2, %v627_v23, -inf }
 0x13a   : > { %629 = vmax.xlane.f32.xlu1 %v628_v24 }
 0x13c   : > { %v624_v26 = vpop.f32.mrf.mxu2 }
 0x153   : > { %638 = vrot.lane.b32.xlu1 %v1158_v16, %s1352_s20 }
 0x15b   : > { %707 = vrot.lane.b32.xlu1 %v1158_v16, %s1353_s22 }
 0x163   : > { %776 = vrot.lane.b32.xlu1 %v1158_v16, %s1354_s23 }
 0x18d   : > { %554 = vmax.xlane.f32.xlu1 %v553_v34 }
 0x193   : > { %v768_v44 = vpop.xlane.xlu2 %767 }
 0x194   : > { %v769_v45 = vsub.f32 %v765_v30, %v768_v44 }
 0x196   : > { %v770_v46 = vmul.f32 1.442695, %v769_v45  ;;  %v1161_v45 = vld [vmem:[#allocation4 + $0x10] sm:$0xff] }
 0x1ad   : > { %v630_v35 = vpop.xlane.xlu1 %629 }
 0x1ae   : > { %v631_v36 = vsub.f32 %v627_v23, %v630_v35  ;;  %v1166_v35 = vld [vmem:[#allocation4 + $0x38] sm:$0xff] }
 0x1af   : > { %896 = vmatpush.bf16.msrb.mxu1 %v1166_v35 }
 0x1b0   : > { %v632_v37 = vmul.f32 1.442695, %v631_v36  ;;  %v1165_v36 = vld [vmem:[#allocation4 + $0x30] sm:$0xff] }
 0x1b2   : > { %1243 = vpow2.f32 %v632_v37  ;;  %v1164_v37 = vld [vmem:[#allocation4 + $0x28] sm:$0xff] }
 0x1b3   : > { %1245 = vpow2.f32 %v770_v46  ;;  %897 = vmatpush.bf16.msrb.mxu1 %v1165_v36 }
 0x1b7   : > { %898 = vmatpush.bf16.msrb.mxu1 %v1164_v37 }
 0x1b8   : > { %v1244_v38 = vpop.eup %1243 }
 0x1b9   : > { %v634_v39 = vsel %vm552_vm2, %v1244_v38, 0.0  ;;  %v637_v42 = vpack.c.bf16 %v1244_v38, %v1244_v38  ;;  %v1246_v47 = vpop.eup %1245 }
 0x1ba   : > { %635 = vadd.xlane.f32.xlu2 %v634_v39  ;;  %v772_v48 = vsel %vm552_vm2, %v1246_v47, 0.0  ;;  %v775_v60 = vpack.c.bf16 %v1246_v47, %v1246_v47  ;;  %v1163_v39 = vld [vmem:[#allocation4 + $0x20] sm:$0xff] }
 0x1bb   : > { %899 = vmatpush.bf16.msrb.mxu1 %v1163_v39 }
 0x1c2   : > { %773 = vadd.xlane.f32.xlu2 %v772_v48 }
 0x1c5   : > { %v639_v41 = vpop.permute.xlu1 %638 }
 0x1c6   : > { %651 = vmatpush.bf16.msra.mxu3 %v639_v41  ;;  %v1162_v41 = vld [vmem:[#allocation4 + $0x18] sm:$0xff] }
 0x1c7   : > { %900 = vmatpush.bf16.msrb.mxu1 %v1162_v41 }
 0x1c9   : > { %1118 = vmatmul.msk.bf16.vlgmr.msra.gmra.mxu3 %vm552_vm2, %v637_v42 }
 0x1ca   : > { %689 = vmatpush.bf16.xpose.msrb.mxu3 %v680_v40 }
 0x1cb   : > { %901 = vmatpush.bf16.msrb.mxu1 %v1161_v45 }
 0x1cd   : > { %v708_v49 = vpop.permute.xlu1 %707 }
 0x1d2   : > { %720 = vmatpush.bf16.msra.mxu3 %v708_v49 }
 0x1d5   : > { %v777_v50 = vpop.permute.xlu1 %776 }
 0x1d6   : > { %789 = vmatpush.bf16.msrb.mxu2 %v777_v50  ;;  %v1160_v50 = vld [vmem:[#allocation4 + $0x8] sm:$0xff] }
 0x1d7   : > { %902 = vmatpush.bf16.msrb.mxu1 %v1160_v50 }
 0x1d9   : > { %1119 = vmatmul.msk.bf16.vlgmr.msrb.gmra.mxu3 %vm530_vm0, %v673_v43  ;;  %1122 = vmatmul.msk.bf16.vlgmr.msrb.gmra.mxu2 %vm552_vm2, %v775_v60 }
 0x200   : > { %v555_v51 = vpop.xlane.xlu1 %554 }
 0x201   : > { %v556_v52 = vsub.f32 %v551_v33, %v555_v51 }
 0x203   : > { %v557_v53 = vmul.f32 1.442695, %v556_v52 }
 0x205   : > { %1247 = vpow2.f32 %v557_v53 }
 0x20b   : > { %v1248_v55 = vpop.eup %1247 }
 0x20c   : > { %v562_v56 = vpack.c.bf16 %v1248_v55, %v1248_v55  ;;  %v559_v34 = vsel %vm552_vm2, %v1248_v55, 0.0 }
 0x20e   : > { %1116 = vmatmul.msk.bf16.vlgmr.msra.gmra.mxu1 %vm552_vm2, %v562_v56 }
 0x22d   : > { %v636_v54 = vpop.xlane.xlu2 %635 }
 0x22e   : > { %1249 = vrcp.f32 %v636_v54  ;;  %v668_v63 = vand.u32 2147483648, %v636_v54  ;;  %vm662_vm4 = vweird.f32 %v636_v54  ;;  %v666_v0 = vand.u32 2147483647, %v636_v54 }
 0x230   : > { %v669_v2 = vor.u32 1.1754944e-38, %v668_v63  ;;  %vm667_vm6 = vcmp.eq.f32.partialorder %v666_v0, 8.507059e+37 }
 0x234   : > { %v1250_v57 = vpop.eup %1249 }
 0x235   : > { %v658_v58 = vmul.f32 %v1250_v57, %v636_v54  ;;  %vm663_vm3 = vweird.f32 %v1250_v57  ;;  %v774_v12 = vpop.xlane.xlu2 %773 }
 0x236   : > { %vm664_vm5 = vmor %vm662_vm4, %vm663_vm3  ;;  %1251 = vrcp.f32 %v774_v12  ;;  %v806_v19 = vand.u32 2147483648, %v774_v12  ;;  %vm800_vm7 = vweird.f32 %v774_v12  ;;  %v804_v22 = vand.u32 2147483647, %v774_v12 }
 0x237   : > { %v659_v59 = vsub.f32 1.0, %v658_v58  ;;  %vm823_vm4 = vcmask 523264  }
 0x238   : > { %vm805_vm10 = vcmp.eq.f32.partialorder %v804_v22, 8.507059e+37 }
 0x239   : > { %v660_v61 = vmul.f32 %v1250_v57, %v659_v59 }
 0x23b   : > { %v661_v62 = vadd.f32 %v1250_v57, %v660_v61 }
 0x23c   : > { %v1252_v14 = vpop.eup %1251 }
 0x23d   : > { %v665_v1 = vsel %vm664_vm5, %v1250_v57, %v661_v62  ;;  %v796_v15 = vmul.f32 %v1252_v14, %v774_v12  ;;  %vm801_vm8 = vweird.f32 %v1252_v14  ;;  %v1159_v57 = vld [vmem:[#allocation4] sm:$0xff]  ;;  %vm825_vm5 = vcmask 785408  }
 0x23e   : > { %v670_v4 = vsel %vm667_vm6, %v669_v2, %v665_v1  ;;  %vm802_vm9 = vmor %vm800_vm7, %vm801_vm8  ;;  %903 = vmatpush.bf16.msrb.mxu1 %v1159_v57  ;;  %v1242_v12 = vld [vmem:[%s1594_s6] ss:$0 sm:$0xff] }
 0x23f   : > { %v797_v17 = vsub.f32 1.0, %v796_v15 }
 0x241   : > { %v798_v18 = vmul.f32 %v1252_v14, %v797_v17 }
 0x243   : > { %v799_v20 = vadd.f32 %v1252_v14, %v798_v18 }
 0x245   : > { %v803_v23 = vsel %vm802_vm9, %v1252_v14, %v799_v20  ;;  %v909_v14 = vld [vmem:[%s494_s17] sm:$0xff] }
 0x24c   : > { %v653_v3 = vpop.f32.mrf.mxu3 }
 0x24d   : > { %v671_v5 = vmul.f32 %v670_v4, %v653_v3 }
 0x24f   : > { %811 = vrot.lane.b32.xlu2 %v671_v5, %s1354_s23 }
 0x254   : > { %v655_v6 = vpop.f32.mrf.mxu3 }
 0x25c   : > { %v691_v7 = vpop.f32.mrf.mxu3  ;;  %v791_v24 = vpop.f32.mrf.mxu2 }
 0x25d   : > { %v695_v8 = vmul.f32 0.17677669, %v691_v7 }
 0x25f   : > { %v696_v9 = vadd.f32 %v695_v8, %v1526_v21  ;;  %v807_v21 = vor.u32 1.1754944e-38, %v806_v19 }
 0x261   : > { %v697_v10 = vsel %vm552_vm2, %v696_v9, -inf  ;;  %v808_v25 = vsel %vm805_vm10, %v807_v21, %v803_v23 }
 0x262   : > { %698 = vmax.xlane.f32.xlu0 %v697_v10  ;;  %v809_v26 = vmul.f32 %v808_v25, %v791_v24 }
 0x264   : > { %v693_v11 = vpop.f32.mrf.mxu3  ;;  %819 = vrot.lane.b32.xlu1 %v809_v26, %s1352_s20  ;;  %v793_v27 = vpop.f32.mrf.mxu2 }
 0x28b   : > { %v1547_v13 = vpop.f32.mrf.mxu1 }
 0x293   : > { %v583_v16 = vpop.f32.mrf.mxu1 }
 0x2a9   : > { %v812_v5 = vpop.permute.xlu2 %811 }
 0x2d5   : > { %v699_v28 = vpop.xlane.xlu0 %698 }
 0x2d6   : > { %v700_v29 = vsub.f32 %v696_v9, %v699_v28  ;;  %v820_v8 = vpop.permute.xlu1 %819 }
 0x2d8   : > { %v701_v30 = vmul.f32 1.442695, %v700_v29 }
 0x2da   : > { %1253 = vpow2.f32 %v701_v30 }
 0x2e0   : > { %v1254_v31 = vpop.eup %1253 }
 0x2e1   : > { %v706_v32 = vpack.c.bf16 %v1254_v31, %v1254_v31  ;;  %v703_v33 = vsel %vm552_vm2, %v1254_v31, 0.0 }
 0x2e2   : > { %704 = vadd.xlane.f32.xlu0 %v703_v33 }
 0x2e3   : > { %1120 = vmatmul.msk.bf16.vlgmr.msra.gmra.mxu3 %vm552_vm2, %v706_v32 }
 0x2ea   : > { %560 = vadd.xlane.f32.xlu0 %v559_v34 }
 0x355   : > { %v705_v38 = vpop.xlane.xlu0 %704 }
 0x356   : > { %1255 = vrcp.f32 %v705_v38  ;;  %v737_v44 = vand.u32 2147483648, %v705_v38  ;;  %v735_v47 = vand.u32 2147483647, %v705_v38  ;;  %vm731_vm12 = vweird.f32 %v705_v38 }
 0x358   : > { %v738_v49 = vor.u32 1.1754944e-38, %v737_v44  ;;  %vm736_vm14 = vcmp.eq.f32.partialorder %v735_v47, 8.507059e+37 }
 0x35c   : > { %v1256_v40 = vpop.eup %1255 }
 0x35d   : > { %v727_v42 = vmul.f32 %v1256_v40, %v705_v38  ;;  %vm732_vm11 = vweird.f32 %v1256_v40  ;;  %v561_v56 = vpop.xlane.xlu0 %560 }
 0x35e   : > { %vm733_vm13 = vmor %vm731_vm12, %vm732_vm11  ;;  %1257 = vrcp.f32 %v561_v56  ;;  %v596_v63 = vand.u32 2147483648, %v561_v56  ;;  %vm590_vm1 = vweird.f32 %v561_v56  ;;  %v594_v0 = vand.u32 2147483647, %v561_v56 }
 0x35f   : > { %v728_v43 = vsub.f32 1.0, %v727_v42 }
 0x360   : > { %v597_v2 = vor.u32 1.1754944e-38, %v596_v63  ;;  %vm595_vm3 = vcmp.eq.f32.partialorder %v594_v0, 8.507059e+37 }
 0x361   : > { %v729_v46 = vmul.f32 %v1256_v40, %v728_v43 }
 0x363   : > { %v730_v48 = vadd.f32 %v1256_v40, %v729_v46 }
 0x364   : > { %v1258_v58 = vpop.eup %1257 }
 0x365   : > { %v734_v51 = vsel %vm733_vm13, %v1256_v40, %v730_v48  ;;  %v586_v59 = vmul.f32 %v1258_v58, %v561_v56  ;;  %vm591_vm15 = vweird.f32 %v1258_v58 }
 0x366   : > { %v722_v52 = vpop.f32.mrf.mxu3  ;;  %v739_v53 = vsel %vm736_vm14, %v738_v49, %v734_v51  ;;  %vm592_vm2 = vmor %vm590_vm1, %vm591_vm15 }
 0x367   : > { %v740_v54 = vmul.f32 %v739_v53, %v722_v52  ;;  %v587_v60 = vsub.f32 1.0, %v586_v59 }
 0x369   : > { %815 = vrot.lane.b32.xlu0 %v740_v54, %s1353_s22  ;;  %v588_v61 = vmul.f32 %v1258_v58, %v587_v60  ;;  %s515_s22 = scalar_lea.vmem %s1595_s7, %s1102_s24 }
 0x36b   : > { %v589_v62 = vadd.f32 %v1258_v58, %v588_v61 }
 0x36d   : > { %v593_v1 = vsel %vm592_vm2, %v1258_v58, %v589_v62 }
 0x36e   : > { %v724_v55 = vpop.f32.mrf.mxu3  ;;  %v598_v3 = vsel %vm595_vm3, %v597_v2, %v593_v1 }
 0x36f   : > { %v599_v4 = vmul.f32 %v598_v3, %v1547_v13 }
 0x371   : > { %v822_v7 = vsel %vm530_vm0, %v599_v4, %v812_v5 }
 0x3db   : > { %v816_v6 = vpop.permute.xlu0 %815 }
 0x3dc   : > { %v824_v9 = vsel %vm823_vm4, %v822_v7, %v816_v6 }
 0x3dd   : > { %v826_v10 = vsel %vm825_vm5, %v824_v9, %v820_v8 }
 0x3de   : > { %v827_v11 = vpack.c.bf16 %v826_v10, %v826_v10 }
 0x3e0   : > { %904 = vmatmul.bf16.vlgmr.msrb.gmra.mxu1 %v827_v11 }
 0x45d   : > { %v905_v13 = vpop.f32.mrf.mxu1 }
 0x45e   : > { %v906_v15 = vadd.f32 %v1242_v12, %v905_v13 }
 0x460   : > { %v910_v16 = vadd.f32 %v909_v14, %v906_v15 }
 0x462   : > { %911 = vst [vmem:[%s515_s22] sm:$0xff] %v910_v16 }
 0x465   : > { %v907_v17 = vpop.f32.mrf.mxu1 }
 0x466 PF: > { %s18_s30 = sadd.s32 1, %s1347_s30   ;;  %s1603_s23 = sld [smem:[#allocation7_spill]] }
 0x467   : > { %p15_p1 = scmp.ge.s32.totalorder %s18_s30, 6   ;;  %s1604_s24 = smov %s1327_s25 }
 0x468   : > { %s1605_s25 = smov %s1465_s19  ;;  %s1606_s26 = smov %s1339_s28 }
 0x469   : > { %s1607_s27 = smov %s1343_s29  ;;  %s1608_s28 = smov %s1611_s9 }
 0x46a   :  { %17 = sbr.rel (!%p15_p1) target bundleno = 6 (0x6), region = 187 }
 0x46c   : > { %s1609_s29 = smov %s1603_s23 }
 0x46f   :  { %939 = vsyncpa [#allocation5], 1 }
 0x470   :  { %941 = vsyncpa [#allocation5 + $0x1], 1 }

// kernel: decoder_forward.25
= control target key start
LH: loop header
LB: loop body
LE: loop exit
PB: predicated region body
PF: predicated region fallthrough
CT: control target
= control target key end

     0   :  { %8 = vsyncpa [#allocation3], 0  ;;  %s541_s0 = inlined_call_operand.vmem [shape: f32[32,128], index: 0, kind: input, shape index: {}]   ;;  %s542_s1 = inlined_call_operand.vmem [shape: f32[1,128], index: 1, kind: input, shape index: {}]   ;;  %s543_s2 = inlined_call_operand.vmem [shape: f32[1,128], index: 2, kind: input, shape index: {}]   ;;  %s544_s3 = inlined_call_operand.hbm [shape: f32[32,128], index: 3, kind: output, shape index: {}]  }
   0x1   :  { %10 = vsyncpa [#allocation3 + $0x1], 0  ;;  %s450_s12 = smov 0   ;;  %s452_s13 = smov 0  }
   0x2   :  { %s454_s14 = smov 0   ;;  %s456_s15 = smov 0  }
   0x3 LB: > { %s471_s16 = sadd.s32 4294967295, %s426_s15   ;;  %s303_s17 = sadd.s32 4294967294, %s426_s15   ;;  %s426_s15 = sphi %s456_s15, %s550_s15   ;;  %s422_s14 = sphi %s454_s14, %s549_s14   ;;  %s418_s13 = sphi %s452_s13, %s548_s13   ;;  %s414_s12 = sphi %s450_s12, %s547_s12  }
   0x4   : > { %s475_s18 = sadd.s32 1, %s426_s15   ;;  %s91_s19 = sadd.s32 1, %s422_s14 }
   0x5   : > { %s88_s20 = ssub.s32 %s426_s15, %s475_s18  ;;  %p101_p0 = scmp.ne.s32.totalorder %s422_s14, %s418_s13 }
   0x6   : > { %p89_p1 = scmp.eq.s32.totalorder %s88_s20, 0  ;;  %p102_p2 = scmp.eq.s32.totalorder %s471_s16, 3 }
   0x7   : > { %p107_p3 = scmp.ne.s32.totalorder %s418_s13, %s414_s12  ;;  %p108_p4 = scmp.eq.s32.totalorder %s303_s17, 3 }
   0x8   : > { %s486_s21 = scalar_select %p89_p1, %s422_s14, %s91_s19  }
   0x9   : > { %p488_p5 = por %p102_p2, %p101_p0  ;;  %p492_p6 = por %p108_p4, %p107_p3 }
   0xa   : > { %p306_p7 = scmp.ge.s32.totalorder %s426_s15, 1  ;;  %p139_p8 = scmp.lt.s32.totalorder %s426_s15, 5 }
   0xc   : > { %p140_p9 = pnand %p306_p7, %p139_p8 }
   0xd   : > { %p162_p10 = scmp.lt.s32.totalorder (!%p140_p9), %s471_s16, 3  ;;  %s159_s29 = sand.u32 (!%p140_p9), 1, %s418_s13  }
   0xe   : > { %143 = sbr.rel (%p140_p9) target bundleno = 311 (0x137), region = 32  ;;  %s307_s30 = sshll.u32 (!%p140_p9), %s159_s29, 3 }
   0xf   : > { %s310_s4 = sshll.u32 (!%p140_p9), %s471_s16, 3  ;;  %s229_s20 = scalar_lea.sflag (!%p140_p9), [#allocation3], %s159_s29 }
  0x10   : > { %s239_s9 = scalar_lea.hbm (!%p140_p9), %s544_s3, %s310_s4 }
  0x11   : > { %s243_s19 = sshll.u32 (!%p140_p9), %s239_s9, 4  ;;  %s244_s19 = int_to_ptr.hbm [resolvable:$true] %s243_s19 }
  0x13   : > { %s163_s24 = scalar_select %p162_p10, %s471_s16, 3  ;;  %v428_v1 = vmov 128.0   ;;  %v429_v12 = vmov 127.0   ;;  %v354_v36 = vld [vmem:[%s542_s1] ss:$0 sm:$0xff] }
  0x14   : > { %356 = vrcp.f32 %v428_v1  ;;  %v355_v43 = vld [vmem:[%s543_s2] ss:$0 sm:$0xff]  ;;  %s161_s16 = scalar_lea.vmem [#allocation2], %s307_s30 }
  0x15   : > { %s308_s25 = sshll.u32 %s163_s24, 3  ;;  %358 = vrcp.f32 %v429_v12  ;;  %s241_s17 = sshll.u32 %s161_s16, 4  ;;  %s242_s17 = int_to_ptr.vmem [resolvable:$true] %s241_s17 }
  0x16   : > { %s165_s28 = scalar_lea.vmem %s541_s0, %s308_s25  ;;  %s378_s24 = sshra.s32 %s244_s19, 4  ;;  %s379_s24 = int_to_ptr.hbm [resolvable:$true] %s378_s24 }
  0x17   : > { %v166_v0 = vld [vmem:[%s165_s28] sm:$0xff]  ;;  %s380_s25 = scalar_lea.hbm %s379_s24, 8  ;;  %s384_s28 = scalar_lea.hbm %s544_s3, 32 }
  0x18   : > { %169 = vadd.xlane.f32.xlu0 %v166_v0  ;;  %p381_p11 = scmp.ne.s32.totalorder %s379_s24, %s380_s25  ;;  %p385_p0 = scmp.lt.s32.totalorder %s379_s24, %s544_s3 }
  0x19   : > { %p386_p1 = scmp.lt.s32.totalorder %s384_s28, %s380_s25 }
  0x1a   : > { %v357_v2 = vpop.eup %356  ;;  %p382_p12 = pnand %p381_p11, %p488_p5 }
  0x1b   : > { %v172_v3 = vmul.f32 128.0, %v357_v2  ;;  %vm176_vm0 = vweird.f32 %v357_v2  ;;  %v359_v13 = vpop.eup %358  ;;  %p387_p2 = por %p386_p1, %p385_p0 }
  0x1c   : > { %v184_v14 = vmul.f32 127.0, %v359_v13  ;;  %vm188_vm1 = vweird.f32 %v359_v13  ;;  %p383_p13 = pneg %p382_p12 }
  0x1d   : > { %v173_v4 = vsub.f32 1.0, %v172_v3 }
  0x1e   : > { %v185_v15 = vsub.f32 1.0, %v184_v14  ;;  %p388_p3 = pnand %p387_p2, %p383_p13 }
  0x1f   : > { %v174_v5 = vmul.f32 %v357_v2, %v173_v4 }
  0x20   : > { %v186_v16 = vmul.f32 %v359_v13, %v185_v15 }
  0x21   : > { %v175_v6 = vadd.f32 %v357_v2, %v174_v5 }
  0x22   : > { %v187_v17 = vadd.f32 %v359_v13, %v186_v16 }
  0x23   : > { %v177_v7 = vsel %vm176_vm0, %v357_v2, %v175_v6 }
  0x24   : > { %v189_v18 = vsel %vm188_vm1, %v359_v13, %v187_v17 }
  0x8b   : > { %v170_v8 = vpop.xlane.xlu0 %169 }
  0x8c   : > { %v178_v9 = vmul.f32 %v177_v7, %v170_v8 }
  0x8e   : > { %v179_v10 = vsub.f32 %v166_v0, %v178_v9 }
  0x90   : > { %v180_v11 = vmul.f32 %v179_v10, %v179_v10  ;;  %v194_v41 = vmul.f32 %v354_v36, %v179_v10 }
  0x92   : > { %181 = vadd.xlane.f32.xlu0 %v180_v11 }
 0x105   : > { %v182_v19 = vpop.xlane.xlu0 %181 }
 0x106   : > { %v190_v20 = vmul.f32 %v189_v18, %v182_v19 }
 0x108   : > { %360 = vrsqrt.f32 %v190_v20  ;;  %vm202_vm2 = vcmp.eq.f32.partialorder %v190_v20, inf  ;;  %v205_v28 = vand.u32 2147483648, %v190_v20  ;;  %vm204_vm3 = vcmp.eq.f32.partialorder %v190_v20, 0.0 }
 0x10e   : > { %v361_v21 = vpop.eup %360 }
 0x10f   : > { %v196_v22 = vmul.f32 %v361_v21, %v190_v20 }
 0x111   : > { %v197_v23 = vmul.f32 %v361_v21, %v196_v22 }
 0x113   : > { %v198_v24 = vmul.f32 0.5, %v197_v23 }
 0x115   : > { %v199_v25 = vsub.f32 1.5, %v198_v24 }
 0x117   : > { %v200_v26 = vmul.f32 %v361_v21, %v199_v25 }
 0x119   : > { %v201_v27 = vmul.f32 %v200_v26, %v190_v20 }
 0x11b   : > { %v203_v29 = vsel %vm202_vm2, %v190_v20, %v201_v27 }
 0x11c   : > { %v206_v30 = vsel %vm204_vm3, %v205_v28, %v203_v29 }
 0x11d   : > { %v207_v31 = vadd.f32 1e-06, %v206_v30 }
 0x11f   : > { %362 = vrcp.f32 %v207_v31  ;;  %v219_v35 = vand.u32 2147483648, %v207_v31  ;;  %v217_v38 = vand.u32 2147483647, %v207_v31  ;;  %vm213_vm5 = vweird.f32 %v207_v31 }
 0x121   : > { %v220_v40 = vor.u32 1.1754944e-38, %v219_v35  ;;  %vm218_vm7 = vcmp.eq.f32.partialorder %v217_v38, 8.507059e+37 }
 0x125   : > { %v363_v32 = vpop.eup %362 }
 0x126   : > { %v209_v33 = vmul.f32 %v363_v32, %v207_v31  ;;  %vm214_vm4 = vweird.f32 %v363_v32 }
 0x127   : > { %vm215_vm6 = vmor %vm213_vm5, %vm214_vm4 }
 0x128   : > { %v210_v34 = vsub.f32 1.0, %v209_v33 }
 0x12a   : > { %v211_v37 = vmul.f32 %v363_v32, %v210_v34 }
 0x12c   : > { %v212_v39 = vadd.f32 %v363_v32, %v211_v37 }
 0x12e   : > { %v216_v42 = vsel %vm215_vm6, %v363_v32, %v212_v39 }
 0x12f   : > { %v221_v44 = vsel %vm218_vm7, %v220_v40, %v216_v42 }
 0x130   : > { %v222_v45 = vmul.f32 %v221_v44, %v194_v41 }
 0x132   : > { %v226_v46 = vadd.f32 %v355_v43, %v222_v45 }
 0x134   : > { %227 = vst [vmem:[%s161_s16] sm:$0xff] %v226_v46 }
 0x135   : > { %391 = shalt.err (!%p388_p3)
}
 0x136   : > { %313 = dma.vmem_to_hbm [thread:$0]  (%p488_p5), %s242_s17, 128, %s244_s19, %s229_s20  }
 0x137 PF: > { %p319_p4 = scmp.ge.s32.totalorder %s426_s15, 2  ;;  %s255_s29 = sand.u32 1, %s414_s12  }
 0x138   : > { %s256_s5 = scalar_lea.sflag [#allocation3], %s255_s29 }
 0x139   : > { %p316_p7 = pnand %p319_p4, %p492_p6 }
 0x13b   : > { %p317_p8 = pneg %p316_p7 }
 0x13d   : > { %409 = dma.done.wait (%p317_p8), %s256_s5, 128  }
 0x13e   : > { %411 = vsyncadd (%p317_p8), %s256_s5, 4294967168  ;;  %p13_p9 = scmp.ge.s32.totalorder %s475_s18, 6   ;;  %s547_s12 = smov %s418_s13 }
 0x13f   : > { %s548_s13 = smov %s422_s14  ;;  %s549_s14 = smov %s486_s21 }
 0x140   : > { %s550_s15 = smov %s475_s18  ;;  %15 = sbr.rel (!%p13_p9) target bundleno = 3 (0x3), region = 67 }
 0x145   :  { %262 = vsyncpa [#allocation3], 1 }
 0x146   :  { %264 = vsyncpa [#allocation3 + $0x1], 1 }

// kernel: decoder_forward.17
= control target key start
LH: loop header
LB: loop body
LE: loop exit
PB: predicated region body
PF: predicated region fallthrough
CT: control target
= control target key end

     0   :  { %s1575_s0 = inlined_call_operand.vmem [shape: f32[2,16,128], index: 0, kind: input, shape index: {}]   ;;  %s1576_s1 = inlined_call_operand.vmem [shape: bf16[2,16,128], index: 1, kind: input, shape index: {}]   ;;  %s1577_s2 = inlined_call_operand.vmem [shape: bf16[2,16,256], index: 2, kind: input, shape index: {}, may-alias: {2,3}]   ;;  %s1578_s3 = inlined_call_operand.vmem [shape: bf16[2,16,256], index: 3, kind: input, shape index: {}, may-alias: {2,3}]   ;;  %s1579_s4 = inlined_call_operand.vmem [shape: s32[2,1,16], index: 4, kind: input, shape index: {}]   ;;  %s1580_s5 = inlined_call_operand.hbm [shape: bf16[128,128], index: 5, kind: input, shape index: {}]   ;;  %s1581_s6 = inlined_call_operand.vmem [shape: f32[1,128], index: 6, kind: input, shape index: {}]   ;;  %s1582_s7 = inlined_call_operand.vmem [shape: f32[2,16,128], index: 7, kind: output, shape index: {}]  }
   0x1   :  { %1584 = sst [smem:[#allocation8_spill]] %s1580_s5 }
   0x2   :  { %12 = vsyncpa [#allocation5], 0  ;;  %s1384_s24 = smov 0   ;;  %s1386_s25 = smov 0  }
   0x3   :  { %s1388_s26 = smov 0   ;;  %s1390_s27 = smov 0  }
   0x4   :  { %s1392_s28 = smov 0   ;;  %s1394_s29 = smov 0  }
   0x5   :  { %s1396_s30 = smov 0  }
   0x6 LB: > { %s1072_s8 = sadd.s32 4294967295, %s1335_s30   ;;  %s27_s9 = sadd.s32 1, %s1327_s28  ;;  %s1335_s30 = sphi %s1396_s30, %s18_s30   ;;  %s1331_s29 = sphi %s1394_s29, %s1596_s29   ;;  %s1327_s28 = sphi %s1392_s28, %s1595_s28   ;;  %s1323_s27 = sphi %s1390_s27, %s1594_s27   ;;  %s1319_s26 = sphi %s1388_s26, %s1593_s26   ;;  %s1315_s25 = sphi %s1386_s25, %s1592_s25   ;;  %s1311_s24 = sphi %s1384_s24, %s1591_s24  }
   0x7   : > { %p28_p0 = scmp.ge.s32.totalorder %s27_s9, 2  ;;  %s30_s10 = sadd.s32 1, %s1331_s29 }
   0x8   : > { %s93_s11 = sadd.s32 1, %s1315_s25  ;;  %p100_p1 = scmp.ne.s32.totalorder %s1315_s25, %s1311_s24 }
   0x9   : > { %s1598_s9 = smov (%p28_p0, %s27_s9), 0  ;;  %s1600_s10 = smov (!%p28_p0, %s30_s10), %s1331_s29 }
   0xa   : > { %p101_p2 = scmp.eq.s32.totalorder %s1335_s30, 0  ;;  %p1074_p3 = scmp.ge.s32.totalorder %s1335_s30, 1 }
   0xb   : > { %p32_p4 = scmp.ge.s32.totalorder %s1600_s10, 2  ;;  %p239_p5 = scmp.lt.s32.totalorder %s1335_s30, 5 }
   0xc   : > { %p1431_p6 = por %p101_p2, %p100_p1  ;;  %p1441_p8 = scmp.eq.s32.totalorder %s1072_s8, 0 }
   0xd   : > { %s1602_s10 = smov (%p32_p4, %s1600_s10), 0  ;;  %p1437_p7 = pnand %p1074_p3, %p239_p5 }
   0xe   : > { %1586 = sst [smem:[#allocation7_spill]] %s1602_s10  ;;  %s90_s15 = ssub.s32 %s1331_s29, %s1602_s10 }
   0xf   : > { %s1589_s5 = sld [smem:[#allocation8_spill]]  ;;  %p91_p9 = scmp.eq.s32.totalorder %s90_s15, 0 }
  0x10   : > { %p1161_p10 = pneg %p1437_p7  ;;  %s1337_s20 = smov [#allocation4]  }
  0x11   : > { %s1453_s19 = scalar_select %p91_p9, %s1315_s25, %s93_s11  }
  0x12   : > { %s252_s21 = sshll.u32 %s1337_s20, 4  ;;  %p1162_p11 = pnand %p1441_p8, %p1161_p10  ;;  %s253_s21 = int_to_ptr.vmem [resolvable:$true] %s252_s21 }
  0x13   : > { %s1338_s22 = smov 64   ;;  %s1339_s23 = smov 4  }
  0x14   : > { %p1076_p12 = scmp.ge.s32.totalorder %s1335_s30, 4 }
  0x15   : > { %s250_s18 = sshll.u32 %s1589_s5, 4  ;;  %s251_s18 = int_to_ptr.hbm [resolvable:$true] %s250_s18 }
  0x16   : > { %1164 = dma.hbm_to_vmem [thread:$0]  (!%p1162_p11), %s251_s18, 1024, %s253_s21, [#allocation5], %s1338_s22, %s1338_s22, %s1339_s23  }
  0x17   : > { %265 = sbr.rel (%p1076_p12) target bundleno = 40 (0x28), region = 24 }
  0x1c   : > { %290 = sbr.rel (!%p1431_p6) target bundleno = 34 (0x22), region = 36  ;;  %s292_s8 = sand.u32 (%p1431_p6), 1, %s1315_s25  }
  0x1d   : > { %s1145_s15 = sshll.u32 (%p1431_p6), %s1331_s29, 4  ;;  %s1077_s11 = sshll.u32 (%p1431_p6), %s292_s8, 3 }
  0x1e   : > { %s297_s20 = scalar_lea.vmem (%p1431_p6), %s1577_s2, %s1145_s15  ;;  %s294_s5 = scalar_lea.vmem (%p1431_p6), [#allocation2], %s1077_s11 }
  0x1f   : > { %v314_v0 = vld [vmem:[%s297_s20] sm:$0xf] (%p1431_p6)  ;;  %v316_v1 = vld [vmem:[%s297_s20 + $0x8] sm:$0xf] (%p1431_p6) }
  0x20   : > { %315 = vst [vmem:[%s294_s5] sm:$0xf] (%p1431_p6), %v314_v0 }
  0x21   : > { %317 = vst [vmem:[%s294_s5 + $0x4] sm:$0xf] %v316_v1 }
  0x22 PF: > { %345 = sbr.rel (!%p1431_p6) target bundleno = 40 (0x28), region = 77  ;;  %s347_s18 = sand.u32 (%p1431_p6), 1, %s1315_s25  }
  0x23   : > { %s1146_s21 = sshll.u32 (%p1431_p6), %s1331_s29, 4  ;;  %s1080_s22 = sshll.u32 (%p1431_p6), %s347_s18, 3 }
  0x24   : > { %s954_s10 = scalar_lea.vmem (%p1431_p6), %s1578_s3, %s1146_s21  ;;  %s349_s15 = scalar_lea.vmem (%p1431_p6), [#allocation3], %s1080_s22 }
  0x25   : > { %v1083_v2 = vld [vmem:[%s954_s10 + $0x4] sm:$0xf] (%p1431_p6)  ;;  %v1084_v3 = vld [vmem:[%s954_s10 + $0xc] sm:$0xf] (%p1431_p6) }
  0x26   : > { %371 = vst [vmem:[%s349_s15] sm:$0xf] (%p1431_p6), %v1083_v2 }
  0x27   : > { %373 = vst [vmem:[%s349_s15 + $0x4] sm:$0xf] %v1084_v3 }
  0x28 PF: > { %410 = sbr.rel (%p1437_p7) target bundleno = 1122 (0x462), region = 122  ;;  %s413_s5 = sand.u32 (!%p1437_p7), 1, %s1311_s24  }
  0x29   : > { %s1475_s12 = sshll.u32 (!%p1437_p7), %s413_s5, 3 }
  0x2a   : > { %s415_s11 = scalar_lea.vmem (!%p1437_p7), [#allocation2], %s1475_s12  ;;  %s422_s16 = scalar_lea.vmem (!%p1437_p7), [#allocation3], %s1475_s12 }
  0x2d   : > { %1306 = dma.done.wait (%p1441_p8), [#allocation5], 1024  }
  0x2e   : > { %1308 = vsyncadd (%p1441_p8), [#allocation5], 4294966272  ;;  %p482_p13 = scmp.lt.s32.totalorder %s1323_s27, 1  ;;  %p484_p0 = scmp.lt.s32.totalorder %s1319_s26, 1  ;;  %v1147_v4 = vld [vmem:[%s415_s11] sm:$0xff]  ;;  %vm523_vm0 = vcmask 261120  }
  0x2f   : > { %s1340_s18 = smov 96   ;;  %s1341_s21 = smov 64   ;;  %v528_v8 = vsel %vm523_vm0, %v1147_v4, 0  ;;  %v1148_v16 = vld [vmem:[%s422_s16] sm:$0xff]  ;;  %v1343_v18 = vmov -1e+09  }
  0x30   : > { %s1604_s27 = smov (!%p482_p13, %s1323_s27), 1  ;;  %s1606_s26 = smov (!%p484_p0, %s1319_s26), 1  ;;  %601 = vrot.lane.b32.xlu0 %v1147_v4, %s1340_s18  ;;  %670 = vrot.lane.b32.xlu2 %v1147_v4, %s1341_s21  ;;  %vm548_vm2 = vcmask 130048  }
  0x31   : > { %s1089_s24 = sshll.u32 %s1604_s27, 1  ;;  %537 = vmatpush.bf16.xpose.msra.mxu0 %v528_v8  ;;  %575 = vmatpush.bf16.msra.mxu1 %v1148_v16  ;;  %s500_s8 = scalar_lea.vmem %s1579_s4, %s1604_s27 }
  0x32   : > { %s1490_s10 = sadd.s32 %s1089_s24, %s1606_s26  ;;  %s1342_s26 = smov 32   ;;  %v515_v17 = vld [vmem:[%s500_s8] sm:$0x1] }
  0x33   : > { %s1092_s13 = sshll.u32 %s1490_s10, 2  ;;  %vm516_vm1 = vcmp.ne.s32.totalorder %v515_v17, 0  ;;  %s1090_s27 = sshll.u32 %s1490_s10, 3 }
  0x34   : > { %s497_s14 = scalar_lea.vmem %s1576_s1, %s1092_s13  ;;  %v517_v19 = vsel %vm516_vm1, 0.0, %v1343_v18  ;;  %s489_s12 = scalar_lea.vmem %s1575_s0, %s1090_s27 }
  0x35   : > { %v510_v5 = vld [vmem:[%s497_s14] sm:$0xf]  ;;  %v1514_v20 = vperm.slane %v517_v19, 0  ;;  %s508_s17 = scalar_lea.vmem %s1582_s7, %s1090_s27 }
  0x36   : > { %v597_v6 = vunpack.c.l.b16 %v510_v5 }
  0x38   : > { %v598_v7 = vpack.c.b16 %v597_v6, %v597_v6  ;;  %739 = vrot.lane.b32.xlu2 %v1147_v4, %s1342_s26  ;;  %1099 = vmatmul.msk.bf16.vlgmr.msra.gmra.mxu0 %vm523_vm0, %v510_v5 }
  0x3a   : > { %599 = vrot.lane.b32.xlu0 %v598_v7, %s1340_s18 }
  0x40   : > { %737 = vrot.lane.b32.xlu2 %v598_v7, %s1342_s26 }
  0x42   : > { %668 = vrot.lane.b32.xlu0 %v598_v7, %s1341_s21 }
  0x8a   : > { %v671_v9 = vpop.permute.xlu2 %670 }
  0x8b   : > { %v676_v41 = vsel %vm523_vm0, %v671_v9, 0 }
  0x92   : > { %v740_v10 = vpop.permute.xlu2 %739 }
  0x93   : > { %v745_v11 = vsel %vm523_vm0, %v740_v10, 0 }
  0x94   : > { %754 = vmatpush.bf16.xpose.msrb.mxu0 %v745_v11 }
  0x9a   : > { %v738_v12 = vpop.permute.xlu2 %737 }
  0x9b   : > { %1109 = vmatmul.msk.bf16.vlgmr.msrb.gmra.mxu0 %vm523_vm0, %v738_v12 }
  0xa2   : > { %v602_v13 = vpop.permute.xlu0 %601 }
  0xa3   : > { %v607_v14 = vsel %vm523_vm0, %v602_v13, 0 }
  0xa4   : > { %616 = vmatpush.bf16.xpose.msra.mxu2 %v607_v14 }
  0xac   : > { %v600_v15 = vpop.permute.xlu0 %599 }
  0xad   : > { %1105 = vmatmul.msk.bf16.vlgmr.msra.gmra.mxu2 %vm523_vm0, %v600_v15 }
  0xb4   : > { %v669_v44 = vpop.permute.xlu0 %668 }
  0xb5   : > { %v539_v21 = vpop.f32.mrf.mxu0 }
  0xb6   : > { %v543_v33 = vmul.f32 0.17677669, %v539_v21 }
  0xb8   : > { %v547_v34 = vadd.f32 %v1514_v20, %v543_v33 }
  0xba   : > { %v549_v35 = vsel %vm548_vm2, %v547_v34, -inf }
  0xbd   : > { %v541_v26 = vpop.f32.mrf.mxu0 }
 0x118   : > { %v756_v28 = vpop.f32.mrf.mxu0 }
 0x119   : > { %v760_v30 = vmul.f32 0.17677669, %v756_v28 }
 0x11b   : > { %v761_v31 = vadd.f32 %v760_v30, %v1514_v20 }
 0x11d   : > { %v762_v32 = vsel %vm548_vm2, %v761_v31, -inf }
 0x11e   : > { %763 = vmax.xlane.f32.xlu2 %v762_v32 }
 0x120   : > { %v758_v29 = vpop.f32.mrf.mxu0 }
 0x130   : > { %v618_v22 = vpop.f32.mrf.mxu2 }
 0x131   : > { %v622_v23 = vmul.f32 0.17677669, %v618_v22 }
 0x133   : > { %v623_v24 = vadd.f32 %v622_v23, %v1514_v20 }
 0x135   : > { %v624_v25 = vsel %vm548_vm2, %v623_v24, -inf }
 0x136   : > { %625 = vmax.xlane.f32.xlu1 %v624_v25 }
 0x138   : > { %v620_v27 = vpop.f32.mrf.mxu2 }
 0x14f   : > { %634 = vrot.lane.b32.xlu1 %v1148_v16, %s1340_s18 }
 0x157   : > { %703 = vrot.lane.b32.xlu1 %v1148_v16, %s1341_s21 }
 0x15f   : > { %772 = vrot.lane.b32.xlu1 %v1148_v16, %s1342_s26 }
 0x189   : > { %550 = vmax.xlane.f32.xlu1 %v549_v35 }
 0x191   : > { %v764_v45 = vpop.xlane.xlu2 %763 }
 0x192   : > { %v765_v46 = vsub.f32 %v761_v31, %v764_v45 }
 0x194   : > { %v766_v47 = vmul.f32 1.442695, %v765_v46  ;;  %v1151_v46 = vld [vmem:[#allocation4 + $0x10] sm:$0xff] }
 0x1a9   : > { %v626_v36 = vpop.xlane.xlu1 %625 }
 0x1aa   : > { %v627_v37 = vsub.f32 %v623_v24, %v626_v36  ;;  %v1156_v36 = vld [vmem:[#allocation4 + $0x38] sm:$0xff] }
 0x1ab   : > { %892 = vmatpush.bf16.msrb.mxu1 %v1156_v36 }
 0x1ac   : > { %v628_v38 = vmul.f32 1.442695, %v627_v37  ;;  %v1155_v37 = vld [vmem:[#allocation4 + $0x30] sm:$0xff] }
 0x1ae   : > { %1231 = vpow2.f32 %v628_v38  ;;  %v1154_v38 = vld [vmem:[#allocation4 + $0x28] sm:$0xff] }
 0x1af   : > { %1233 = vpow2.f32 %v766_v47  ;;  %893 = vmatpush.bf16.msrb.mxu1 %v1155_v37 }
 0x1b3   : > { %894 = vmatpush.bf16.msrb.mxu1 %v1154_v38 }
 0x1b4   : > { %v1232_v39 = vpop.eup %1231 }
 0x1b5   : > { %v630_v40 = vsel %vm548_vm2, %v1232_v39, 0.0  ;;  %v633_v43 = vpack.c.bf16 %v1232_v39, %v1232_v39  ;;  %v1234_v48 = vpop.eup %1233 }
 0x1b6   : > { %631 = vadd.xlane.f32.xlu2 %v630_v40  ;;  %v768_v49 = vsel %vm548_vm2, %v1234_v48, 0.0  ;;  %v771_v61 = vpack.c.bf16 %v1234_v48, %v1234_v48  ;;  %v1153_v40 = vld [vmem:[#allocation4 + $0x20] sm:$0xff] }
 0x1b7   : > { %895 = vmatpush.bf16.msrb.mxu1 %v1153_v40 }
 0x1be   : > { %769 = vadd.xlane.f32.xlu2 %v768_v49 }
 0x1c1   : > { %v635_v42 = vpop.permute.xlu1 %634 }
 0x1c2   : > { %647 = vmatpush.bf16.msra.mxu3 %v635_v42  ;;  %v1152_v42 = vld [vmem:[#allocation4 + $0x18] sm:$0xff] }
 0x1c3   : > { %896 = vmatpush.bf16.msrb.mxu1 %v1152_v42 }
 0x1c5   : > { %1106 = vmatmul.msk.bf16.vlgmr.msra.gmra.mxu3 %vm548_vm2, %v633_v43 }
 0x1c6   : > { %685 = vmatpush.bf16.xpose.msrb.mxu3 %v676_v41 }
 0x1c7   : > { %897 = vmatpush.bf16.msrb.mxu1 %v1151_v46 }
 0x1c9   : > { %v704_v50 = vpop.permute.xlu1 %703 }
 0x1ce   : > { %716 = vmatpush.bf16.msra.mxu3 %v704_v50 }
 0x1d1   : > { %v773_v51 = vpop.permute.xlu1 %772 }
 0x1d2   : > { %785 = vmatpush.bf16.msrb.mxu2 %v773_v51  ;;  %v1150_v51 = vld [vmem:[#allocation4 + $0x8] sm:$0xff] }
 0x1d3   : > { %898 = vmatpush.bf16.msrb.mxu1 %v1150_v51 }
 0x1d5   : > { %1107 = vmatmul.msk.bf16.vlgmr.msrb.gmra.mxu3 %vm523_vm0, %v669_v44  ;;  %1110 = vmatmul.msk.bf16.vlgmr.msrb.gmra.mxu2 %vm548_vm2, %v771_v61 }
 0x1fc   : > { %v551_v52 = vpop.xlane.xlu1 %550 }
 0x1fd   : > { %v552_v53 = vsub.f32 %v547_v34, %v551_v52 }
 0x1ff   : > { %v553_v54 = vmul.f32 1.442695, %v552_v53 }
 0x201   : > { %1235 = vpow2.f32 %v553_v54 }
 0x207   : > { %v1236_v56 = vpop.eup %1235 }
 0x208   : > { %v558_v57 = vpack.c.bf16 %v1236_v56, %v1236_v56  ;;  %v555_v35 = vsel %vm548_vm2, %v1236_v56, 0.0 }
 0x20a   : > { %1104 = vmatmul.msk.bf16.vlgmr.msra.gmra.mxu1 %vm548_vm2, %v558_v57 }
 0x229   : > { %v632_v55 = vpop.xlane.xlu2 %631 }
 0x22a   : > { %1237 = vrcp.f32 %v632_v55  ;;  %v664_v0 = vand.u32 2147483648, %v632_v55  ;;  %vm658_vm4 = vweird.f32 %v632_v55  ;;  %v662_v1 = vand.u32 2147483647, %v632_v55 }
 0x22c   : > { %v665_v3 = vor.u32 1.1754944e-38, %v664_v0  ;;  %vm663_vm6 = vcmp.eq.f32.partialorder %v662_v1, 8.507059e+37 }
 0x230   : > { %v1238_v58 = vpop.eup %1237 }
 0x231   : > { %v654_v59 = vmul.f32 %v1238_v58, %v632_v55  ;;  %vm659_vm3 = vweird.f32 %v1238_v58  ;;  %v770_v13 = vpop.xlane.xlu2 %769 }
 0x232   : > { %vm660_vm5 = vmor %vm658_vm4, %vm659_vm3  ;;  %1239 = vrcp.f32 %v770_v13  ;;  %v802_v21 = vand.u32 2147483648, %v770_v13  ;;  %vm796_vm7 = vweird.f32 %v770_v13  ;;  %v800_v23 = vand.u32 2147483647, %v770_v13 }
 0x233   : > { %v655_v60 = vsub.f32 1.0, %v654_v59  ;;  %vm819_vm4 = vcmask 523264  }
 0x234   : > { %vm801_vm10 = vcmp.eq.f32.partialorder %v800_v23, 8.507059e+37 }
 0x235   : > { %v656_v62 = vmul.f32 %v1238_v58, %v655_v60 }
 0x237   : > { %v657_v63 = vadd.f32 %v1238_v58, %v656_v62 }
 0x238   : > { %v1240_v15 = vpop.eup %1239 }
 0x239   : > { %v661_v2 = vsel %vm660_vm5, %v1238_v58, %v657_v63  ;;  %v792_v16 = vmul.f32 %v1240_v15, %v770_v13  ;;  %vm797_vm8 = vweird.f32 %v1240_v15  ;;  %v1149_v58 = vld [vmem:[#allocation4] sm:$0xff]  ;;  %vm821_vm5 = vcmask 785408  }
 0x23a   : > { %v666_v5 = vsel %vm663_vm6, %v665_v3, %v661_v2  ;;  %vm798_vm9 = vmor %vm796_vm7, %vm797_vm8  ;;  %899 = vmatpush.bf16.msrb.mxu1 %v1149_v58  ;;  %v1230_v13 = vld [vmem:[%s1581_s6] ss:$0 sm:$0xff] }
 0x23b   : > { %v793_v18 = vsub.f32 1.0, %v792_v16 }
 0x23d   : > { %v794_v19 = vmul.f32 %v1240_v15, %v793_v18 }
 0x23f   : > { %v795_v22 = vadd.f32 %v1240_v15, %v794_v19 }
 0x241   : > { %v799_v24 = vsel %vm798_vm9, %v1240_v15, %v795_v22  ;;  %v905_v15 = vld [vmem:[%s489_s12] sm:$0xff] }
 0x248   : > { %v649_v4 = vpop.f32.mrf.mxu3 }
 0x249   : > { %v667_v6 = vmul.f32 %v666_v5, %v649_v4 }
 0x24b   : > { %807 = vrot.lane.b32.xlu2 %v667_v6, %s1342_s26 }
 0x250   : > { %v651_v7 = vpop.f32.mrf.mxu3 }
 0x258   : > { %v687_v8 = vpop.f32.mrf.mxu3  ;;  %v787_v25 = vpop.f32.mrf.mxu2 }
 0x259   : > { %v691_v9 = vmul.f32 0.17677669, %v687_v8 }
 0x25b   : > { %v692_v10 = vadd.f32 %v691_v9, %v1514_v20  ;;  %v803_v20 = vor.u32 1.1754944e-38, %v802_v21 }
 0x25d   : > { %v693_v11 = vsel %vm548_vm2, %v692_v10, -inf  ;;  %v804_v26 = vsel %vm801_vm10, %v803_v20, %v799_v24 }
 0x25e   : > { %694 = vmax.xlane.f32.xlu0 %v693_v11  ;;  %v805_v27 = vmul.f32 %v804_v26, %v787_v25 }
 0x260   : > { %v689_v12 = vpop.f32.mrf.mxu3  ;;  %815 = vrot.lane.b32.xlu1 %v805_v27, %s1340_s18  ;;  %v789_v28 = vpop.f32.mrf.mxu2 }
 0x287   : > { %v1535_v14 = vpop.f32.mrf.mxu1 }
 0x28f   : > { %v579_v17 = vpop.f32.mrf.mxu1 }
 0x2a5   : > { %v808_v6 = vpop.permute.xlu2 %807 }
 0x2d1   : > { %v695_v29 = vpop.xlane.xlu0 %694 }
 0x2d2   : > { %v696_v30 = vsub.f32 %v692_v10, %v695_v29  ;;  %v816_v9 = vpop.permute.xlu1 %815 }
 0x2d4   : > { %v697_v31 = vmul.f32 1.442695, %v696_v30 }
 0x2d6   : > { %1241 = vpow2.f32 %v697_v31 }
 0x2dc   : > { %v1242_v32 = vpop.eup %1241 }
 0x2dd   : > { %v702_v33 = vpack.c.bf16 %v1242_v32, %v1242_v32  ;;  %v699_v34 = vsel %vm548_vm2, %v1242_v32, 0.0 }
 0x2de   : > { %700 = vadd.xlane.f32.xlu0 %v699_v34 }
 0x2df   : > { %1108 = vmatmul.msk.bf16.vlgmr.msra.gmra.mxu3 %vm548_vm2, %v702_v33 }
 0x2e6   : > { %556 = vadd.xlane.f32.xlu0 %v555_v35 }
 0x351   : > { %v701_v39 = vpop.xlane.xlu0 %700 }
 0x352   : > { %1243 = vrcp.f32 %v701_v39  ;;  %v733_v45 = vand.u32 2147483648, %v701_v39  ;;  %v731_v48 = vand.u32 2147483647, %v701_v39  ;;  %vm727_vm12 = vweird.f32 %v701_v39 }
 0x354   : > { %v734_v50 = vor.u32 1.1754944e-38, %v733_v45  ;;  %vm732_vm14 = vcmp.eq.f32.partialorder %v731_v48, 8.507059e+37 }
 0x358   : > { %v1244_v41 = vpop.eup %1243 }
 0x359   : > { %v723_v43 = vmul.f32 %v1244_v41, %v701_v39  ;;  %vm728_vm11 = vweird.f32 %v1244_v41  ;;  %v557_v57 = vpop.xlane.xlu0 %556 }
 0x35a   : > { %vm729_vm13 = vmor %vm727_vm12, %vm728_vm11  ;;  %1245 = vrcp.f32 %v557_v57  ;;  %v592_v0 = vand.u32 2147483648, %v557_v57  ;;  %vm586_vm1 = vweird.f32 %v557_v57  ;;  %v590_v1 = vand.u32 2147483647, %v557_v57 }
 0x35b   : > { %v724_v44 = vsub.f32 1.0, %v723_v43 }
 0x35c   : > { %v593_v3 = vor.u32 1.1754944e-38, %v592_v0  ;;  %vm591_vm3 = vcmp.eq.f32.partialorder %v590_v1, 8.507059e+37 }
 0x35d   : > { %v725_v47 = vmul.f32 %v1244_v41, %v724_v44 }
 0x35f   : > { %v726_v49 = vadd.f32 %v1244_v41, %v725_v47 }
 0x360   : > { %v1246_v59 = vpop.eup %1245 }
 0x361   : > { %v730_v52 = vsel %vm729_vm13, %v1244_v41, %v726_v49  ;;  %v582_v60 = vmul.f32 %v1246_v59, %v557_v57  ;;  %vm587_vm15 = vweird.f32 %v1246_v59 }
 0x362   : > { %v718_v53 = vpop.f32.mrf.mxu3  ;;  %v735_v54 = vsel %vm732_vm14, %v734_v50, %v730_v52  ;;  %vm588_vm2 = vmor %vm586_vm1, %vm587_vm15 }
 0x363   : > { %v736_v55 = vmul.f32 %v735_v54, %v718_v53  ;;  %v583_v61 = vsub.f32 1.0, %v582_v60 }
 0x365   : > { %811 = vrot.lane.b32.xlu0 %v736_v55, %s1341_s21  ;;  %v584_v62 = vmul.f32 %v1246_v59, %v583_v61 }
 0x367   : > { %v585_v63 = vadd.f32 %v1246_v59, %v584_v62 }
 0x369   : > { %v589_v2 = vsel %vm588_vm2, %v1246_v59, %v585_v63 }
 0x36a   : > { %v720_v56 = vpop.f32.mrf.mxu3  ;;  %v594_v4 = vsel %vm591_vm3, %v593_v3, %v589_v2 }
 0x36b   : > { %v595_v5 = vmul.f32 %v594_v4, %v1535_v14 }
 0x36d   : > { %v818_v8 = vsel %vm523_vm0, %v595_v5, %v808_v6 }
 0x3d7   : > { %v812_v7 = vpop.permute.xlu0 %811 }
 0x3d8   : > { %v820_v10 = vsel %vm819_vm4, %v818_v8, %v812_v7 }
 0x3d9   : > { %v822_v11 = vsel %vm821_vm5, %v820_v10, %v816_v9 }
 0x3da   : > { %v823_v12 = vpack.c.bf16 %v822_v11, %v822_v11 }
 0x3dc   : > { %900 = vmatmul.bf16.vlgmr.msrb.gmra.mxu1 %v823_v12 }
 0x459   : > { %v901_v14 = vpop.f32.mrf.mxu1 }
 0x45a   : > { %v902_v16 = vadd.f32 %v1230_v13, %v901_v14 }
 0x45c   : > { %v906_v17 = vadd.f32 %v905_v15, %v902_v16 }
 0x45e   : > { %907 = vst [vmem:[%s508_s17] sm:$0xff] %v906_v17 }
 0x461   : > { %v903_v18 = vpop.f32.mrf.mxu1 }
 0x462 PF: > { %s18_s30 = sadd.s32 1, %s1335_s30   ;;  %s1590_s10 = sld [smem:[#allocation7_spill]] }
 0x463   : > { %p15_p1 = scmp.ge.s32.totalorder %s18_s30, 6   ;;  %s1591_s24 = smov %s1315_s25 }
 0x464   : > { %s1592_s25 = smov %s1453_s19  ;;  %s1593_s26 = smov %s1327_s28 }
 0x465   : > { %s1594_s27 = smov %s1331_s29  ;;  %s1595_s28 = smov %s1598_s9 }
 0x466   :  { %17 = sbr.rel (!%p15_p1) target bundleno = 6 (0x6), region = 187 }
 0x468   : > { %s1596_s29 = smov %s1590_s10 }
 0x46b   :  { %935 = vsyncpa [#allocation5], 1 }
 0x46c   :  { %937 = vsyncpa [#allocation5 + $0x1], 1 }

// kernel: decoder_forward.18
= control target key start
LH: loop header
LB: loop body
LE: loop exit
PB: predicated region body
PF: predicated region fallthrough
CT: control target
= control target key end

     0   :  { %s1303_s0 = inlined_call_operand.vmem [shape: f32[32,128], index: 0, kind: input, shape index: {}]   ;;  %s1304_s1 = inlined_call_operand.vmem [shape: f32[1,128], index: 1, kind: input, shape index: {}]   ;;  %s1305_s2 = inlined_call_operand.vmem [shape: f32[1,128], index: 2, kind: input, shape index: {}]   ;;  %s1306_s3 = inlined_call_operand.hbm [shape: bf16[128,256], index: 3, kind: input, shape index: {}]   ;;  %s1307_s4 = inlined_call_operand.vmem [shape: f32[1,256], index: 4, kind: input, shape index: {}]   ;;  %s1308_s5 = inlined_call_operand.hbm [shape: bf16[256,128], index: 5, kind: input, shape index: {}]   ;;  %s1309_s6 = inlined_call_operand.vmem [shape: f32[1,128], index: 6, kind: input, shape index: {}]   ;;  %s1310_s7 = inlined_call_operand.vmem [shape: f32[32,128], index: 7, kind: output, shape index: {}]  }
   0x1   :  { %1314 = sst [smem:[#allocation15_spill]] %s1306_s3 }
   0x2   :  { %12 = vsyncpa [#allocation5], 0 }
   0x3   :  { %14 = vsyncpa [#allocation5 + $0x1], 0 }
   0x4   :  { %15 = vsyncpa [#allocation7], 0 }
   0x5   :  { %17 = vsyncpa [#allocation7 + $0x1], 0  ;;  %s1120_s24 = smov 0   ;;  %s1122_s25 = smov 0  }
   0x6   :  { %s1124_s26 = smov 0   ;;  %s1126_s27 = smov 0  }
   0x7   :  { %s1128_s28 = smov 0   ;;  %s1130_s29 = smov 0  }
   0x8   :  { %s1132_s30 = smov 0   ;;  %s1134_s8 = smov 0  }
   0x9 LB: > { %1315 = sst [smem:[#allocation10_spill]] %s1052_s26  ;;  %s749_s9 = sadd.s32 4294967295, %s1072_s8   ;;  %s1072_s8 = sphi %s1134_s8, %s23_s8   ;;  %s1068_s30 = sphi %s1132_s30, %s1328_s30   ;;  %s1064_s29 = sphi %s1130_s29, %s1332_s29   ;;  %s1060_s28 = sphi %s1128_s28, %s1326_s28   ;;  %s1056_s27 = sphi %s1126_s27, %s1331_s27   ;;  %s1052_s26 = sphi %s1124_s26, %s1325_s26   ;;  %s1048_s25 = sphi %s1122_s25, %s1330_s25   ;;  %s1044_s24 = sphi %s1120_s24, %s1329_s24  }
   0xa   : > { %1316 = sst [smem:[#allocation11_spill]] %s1068_s30  ;;  %s32_s10 = sadd.s32 1, %s1064_s29 }
   0xb   : > { %p33_p0 = scmp.ge.s32.totalorder %s32_s10, 2  ;;  %s35_s11 = sadd.s32 1, %s1068_s30 }
   0xc   : > { %s110_s12 = sadd.s32 1, %s1052_s26  ;;  %p117_p1 = scmp.ne.s32.totalorder %s1052_s26, %s1048_s25 }
   0xd   : > { %s1334_s10 = smov (%p33_p0, %s32_s10), 0  ;;  %s1336_s11 = smov (!%p33_p0, %s35_s11), %s1068_s30 }
   0xe   : > { %1317 = sst [smem:[#allocation12_spill]] %s1334_s10  ;;  %s107_s13 = ssub.s32 %s1064_s29, %s1334_s10 }
   0xf   : > { %p118_p2 = scmp.eq.s32.totalorder %s1072_s8, 0  ;;  %p37_p3 = scmp.ge.s32.totalorder %s1336_s11, 4 }
  0x10   : > { %p108_p4 = scmp.eq.s32.totalorder %s107_s13, 0  ;;  %p123_p6 = scmp.ne.s32.totalorder %s1048_s25, %s1044_s24 }
  0x11   : > { %p1170_p5 = por %p118_p2, %p117_p1  ;;  %s1338_s11 = smov (%p37_p3, %s1336_s11), 0 }
  0x12   : > { %1319 = sst [smem:[#allocation13_spill]] %s1338_s11  ;;  %p124_p7 = scmp.eq.s32.totalorder %s749_s9, 0 }
  0x13   : > { %s1178_s15 = scalar_select %p108_p4, %s1052_s26, %s110_s12  }
  0x14   : > { %p859_p8 = scmp.lt.s32.totalorder %s1072_s8, 8  ;;  %s1182_s16 = sand.u32 1, %s1052_s26  }
  0x15   : > { %1320 = sst [smem:[#allocation14_spill]] %s1178_s15  ;;  %p1184_p9 = por %p124_p7, %p123_p6 }
  0x16   : > { %s753_s18 = sshll.u32 %s1182_s16, 6  ;;  %s754_s19 = sshll.u32 %s1064_s29, 2 }
  0x17   : > { %s1322_s3 = sld [smem:[#allocation15_spill]]  ;;  %s266_s24 = scalar_lea.vmem [#allocation4], %s753_s18 }
  0x18   : > { %s273_s9 = sshll.u32 %s266_s24, 4  ;;  %p1195_p10 = pnand %p859_p8, %p1170_p5  ;;  %s274_s9 = int_to_ptr.vmem [resolvable:$true] %s273_s9 }
  0x19   : > { %p758_p11 = scmp.ge.s32.totalorder %s1072_s8, 1  ;;  %s263_s13 = scalar_lea.sflag [#allocation5], %s1182_s16 }
  0x1a   : > { %s1074_s11 = smov 128   ;;  %s1075_s10 = smov 64  }
  0x1b   : > { %s1076_s30 = smov 4   ;;  %p309_p12 = scmp.lt.s32.totalorder %s1072_s8, 9 }
  0x1c   : > { %s293_s24 = scalar_lea.vmem [#allocation6], %s753_s18  ;;  %s290_s15 = scalar_lea.sflag [#allocation7], %s1182_s16 }
  0x1d   : > { %s270_s22 = scalar_lea.hbm %s1322_s3, %s754_s19  ;;  %s831_s19 = sshll.u32 %s1064_s29, 6 }
  0x1e   : > { %s271_s23 = sshll.u32 %s270_s22, 4  ;;  %p310_p13 = pnand %p758_p11, %p309_p12  ;;  %s272_s23 = int_to_ptr.hbm [resolvable:$true] %s271_s23 }
  0x1f   : > { %855 = dma.hbm_to_vmem [thread:$0]  (!%p1195_p10), %s272_s23, 1024, %s274_s9, %s263_s13, %s1074_s11, %s1075_s10, %s1076_s30  }
  0x20   : > { %s298_s14 = scalar_lea.hbm %s1308_s5, %s831_s19  ;;  %s301_s3 = sshll.u32 %s293_s24, 4  ;;  %s302_s3 = int_to_ptr.vmem [resolvable:$true] %s301_s3 }
  0x21   : > { %s299_s22 = sshll.u32 %s298_s14, 4  ;;  %313 = sbr.rel (%p310_p13) target bundleno = 643 (0x283), region = 48  ;;  %s300_s22 = int_to_ptr.hbm [resolvable:$true] %s299_s22 }
  0x22   : > { %858 = dma.hbm_to_vmem [thread:$0]  (!%p1195_p10), %s300_s22, 1024, %s302_s3, %s290_s15, %s1075_s10, %s1075_s10, %s1076_s30  }
  0x23   : > { %s315_s26 = sand.u32 (!%p310_p13), 1, %s1048_s25  }
  0x24   : > { %s759_s11 = sshll.u32 (!%p310_p13), %s315_s26, 6  ;;  %s316_s23 = scalar_lea.sflag (!%p310_p13), [#allocation5], %s315_s26 }
  0x25   : > { %s1212_s9 = scalar_lea.vmem (!%p310_p13), [#allocation4], %s759_s11 }
  0x26   : > { %1035 = dma.done.wait (%p1184_p9), %s316_s23, 1024  }
  0x27   : > { %1037 = vsyncadd (%p1184_p9), %s316_s23, 4294966272  ;;  %s326_s18 = scalar_lea.sflag [#allocation7], %s315_s26  ;;  %s1218_s13 = scalar_lea.vmem [#allocation6], %s759_s11 }
  0x28   : > { %1039 = dma.done.wait (%p1184_p9), %s326_s18, 1024  }
  0x29   : > { %1041 = vsyncadd (%p1184_p9), %s326_s18, 4294966272  ;;  %p372_p0 = scmp.lt.s32.totalorder %s1060_s28, 3  ;;  %p376_p1 = scmp.lt.s32.totalorder %s1056_s27, 1 }
  0x2a   : > { %p763_p2 = scmp.ne.s32.totalorder %s1056_s27, 0 }
  0x2b   : > { %s1340_s28 = smov (!%p372_p0, %s1060_s28), 3 }
  0x2c   : > { %s1228_s3 = scalar_select %p376_p1, %s1056_s27, 1 }
  0x2d   : > { %s761_s30 = sshll.u32 %s1340_s28, 3  ;;  %387 = sbr.rel (%p763_p2) target bundleno = 338 (0x152), region = 60 }
  0x2e   : > { %s1233_s15 = scalar_lea.vmem %s1303_s0, %s761_s30  ;;  %s378_s17 = scalar_lea.vmem %s1307_s4, %s1228_s3 }
  0x2f   : > { %s1242_s21 = scalar_lea.vmem %s1310_s7, %s761_s30 }
  0x32   : > { %v388_v0 = vld [vmem:[%s1233_s15] sm:$0xff]  ;;  %v1077_v1 = vmov 128.0   ;;  %v1078_v12 = vmov 127.0   ;;  %v1079_v26 = vmov 0.0  }
  0x33   : > { %391 = vadd.xlane.f32.xlu0 %v388_v0  ;;  %932 = vrcp.f32 %v1077_v1  ;;  %451 = vst [vmem:[#allocation3] sm:$0xff] %v1079_v26  ;;  %v930_v37 = vld [vmem:[%s1304_s1] ss:$0 sm:$0xff] }
  0x34   : > { %934 = vrcp.f32 %v1078_v12  ;;  %v931_v43 = vld [vmem:[%s1305_s2] ss:$0 sm:$0xff] }
  0x39   : > { %v933_v2 = vpop.eup %932 }
  0x3a   : > { %v394_v3 = vmul.f32 128.0, %v933_v2  ;;  %vm398_vm0 = vweird.f32 %v933_v2  ;;  %v935_v13 = vpop.eup %934 }
  0x3b   : > { %v406_v14 = vmul.f32 127.0, %v935_v13  ;;  %vm410_vm1 = vweird.f32 %v935_v13 }
  0x3c   : > { %v395_v4 = vsub.f32 1.0, %v394_v3 }
  0x3d   : > { %v407_v15 = vsub.f32 1.0, %v406_v14 }
  0x3e   : > { %v396_v5 = vmul.f32 %v933_v2, %v395_v4 }
  0x3f   : > { %v408_v16 = vmul.f32 %v935_v13, %v407_v15 }
  0x40   : > { %v397_v6 = vadd.f32 %v933_v2, %v396_v5 }
  0x41   : > { %v409_v17 = vadd.f32 %v935_v13, %v408_v16 }
  0x42   : > { %v399_v7 = vsel %vm398_vm0, %v933_v2, %v397_v6 }
  0x43   : > { %v411_v18 = vsel %vm410_vm1, %v935_v13, %v409_v17 }
  0xa6   : > { %v392_v8 = vpop.xlane.xlu0 %391 }
  0xa7   : > { %v400_v9 = vmul.f32 %v399_v7, %v392_v8 }
  0xa9   : > { %v401_v10 = vsub.f32 %v388_v0, %v400_v9 }
  0xab   : > { %v402_v11 = vmul.f32 %v401_v10, %v401_v10  ;;  %v416_v42 = vmul.f32 %v930_v37, %v401_v10 }
  0xad   : > { %403 = vadd.xlane.f32.xlu0 %v402_v11 }
 0x120   : > { %v404_v19 = vpop.xlane.xlu0 %403 }
 0x121   : > { %v412_v20 = vmul.f32 %v411_v18, %v404_v19 }
 0x123   : > { %936 = vrsqrt.f32 %v412_v20  ;;  %vm424_vm2 = vcmp.eq.f32.partialorder %v412_v20, inf  ;;  %v427_v29 = vand.u32 2147483648, %v412_v20  ;;  %vm426_vm3 = vcmp.eq.f32.partialorder %v412_v20, 0.0 }
 0x129   : > { %v937_v21 = vpop.eup %936 }
 0x12a   : > { %v418_v22 = vmul.f32 %v937_v21, %v412_v20 }
 0x12c   : > { %v419_v23 = vmul.f32 %v937_v21, %v418_v22 }
 0x12e   : > { %v420_v24 = vmul.f32 0.5, %v419_v23 }
 0x130   : > { %v421_v25 = vsub.f32 1.5, %v420_v24 }
 0x132   : > { %v422_v27 = vmul.f32 %v937_v21, %v421_v25 }
 0x134   : > { %v423_v28 = vmul.f32 %v422_v27, %v412_v20 }
 0x136   : > { %v425_v30 = vsel %vm424_vm2, %v412_v20, %v423_v28 }
 0x137   : > { %v428_v31 = vsel %vm426_vm3, %v427_v29, %v425_v30 }
 0x138   : > { %v429_v32 = vadd.f32 1e-06, %v428_v31 }
 0x13a   : > { %938 = vrcp.f32 %v429_v32  ;;  %v441_v36 = vand.u32 2147483648, %v429_v32  ;;  %v439_v39 = vand.u32 2147483647, %v429_v32  ;;  %vm435_vm5 = vweird.f32 %v429_v32 }
 0x13c   : > { %v442_v41 = vor.u32 1.1754944e-38, %v441_v36  ;;  %vm440_vm7 = vcmp.eq.f32.partialorder %v439_v39, 8.507059e+37 }
 0x140   : > { %v939_v33 = vpop.eup %938 }
 0x141   : > { %v431_v34 = vmul.f32 %v939_v33, %v429_v32  ;;  %vm436_vm4 = vweird.f32 %v939_v33 }
 0x142   : > { %vm437_vm6 = vmor %vm435_vm5, %vm436_vm4 }
 0x143   : > { %v432_v35 = vsub.f32 1.0, %v431_v34 }
 0x145   : > { %v433_v38 = vmul.f32 %v939_v33, %v432_v35 }
 0x147   : > { %v434_v40 = vadd.f32 %v939_v33, %v433_v38 }
 0x149   : > { %v438_v44 = vsel %vm437_vm6, %v939_v33, %v434_v40 }
 0x14a   : > { %v443_v45 = vsel %vm440_vm7, %v442_v41, %v438_v44 }
 0x14b   : > { %v444_v46 = vmul.f32 %v443_v45, %v416_v42 }
 0x14d   : > { %v448_v47 = vadd.f32 %v931_v43, %v444_v46 }
 0x14f   : > { %v449_v48 = vpack.c.bf16 %v448_v47, %v448_v47 }
 0x151   : > { %450 = vst [vmem:[#allocation2] sm:$0xf] %v449_v48 }
 0x152 PF: > { %v839_v49 = vld [vmem:[%s1212_s9 + $0x38] sm:$0xff]  ;;  %v838_v50 = vld [vmem:[%s1212_s9 + $0x30] sm:$0xff]  ;;  %v837_v53 = vld [vmem:[%s1212_s9 + $0x28] sm:$0xff]  ;;  %p828_p3 = scmp.ne.s32.totalorder %s1056_s27, 1 }
 0x153   : > { %521 = vmatpush.bf16.msra.mxu0 %v839_v49  ;;  %v847_v51 = vld [vmem:[%s1218_s13 + $0x38] sm:$0xff]  ;;  %v846_v52 = vld [vmem:[%s1218_s13 + $0x30] sm:$0xff]  ;;  %v845_v54 = vld [vmem:[%s1218_s13 + $0x28] sm:$0xff] }
 0x154   : > { %601 = vmatpush.bf16.msra.mxu1 %v847_v51  ;;  %v836_v55 = vld [vmem:[%s1212_s9 + $0x20] sm:$0xff]  ;;  %v835_v57 = vld [vmem:[%s1212_s9 + $0x18] sm:$0xff]  ;;  %v834_v59 = vld [vmem:[%s1212_s9 + $0x10] sm:$0xff] }
 0x155   : > { %v844_v56 = vld [vmem:[%s1218_s13 + $0x20] sm:$0xff]  ;;  %v843_v58 = vld [vmem:[%s1218_s13 + $0x18] sm:$0xff]  ;;  %v842_v60 = vld [vmem:[%s1218_s13 + $0x10] sm:$0xff] }
 0x156   : > { %v833_v61 = vld [vmem:[%s1212_s9 + $0x8] sm:$0xff]  ;;  %v832_v62 = vld [vmem:[%s1212_s9] sm:$0xff]  ;;  %v940_v2 = vld [vmem:[%s378_s17] ss:$0 sm:$0xff] }
 0x157   : > { %522 = vmatpush.bf16.msra.mxu0 %v838_v50  ;;  %v841_v0 = vld [vmem:[%s1218_s13 + $0x8] sm:$0xff]  ;;  %v840_v1 = vld [vmem:[%s1218_s13] sm:$0xff]  ;;  %v535_v8 = vld [vmem:[#allocation3] sm:$0xff] }
 0x158   : > { %602 = vmatpush.bf16.msra.mxu1 %v846_v52  ;;  %v452_v63 = vld [vmem:[#allocation2] sm:$0xf] }
 0x15b   : > { %523 = vmatpush.bf16.msra.mxu0 %v837_v53 }
 0x15c   : > { %603 = vmatpush.bf16.msra.mxu1 %v845_v54 }
 0x15f   : > { %524 = vmatpush.bf16.msra.mxu0 %v836_v55 }
 0x160   : > { %604 = vmatpush.bf16.msra.mxu1 %v844_v56 }
 0x163   : > { %525 = vmatpush.bf16.msra.mxu0 %v835_v57 }
 0x164   : > { %605 = vmatpush.bf16.msra.mxu1 %v843_v58 }
 0x167   : > { %526 = vmatpush.bf16.msra.mxu0 %v834_v59 }
 0x168   : > { %606 = vmatpush.bf16.msra.mxu1 %v842_v60 }
 0x16b   : > { %527 = vmatpush.bf16.msra.mxu0 %v833_v61 }
 0x16c   : > { %607 = vmatpush.bf16.msra.mxu1 %v841_v0 }
 0x16f   : > { %528 = vmatpush.bf16.msra.mxu0 %v832_v62 }
 0x170   : > { %608 = vmatpush.bf16.msra.mxu1 %v840_v1 }
 0x172   : > { %529 = vmatmul.bf16.vlgmr.msra.gmra.mxu0 %v452_v63 }
 0x1ef   : > { %v530_v3 = vpop.f32.mrf.mxu0 }
 0x1f0   : > { %v531_v4 = vadd.f32 %v940_v2, %v530_v3 }
 0x1f2   : > { %v534_v5 = vmax.f32 %v531_v4, 0.0 }
 0x1f4   : > { %v536_v6 = vpack.c.bf16 %v534_v5, %v534_v5 }
 0x1f6   : > { %609 = vmatmul.bf16.vlgmr.msra.gmra.mxu1 %v536_v6 }
 0x1f7   : > { %v532_v7 = vpop.f32.mrf.mxu0 }
 0x273   : > { %v610_v9 = vpop.f32.mrf.mxu1 }
 0x274   : > { %v614_v10 = vadd.f32 %v610_v9, %v535_v8 }
 0x276   : > { %615 = vst [vmem:[#allocation3] sm:$0xff] %v614_v10 }
 0x277   : > { %619 = sbr.rel (%p828_p3) target bundleno = 643 (0x283), region = 64 }
 0x27b   : > { %v612_v11 = vpop.f32.mrf.mxu1 }
 0x27c   : > { %v620_v12 = vld [vmem:[%s1233_s15] sm:$0xff] }
 0x27d   : > { %v621_v13 = vld [vmem:[#allocation3] sm:$0xff]  ;;  %v941_v15 = vld [vmem:[%s1309_s6] ss:$0 sm:$0xff] }
 0x27e   : > { %v622_v14 = vadd.f32 %v621_v13, %v620_v12 }
 0x280   : > { %v627_v16 = vadd.f32 %v941_v15, %v622_v14 }
 0x282   : > { %628 = vst [vmem:[%s1242_s21] sm:$0xff] %v627_v16 }
 0x283 PF: > { %s23_s8 = sadd.s32 1, %s1072_s8   ;;  %s1324_s13 = sld [smem:[#allocation10_spill]] }
 0x284   : > { %p20_p4 = scmp.ge.s32.totalorder %s23_s8, 10   ;;  %s1325_s26 = sld [smem:[#allocation14_spill]] }
 0x285   : > { %s1326_s28 = sld [smem:[#allocation11_spill]]  ;;  %s1329_s24 = smov %s1048_s25 }
 0x286   : > { %s1327_s3 = sld [smem:[#allocation12_spill]]  ;;  %s1331_s27 = smov %s1064_s29 }
 0x287   : > { %s1328_s30 = sld [smem:[#allocation13_spill]] }
 0x288   :  { %22 = sbr.rel (!%p20_p4) target bundleno = 9 (0x9), region = 115 }
 0x289   : > { %s1330_s25 = smov %s1324_s13 }
 0x28c   : > { %s1332_s29 = smov %s1327_s3 }
 0x28d   :  { %648 = vsyncpa [#allocation5], 1 }
 0x28e   :  { %650 = vsyncpa [#allocation5 + $0x1], 1 }
 0x28f   :  { %651 = vsyncpa [#allocation7], 1 }
 0x290   :  { %653 = vsyncpa [#allocation7 + $0x1], 1 }

</bundles_post_ra>
